<compile_context>
chip_gen: v7x
topology: tpu7x:2x2x1
jax: 0.10.0
libtpu: 0.0.40
codegen_flags: <defaults>
</compile_context>

<pallas_src>
import jax
import jax.numpy as jnp
from jax import lax
from jax.experimental import pallas as pl
from jax.experimental.pallas import tpu as pltpu

BN_EPS = 1e-5
_PADW = 8   # left/right zero-pad columns; 8 keeps the interior store sublane-aligned


def _basic_block_kernel(x_ref, w1_ref, b1_ref, w2_ref, b2_ref, out_ref, pad_ref):
    _, H, W, C = x_ref.shape
    P = w1_ref.shape[1]
    Wp = pad_ref.shape[1]
    lo = _PADW - 1            # leftmost padded column any tap reads
    hi = _PADW + W            # rightmost padded column any tap reads

    # Zero only the halo cells the 3x3 taps read (rows 0 / H+1, cols lo / hi).
    # Re-zeroed every grid step so it stays safe when the "parallel" batch axis
    # is split across cores (each core has its own scratch).
    pad_ref[0:1, :, :] = jnp.zeros((1, Wp, C), pad_ref.dtype)
    pad_ref[H + 1:H + 2, :, :] = jnp.zeros((1, Wp, C), pad_ref.dtype)
    pad_ref[1:H + 1, lo:lo + 1, :] = jnp.zeros((H, 1, C), pad_ref.dtype)
    pad_ref[1:H + 1, hi:hi + 1, :] = jnp.zeros((H, 1, C), pad_ref.dtype)

    def conv3x3_from_pad(w_ref, cin, cout):
        # 9 shifted windows of the padded scratch, each a (H*W, cin) x (cin, cout)
        # bf16 MXU matmul accumulated in f32.  No materialized im2col matrix.
        acc = jnp.zeros((H * W, cout), jnp.float32)
        for dh in range(3):
            for dw in range(3):
                k = dh * 3 + dw
                win = pad_ref[dh:dh + H, lo + dw:lo + dw + W, :]   # (H, W, cin) bf16
                wk = w_ref[k * cin:(k + 1) * cin, :]               # (cin, cout) bf16
                acc = acc + jnp.dot(win.reshape(H * W, cin), wk,
                                    preferred_element_type=jnp.float32)
        return acc

    # ---- conv1 (3x3, stride=1, pad=1, bias-free) + bn1 (scale folded into w1) + relu ----
    pad_ref[1:H + 1, _PADW:_PADW + W, :] = x_ref[0].astype(pad_ref.dtype)
    h = jnp.maximum(conv3x3_from_pad(w1_ref, C, P) + b1_ref[...], 0.0)    # (H*W, P) f32

    # ---- conv2 (3x3, pad=1, bias-free) + bn2 (scale folded into w2) ----
    pad_ref[1:H + 1, _PADW:_PADW + W, :] = h.reshape(H, W, P).astype(pad_ref.dtype)
    h2 = conv3x3_from_pad(w2_ref, P, P) + b2_ref[...]                     # (H*W, P) f32

    # ---- identity residual (stride=1, downsample=None) + relu ----
    res = x_ref[0].reshape(H * W, C)        # f32, re-read at the use site (VMEM resident)
    out = jnp.maximum(h2 + res, 0.0)
    out_ref[0] = out.reshape(H, W, C).astype(out_ref.dtype)


def basic_block_forward_nhwc(x_nhwc, params):
    """Kernel-native entry point: x_nhwc (N, H, W, C) float32 -> (N, H, W, C)."""
    N, H, W, C = x_nhwc.shape
    w1, b1, w2, b2 = params
    P = w1.shape[1]
    assert w1.shape[0] == 9 * C and P == C, \
        "identity residual requires inplanes == planes (stride=1, downsample=None)"

    # Right-size the VMEM budget: in/out blocks (double-buffered) + padded scratch
    # + resident weights/biases, with 2x headroom and an 8 MiB floor (well under
    # v7x's 64 MiB physical VMEM; v5e/v6e have 128 MiB).
    blk_bytes = H * W * C * 4
    pad_bytes = (H + 2) * (W + 2 * _PADW) * C * 2
    wgt_bytes = (w1.size + w2.size) * 2 + (b1.size + b2.size) * 4
    working_set = 2 * 2 * blk_bytes + pad_bytes + wgt_bytes
    vmem_limit = int(max(8 * 1024 * 1024, 2 * working_set))

    return pl.pallas_call(
        _basic_block_kernel,
        out_shape=jax.ShapeDtypeStruct((N, H, W, C), jnp.float32),
        grid=(N,),
        in_specs=[
            pl.BlockSpec((1, H, W, C), lambda n: (n, 0, 0, 0)),
            pl.BlockSpec(w1.shape, lambda n: (0, 0)),   # weights resident across grid
            pl.BlockSpec(b1.shape, lambda n: (0, 0)),
            pl.BlockSpec(w2.shape, lambda n: (0, 0)),
            pl.BlockSpec(b2.shape, lambda n: (0, 0)),
        ],
        out_specs=pl.BlockSpec((1, H, W, C), lambda n: (n, 0, 0, 0)),
        scratch_shapes=[
            pltpu.VMEM((H + 2, W + 2 * _PADW, C), jnp.bfloat16),   # padded image/activation
        ],
        compiler_params=pltpu.CompilerParams(
            dimension_semantics=("parallel",),
            vmem_limit_bytes=vmem_limit,
        ),
    )(x_nhwc, w1, b1, w2, b2)


def basic_block_forward(x_nchw, params):
    """PyTorch-layout wrapper: (N, C, H, W) -> (N, C, H, W).

    In a real model keep activations NHWC end-to-end; these transposes exist only
    to match the PyTorch module's calling convention.
    """
    x = jnp.transpose(x_nchw, (0, 2, 3, 1))
    out = basic_block_forward_nhwc(x, params)
    return jnp.transpose(out, (0, 3, 1, 2))


def init_params(key, inplanes, planes):
    """Synthetic BasicBlock params; BN running stats folded, scales folded into weights."""
    ks = jax.random.split(key, 4)
    # PyTorch conv weight shapes: (out, in, 3, 3)
    w1_t = 0.1 * jax.random.normal(ks[0], (planes, inplanes, 3, 3), jnp.float32)
    w2_t = 0.1 * jax.random.normal(ks[1], (planes, planes, 3, 3), jnp.float32)

    def bn_fold(k, c):
        k1, k2, k3, k4 = jax.random.split(k, 4)
        gamma = 1.0 + 0.1 * jax.random.normal(k1, (c,), jnp.float32)
        beta = 0.1 * jax.random.normal(k2, (c,), jnp.float32)
        mean = 0.1 * jax.random.normal(k3, (c,), jnp.float32)
        var = jnp.abs(jax.random.normal(k4, (c,), jnp.float32)) + 0.5
        scale = gamma / jnp.sqrt(var + BN_EPS)
        bias = beta - mean * scale
        return scale, bias

    s1, b1 = bn_fold(ks[2], planes)
    s2, b2 = bn_fold(ks[3], planes)

    def to_matmul(w_t, scale):
        o, i, kh, kw = w_t.shape
        w = jnp.transpose(w_t, (2, 3, 1, 0)).reshape(kh * kw * i, o)   # (9*in, out)
        return (w * scale[None, :]).astype(jnp.bfloat16)               # fold BN scale, bf16 MXU operand

    w1 = to_matmul(w1_t, s1)
    w2 = to_matmul(w2_t, s2)
    return (w1, b1.reshape(1, planes).astype(jnp.float32),
            w2, b2.reshape(1, planes).astype(jnp.float32))


def _round_bf16(x):
    # Emulate the kernel's bf16 operand rounding in a way XLA cannot elide.
    return lax.reduce_precision(x, exponent_bits=8, mantissa_bits=7)


def ref_forward(x_nchw, params):
    """Pure-JAX reference mirroring the kernel's explicit bf16-operand precision."""
    w1, b1, w2, b2 = params
    cin = x_nchw.shape[1]
    p = w1.shape[1]
    x = jnp.transpose(x_nchw, (0, 2, 3, 1)).astype(jnp.float32)

    def conv3x3(h, w_mat, ci, co):
        # bf16-valued weights lifted exactly to f32; HIGHEST precision keeps the
        # accumulation in (near-)exact f32 like the kernel's preferred f32 accum.
        w_hwio = w_mat.astype(jnp.float32).reshape(3, 3, ci, co)
        return lax.conv_general_dilated(
            _round_bf16(h), w_hwio, window_strides=(1, 1),
            padding=((1, 1), (1, 1)),
            dimension_numbers=('NHWC', 'HWIO', 'NHWC'),
            precision=lax.Precision.HIGHEST,
            preferred_element_type=jnp.float32)

    h = jnp.maximum(conv3x3(x, w1, cin, p) + b1, 0.0)
    h = conv3x3(h, w2, p, p) + b2
    out = jnp.maximum(h + x, 0.0)
    return jnp.transpose(out, (0, 3, 1, 2))


if __name__ == "__main__":
    # BasicBlock with stride=1, downsample=None -> inplanes == planes.
    # Small but realistic shapes: batch=2, channels=64, spatial=16x16.
    N, planes, H, W = 2, 64, 16, 16

    key = jax.random.PRNGKey(0)
    kx, kp = jax.random.split(key)
    x = jax.random.normal(kx, (N, planes, H, W), jnp.float32)
    params = init_params(kp, planes, planes)

    out = jax.block_until_ready(basic_block_forward(x, params))
    ref = jax.block_until_ready(ref_forward(x, params))

    assert out.shape == (N, planes, H, W)

    # bf16 MXU operands are an intentional precision choice (matched in the
    # reference); remaining differences are accumulation-order / excess-precision
    # noise (<~0.05 max-abs), while structural bugs give O(0.3 .. 1+) errors and
    # >5% relative energy.
    err_max = float(jnp.max(jnp.abs(out - ref)))
    err_rel = float(jnp.linalg.norm(out - ref) / (jnp.linalg.norm(ref) + 1e-12))
    assert err_max < 1e-1 and err_rel < 2e-2, \
        f"Pallas output mismatch vs reference (max abs {err_max}, rel L2 {err_rel})"

    print("KERNEL_OK")
</pallas_src>

<mosaic_0001>
module attributes {stable_mosaic.version = 11 : i64} {
  func.func @_basic_block_kernel(%arg0: i32, %arg1: memref<1x16x16x64xf32, #tpu.memory_space<vmem>>, %arg2: memref<576x64xbf16, #tpu.memory_space<vmem>>, %arg3: memref<1x64xf32, #tpu.memory_space<vmem>>, %arg4: memref<576x64xbf16, #tpu.memory_space<vmem>>, %arg5: memref<1x64xf32, #tpu.memory_space<vmem>>, %arg6: memref<1x16x16x64xf32, #tpu.memory_space<vmem>>, %arg7: memref<18x32x64xbf16, #tpu.memory_space<vmem>>) attributes {dimension_semantics = [#tpu.dimension_semantics<parallel>], iteration_bounds = array<i64: 2>, scalar_prefetch = 0 : i64, scratch_operands = 1 : i64, tpu.core_type = #tpu.core_type<tc>, window_params = [{transform_indices = @transform_0, window_bounds = array<i64: 1, 16, 16, 64>}, {pipeline_mode = #tpu.pipeline_mode<synchronous>, transform_indices = @transform_1, window_bounds = array<i64: 576, 64>}, {pipeline_mode = #tpu.pipeline_mode<synchronous>, transform_indices = @transform_2, window_bounds = array<i64: 1, 64>}, {pipeline_mode = #tpu.pipeline_mode<synchronous>, transform_indices = @transform_3, window_bounds = array<i64: 576, 64>}, {pipeline_mode = #tpu.pipeline_mode<synchronous>, transform_indices = @transform_4, window_bounds = array<i64: 1, 64>}, {transform_indices = @transform_5, window_bounds = array<i64: 1, 16, 16, 64>}]} {
    %cst = arith.constant 0.000000e+00 : bf16
    %0 = vector.broadcast %cst : bf16 to vector<1x32x64xbf16>
    %c0 = arith.constant 0 : index
    %c0_0 = arith.constant 0 : index
    %c0_1 = arith.constant 0 : index
    %1 = vector.load %arg7[%c0, %c0_0, %c0_1] : memref<18x32x64xbf16, #tpu.memory_space<vmem>>, vector<1x32x64xbf16>
    tpu.vector_store %arg7[%c0, %c0_0, %c0_1], %0 {strides = array<i32>} : memref<18x32x64xbf16, #tpu.memory_space<vmem>>, vector<1x32x64xbf16>,
    %cst_2 = arith.constant 0.000000e+00 : bf16
    %2 = vector.broadcast %cst_2 : bf16 to vector<1x32x64xbf16>
    %c17 = arith.constant 17 : index
    %c0_3 = arith.constant 0 : index
    %c0_4 = arith.constant 0 : index
    %3 = vector.load %arg7[%c17, %c0_3, %c0_4] : memref<18x32x64xbf16, #tpu.memory_space<vmem>>, vector<1x32x64xbf16>
    tpu.vector_store %arg7[%c17, %c0_3, %c0_4], %2 {strides = array<i32>} : memref<18x32x64xbf16, #tpu.memory_space<vmem>>, vector<1x32x64xbf16>,
    %cst_5 = arith.constant 0.000000e+00 : bf16
    %4 = vector.broadcast %cst_5 : bf16 to vector<16x1x64xbf16>
    %c1 = arith.constant 1 : index
    %c7 = arith.constant 7 : index
    %c0_6 = arith.constant 0 : index
    %5 = vector.load %arg7[%c1, %c7, %c0_6] : memref<18x32x64xbf16, #tpu.memory_space<vmem>>, vector<16x1x64xbf16>
    tpu.vector_store %arg7[%c1, %c7, %c0_6], %4 {strides = array<i32>} : memref<18x32x64xbf16, #tpu.memory_space<vmem>>, vector<16x1x64xbf16>,
    %cst_7 = arith.constant 0.000000e+00 : bf16
    %6 = vector.broadcast %cst_7 : bf16 to vector<16x1x64xbf16>
    %c1_8 = arith.constant 1 : index
    %c24 = arith.constant 24 : index
    %c0_9 = arith.constant 0 : index
    %7 = vector.load %arg7[%c1_8, %c24, %c0_9] : memref<18x32x64xbf16, #tpu.memory_space<vmem>>, vector<16x1x64xbf16>
    tpu.vector_store %arg7[%c1_8, %c24, %c0_9], %6 {strides = array<i32>} : memref<18x32x64xbf16, #tpu.memory_space<vmem>>, vector<16x1x64xbf16>,
    %c0_10 = arith.constant 0 : index
    %c0_11 = arith.constant 0 : index
    %c0_12 = arith.constant 0 : index
    %c0_13 = arith.constant 0 : index
    %8 = vector.load %arg1[%c0_10, %c0_11, %c0_12, %c0_13] : memref<1x16x16x64xf32, #tpu.memory_space<vmem>>, vector<1x16x16x64xf32>
    %9 = vector.shape_cast %8 : vector<1x16x16x64xf32> to vector<16x16x64xf32>
    %10 = arith.truncf %9 : vector<16x16x64xf32> to vector<16x16x64xbf16>
    %c1_14 = arith.constant 1 : index
    %c8 = arith.constant 8 : index
    %c0_15 = arith.constant 0 : index
    %11 = vector.load %arg7[%c1_14, %c8, %c0_15] : memref<18x32x64xbf16, #tpu.memory_space<vmem>>, vector<16x16x64xbf16>
    tpu.vector_store %arg7[%c1_14, %c8, %c0_15], %10 {strides = array<i32>} : memref<18x32x64xbf16, #tpu.memory_space<vmem>>, vector<16x16x64xbf16>,
    %cst_16 = arith.constant 0.000000e+00 : f32
    %12 = vector.broadcast %cst_16 : f32 to vector<256x64xf32>
    %c0_17 = arith.constant 0 : index
    %c7_18 = arith.constant 7 : index
    %c0_19 = arith.constant 0 : index
    %13 = vector.load %arg7[%c0_17, %c7_18, %c0_19] : memref<18x32x64xbf16, #tpu.memory_space<vmem>>, vector<16x16x64xbf16>
    %c0_20 = arith.constant 0 : index
    %c0_21 = arith.constant 0 : index
    %14 = vector.load %arg2[%c0_20, %c0_21] : memref<576x64xbf16, #tpu.memory_space<vmem>>, vector<64x64xbf16>
    %15 = vector.shape_cast %13 : vector<16x16x64xbf16> to vector<256x64xbf16>
    %cst_22 = arith.constant dense<0.000000e+00> : vector<256x64xf32>
    %16 = tpu.matmul %15, %14, %cst_22 {dimension_numbers = #tpu.dot_dimension_numbers<[1], [0], [0], [1], [0, 0, 1, 1], [], []>} : vector<256x64xbf16>, vector<64x64xbf16>, vector<256x64xf32> -> vector<256x64xf32>
    %17 = arith.addf %12, %16 : vector<256x64xf32>
    %c0_23 = arith.constant 0 : index
    %c8_24 = arith.constant 8 : index
    %c0_25 = arith.constant 0 : index
    %18 = vector.load %arg7[%c0_23, %c8_24, %c0_25] : memref<18x32x64xbf16, #tpu.memory_space<vmem>>, vector<16x16x64xbf16>
    %c64 = arith.constant 64 : index
    %c0_26 = arith.constant 0 : index
    %19 = vector.load %arg2[%c64, %c0_26] : memref<576x64xbf16, #tpu.memory_space<vmem>>, vector<64x64xbf16>
    %20 = vector.shape_cast %18 : vector<16x16x64xbf16> to vector<256x64xbf16>
    %cst_27 = arith.constant dense<0.000000e+00> : vector<256x64xf32>
    %21 = tpu.matmul %20, %19, %cst_27 {dimension_numbers = #tpu.dot_dimension_numbers<[1], [0], [0], [1], [0, 0, 1, 1], [], []>} : vector<256x64xbf16>, vector<64x64xbf16>, vector<256x64xf32> -> vector<256x64xf32>
    %22 = arith.addf %17, %21 : vector<256x64xf32>
    %c0_28 = arith.constant 0 : index
    %c9 = arith.constant 9 : index
    %c0_29 = arith.constant 0 : index
    %23 = vector.load %arg7[%c0_28, %c9, %c0_29] : memref<18x32x64xbf16, #tpu.memory_space<vmem>>, vector<16x16x64xbf16>
    %c128 = arith.constant 128 : index
    %c0_30 = arith.constant 0 : index
    %24 = vector.load %arg2[%c128, %c0_30] : memref<576x64xbf16, #tpu.memory_space<vmem>>, vector<64x64xbf16>
    %25 = vector.shape_cast %23 : vector<16x16x64xbf16> to vector<256x64xbf16>
    %cst_31 = arith.constant dense<0.000000e+00> : vector<256x64xf32>
    %26 = tpu.matmul %25, %24, %cst_31 {dimension_numbers = #tpu.dot_dimension_numbers<[1], [0], [0], [1], [0, 0, 1, 1], [], []>} : vector<256x64xbf16>, vector<64x64xbf16>, vector<256x64xf32> -> vector<256x64xf32>
    %27 = arith.addf %22, %26 : vector<256x64xf32>
    %c1_32 = arith.constant 1 : index
    %c7_33 = arith.constant 7 : index
    %c0_34 = arith.constant 0 : index
    %28 = vector.load %arg7[%c1_32, %c7_33, %c0_34] : memref<18x32x64xbf16, #tpu.memory_space<vmem>>, vector<16x16x64xbf16>
    %c192 = arith.constant 192 : index
    %c0_35 = arith.constant 0 : index
    %29 = vector.load %arg2[%c192, %c0_35] : memref<576x64xbf16, #tpu.memory_space<vmem>>, vector<64x64xbf16>
    %30 = vector.shape_cast %28 : vector<16x16x64xbf16> to vector<256x64xbf16>
    %cst_36 = arith.constant dense<0.000000e+00> : vector<256x64xf32>
    %31 = tpu.matmul %30, %29, %cst_36 {dimension_numbers = #tpu.dot_dimension_numbers<[1], [0], [0], [1], [0, 0, 1, 1], [], []>} : vector<256x64xbf16>, vector<64x64xbf16>, vector<256x64xf32> -> vector<256x64xf32>
    %32 = arith.addf %27, %31 : vector<256x64xf32>
    %c1_37 = arith.constant 1 : index
    %c8_38 = arith.constant 8 : index
    %c0_39 = arith.constant 0 : index
    %33 = vector.load %arg7[%c1_37, %c8_38, %c0_39] : memref<18x32x64xbf16, #tpu.memory_space<vmem>>, vector<16x16x64xbf16>
    %c256 = arith.constant 256 : index
    %c0_40 = arith.constant 0 : index
    %34 = vector.load %arg2[%c256, %c0_40] : memref<576x64xbf16, #tpu.memory_space<vmem>>, vector<64x64xbf16>
    %35 = vector.shape_cast %33 : vector<16x16x64xbf16> to vector<256x64xbf16>
    %cst_41 = arith.constant dense<0.000000e+00> : vector<256x64xf32>
    %36 = tpu.matmul %35, %34, %cst_41 {dimension_numbers = #tpu.dot_dimension_numbers<[1], [0], [0], [1], [0, 0, 1, 1], [], []>} : vector<256x64xbf16>, vector<64x64xbf16>, vector<256x64xf32> -> vector<256x64xf32>
    %37 = arith.addf %32, %36 : vector<256x64xf32>
    %c1_42 = arith.constant 1 : index
    %c9_43 = arith.constant 9 : index
    %c0_44 = arith.constant 0 : index
    %38 = vector.load %arg7[%c1_42, %c9_43, %c0_44] : memref<18x32x64xbf16, #tpu.memory_space<vmem>>, vector<16x16x64xbf16>
    %c320 = arith.constant 320 : index
    %c0_45 = arith.constant 0 : index
    %39 = vector.load %arg2[%c320, %c0_45] : memref<576x64xbf16, #tpu.memory_space<vmem>>, vector<64x64xbf16>
    %40 = vector.shape_cast %38 : vector<16x16x64xbf16> to vector<256x64xbf16>
    %cst_46 = arith.constant dense<0.000000e+00> : vector<256x64xf32>
    %41 = tpu.matmul %40, %39, %cst_46 {dimension_numbers = #tpu.dot_dimension_numbers<[1], [0], [0], [1], [0, 0, 1, 1], [], []>} : vector<256x64xbf16>, vector<64x64xbf16>, vector<256x64xf32> -> vector<256x64xf32>
    %42 = arith.addf %37, %41 : vector<256x64xf32>
    %c2 = arith.constant 2 : index
    %c7_47 = arith.constant 7 : index
    %c0_48 = arith.constant 0 : index
    %43 = vector.load %arg7[%c2, %c7_47, %c0_48] : memref<18x32x64xbf16, #tpu.memory_space<vmem>>, vector<16x16x64xbf16>
    %c384 = arith.constant 384 : index
    %c0_49 = arith.constant 0 : index
    %44 = vector.load %arg2[%c384, %c0_49] : memref<576x64xbf16, #tpu.memory_space<vmem>>, vector<64x64xbf16>
    %45 = vector.shape_cast %43 : vector<16x16x64xbf16> to vector<256x64xbf16>
    %cst_50 = arith.constant dense<0.000000e+00> : vector<256x64xf32>
    %46 = tpu.matmul %45, %44, %cst_50 {dimension_numbers = #tpu.dot_dimension_numbers<[1], [0], [0], [1], [0, 0, 1, 1], [], []>} : vector<256x64xbf16>, vector<64x64xbf16>, vector<256x64xf32> -> vector<256x64xf32>
    %47 = arith.addf %42, %46 : vector<256x64xf32>
    %c2_51 = arith.constant 2 : index
    %c8_52 = arith.constant 8 : index
    %c0_53 = arith.constant 0 : index
    %48 = vector.load %arg7[%c2_51, %c8_52, %c0_53] : memref<18x32x64xbf16, #tpu.memory_space<vmem>>, vector<16x16x64xbf16>
    %c448 = arith.constant 448 : index
    %c0_54 = arith.constant 0 : index
    %49 = vector.load %arg2[%c448, %c0_54] : memref<576x64xbf16, #tpu.memory_space<vmem>>, vector<64x64xbf16>
    %50 = vector.shape_cast %48 : vector<16x16x64xbf16> to vector<256x64xbf16>
    %cst_55 = arith.constant dense<0.000000e+00> : vector<256x64xf32>
    %51 = tpu.matmul %50, %49, %cst_55 {dimension_numbers = #tpu.dot_dimension_numbers<[1], [0], [0], [1], [0, 0, 1, 1], [], []>} : vector<256x64xbf16>, vector<64x64xbf16>, vector<256x64xf32> -> vector<256x64xf32>
    %52 = arith.addf %47, %51 : vector<256x64xf32>
    %c2_56 = arith.constant 2 : index
    %c9_57 = arith.constant 9 : index
    %c0_58 = arith.constant 0 : index
    %53 = vector.load %arg7[%c2_56, %c9_57, %c0_58] : memref<18x32x64xbf16, #tpu.memory_space<vmem>>, vector<16x16x64xbf16>
    %c512 = arith.constant 512 : index
    %c0_59 = arith.constant 0 : index
    %54 = vector.load %arg2[%c512, %c0_59] : memref<576x64xbf16, #tpu.memory_space<vmem>>, vector<64x64xbf16>
    %55 = vector.shape_cast %53 : vector<16x16x64xbf16> to vector<256x64xbf16>
    %cst_60 = arith.constant dense<0.000000e+00> : vector<256x64xf32>
    %56 = tpu.matmul %55, %54, %cst_60 {dimension_numbers = #tpu.dot_dimension_numbers<[1], [0], [0], [1], [0, 0, 1, 1], [], []>} : vector<256x64xbf16>, vector<64x64xbf16>, vector<256x64xf32> -> vector<256x64xf32>
    %57 = arith.addf %52, %56 : vector<256x64xf32>
    %c0_61 = arith.constant 0 : index
    %c0_62 = arith.constant 0 : index
    %58 = vector.load %arg3[%c0_61, %c0_62] : memref<1x64xf32, #tpu.memory_space<vmem>>, vector<1x64xf32>
    %59 = vector.broadcast %58 : vector<1x64xf32> to vector<256x64xf32>
    %60 = arith.addf %57, %59 : vector<256x64xf32>
    %cst_63 = arith.constant 0.000000e+00 : f32
    %61 = vector.broadcast %cst_63 : f32 to vector<256x64xf32>
    %62 = arith.maximumf %60, %61 : vector<256x64xf32>
    %63 = vector.shape_cast %62 : vector<256x64xf32> to vector<16x16x64xf32>
    %64 = arith.truncf %63 : vector<16x16x64xf32> to vector<16x16x64xbf16>
    %c1_64 = arith.constant 1 : index
    %c8_65 = arith.constant 8 : index
    %c0_66 = arith.constant 0 : index
    %65 = vector.load %arg7[%c1_64, %c8_65, %c0_66] : memref<18x32x64xbf16, #tpu.memory_space<vmem>>, vector<16x16x64xbf16>
    tpu.vector_store %arg7[%c1_64, %c8_65, %c0_66], %64 {strides = array<i32>} : memref<18x32x64xbf16, #tpu.memory_space<vmem>>, vector<16x16x64xbf16>,
    %cst_67 = arith.constant 0.000000e+00 : f32
    %66 = vector.broadcast %cst_67 : f32 to vector<256x64xf32>
    %c0_68 = arith.constant 0 : index
    %c7_69 = arith.constant 7 : index
    %c0_70 = arith.constant 0 : index
    %67 = vector.load %arg7[%c0_68, %c7_69, %c0_70] : memref<18x32x64xbf16, #tpu.memory_space<vmem>>, vector<16x16x64xbf16>
    %c0_71 = arith.constant 0 : index
    %c0_72 = arith.constant 0 : index
    %68 = vector.load %arg4[%c0_71, %c0_72] : memref<576x64xbf16, #tpu.memory_space<vmem>>, vector<64x64xbf16>
    %69 = vector.shape_cast %67 : vector<16x16x64xbf16> to vector<256x64xbf16>
    %cst_73 = arith.constant dense<0.000000e+00> : vector<256x64xf32>
    %70 = tpu.matmul %69, %68, %cst_73 {dimension_numbers = #tpu.dot_dimension_numbers<[1], [0], [0], [1], [0, 0, 1, 1], [], []>} : vector<256x64xbf16>, vector<64x64xbf16>, vector<256x64xf32> -> vector<256x64xf32>
    %71 = arith.addf %66, %70 : vector<256x64xf32>
    %c0_74 = arith.constant 0 : index
    %c8_75 = arith.constant 8 : index
    %c0_76 = arith.constant 0 : index
    %72 = vector.load %arg7[%c0_74, %c8_75, %c0_76] : memref<18x32x64xbf16, #tpu.memory_space<vmem>>, vector<16x16x64xbf16>
    %c64_77 = arith.constant 64 : index
    %c0_78 = arith.constant 0 : index
    %73 = vector.load %arg4[%c64_77, %c0_78] : memref<576x64xbf16, #tpu.memory_space<vmem>>, vector<64x64xbf16>
    %74 = vector.shape_cast %72 : vector<16x16x64xbf16> to vector<256x64xbf16>
    %cst_79 = arith.constant dense<0.000000e+00> : vector<256x64xf32>
    %75 = tpu.matmul %74, %73, %cst_79 {dimension_numbers = #tpu.dot_dimension_numbers<[1], [0], [0], [1], [0, 0, 1, 1], [], []>} : vector<256x64xbf16>, vector<64x64xbf16>, vector<256x64xf32> -> vector<256x64xf32>
    %76 = arith.addf %71, %75 : vector<256x64xf32>
    %c0_80 = arith.constant 0 : index
    %c9_81 = arith.constant 9 : index
    %c0_82 = arith.constant 0 : index
    %77 = vector.load %arg7[%c0_80, %c9_81, %c0_82] : memref<18x32x64xbf16, #tpu.memory_space<vmem>>, vector<16x16x64xbf16>
    %c128_83 = arith.constant 128 : index
    %c0_84 = arith.constant 0 : index
    %78 = vector.load %arg4[%c128_83, %c0_84] : memref<576x64xbf16, #tpu.memory_space<vmem>>, vector<64x64xbf16>
    %79 = vector.shape_cast %77 : vector<16x16x64xbf16> to vector<256x64xbf16>
    %cst_85 = arith.constant dense<0.000000e+00> : vector<256x64xf32>
    %80 = tpu.matmul %79, %78, %cst_85 {dimension_numbers = #tpu.dot_dimension_numbers<[1], [0], [0], [1], [0, 0, 1, 1], [], []>} : vector<256x64xbf16>, vector<64x64xbf16>, vector<256x64xf32> -> vector<256x64xf32>
    %81 = arith.addf %76, %80 : vector<256x64xf32>
    %c1_86 = arith.constant 1 : index
    %c7_87 = arith.constant 7 : index
    %c0_88 = arith.constant 0 : index
    %82 = vector.load %arg7[%c1_86, %c7_87, %c0_88] : memref<18x32x64xbf16, #tpu.memory_space<vmem>>, vector<16x16x64xbf16>
    %c192_89 = arith.constant 192 : index
    %c0_90 = arith.constant 0 : index
    %83 = vector.load %arg4[%c192_89, %c0_90] : memref<576x64xbf16, #tpu.memory_space<vmem>>, vector<64x64xbf16>
    %84 = vector.shape_cast %82 : vector<16x16x64xbf16> to vector<256x64xbf16>
    %cst_91 = arith.constant dense<0.000000e+00> : vector<256x64xf32>
    %85 = tpu.matmul %84, %83, %cst_91 {dimension_numbers = #tpu.dot_dimension_numbers<[1], [0], [0], [1], [0, 0, 1, 1], [], []>} : vector<256x64xbf16>, vector<64x64xbf16>, vector<256x64xf32> -> vector<256x64xf32>
    %86 = arith.addf %81, %85 : vector<256x64xf32>
    %c1_92 = arith.constant 1 : index
    %c8_93 = arith.constant 8 : index
    %c0_94 = arith.constant 0 : index
    %87 = vector.load %arg7[%c1_92, %c8_93, %c0_94] : memref<18x32x64xbf16, #tpu.memory_space<vmem>>, vector<16x16x64xbf16>
    %c256_95 = arith.constant 256 : index
    %c0_96 = arith.constant 0 : index
    %88 = vector.load %arg4[%c256_95, %c0_96] : memref<576x64xbf16, #tpu.memory_space<vmem>>, vector<64x64xbf16>
    %89 = vector.shape_cast %87 : vector<16x16x64xbf16> to vector<256x64xbf16>
    %cst_97 = arith.constant dense<0.000000e+00> : vector<256x64xf32>
    %90 = tpu.matmul %89, %88, %cst_97 {dimension_numbers = #tpu.dot_dimension_numbers<[1], [0], [0], [1], [0, 0, 1, 1], [], []>} : vector<256x64xbf16>, vector<64x64xbf16>, vector<256x64xf32> -> vector<256x64xf32>
    %91 = arith.addf %86, %90 : vector<256x64xf32>
    %c1_98 = arith.constant 1 : index
    %c9_99 = arith.constant 9 : index
    %c0_100 = arith.constant 0 : index
    %92 = vector.load %arg7[%c1_98, %c9_99, %c0_100] : memref<18x32x64xbf16, #tpu.memory_space<vmem>>, vector<16x16x64xbf16>
    %c320_101 = arith.constant 320 : index
    %c0_102 = arith.constant 0 : index
    %93 = vector.load %arg4[%c320_101, %c0_102] : memref<576x64xbf16, #tpu.memory_space<vmem>>, vector<64x64xbf16>
    %94 = vector.shape_cast %92 : vector<16x16x64xbf16> to vector<256x64xbf16>
    %cst_103 = arith.constant dense<0.000000e+00> : vector<256x64xf32>
    %95 = tpu.matmul %94, %93, %cst_103 {dimension_numbers = #tpu.dot_dimension_numbers<[1], [0], [0], [1], [0, 0, 1, 1], [], []>} : vector<256x64xbf16>, vector<64x64xbf16>, vector<256x64xf32> -> vector<256x64xf32>
    %96 = arith.addf %91, %95 : vector<256x64xf32>
    %c2_104 = arith.constant 2 : index
    %c7_105 = arith.constant 7 : index
    %c0_106 = arith.constant 0 : index
    %97 = vector.load %arg7[%c2_104, %c7_105, %c0_106] : memref<18x32x64xbf16, #tpu.memory_space<vmem>>, vector<16x16x64xbf16>
    %c384_107 = arith.constant 384 : index
    %c0_108 = arith.constant 0 : index
    %98 = vector.load %arg4[%c384_107, %c0_108] : memref<576x64xbf16, #tpu.memory_space<vmem>>, vector<64x64xbf16>
    %99 = vector.shape_cast %97 : vector<16x16x64xbf16> to vector<256x64xbf16>
    %cst_109 = arith.constant dense<0.000000e+00> : vector<256x64xf32>
    %100 = tpu.matmul %99, %98, %cst_109 {dimension_numbers = #tpu.dot_dimension_numbers<[1], [0], [0], [1], [0, 0, 1, 1], [], []>} : vector<256x64xbf16>, vector<64x64xbf16>, vector<256x64xf32> -> vector<256x64xf32>
    %101 = arith.addf %96, %100 : vector<256x64xf32>
    %c2_110 = arith.constant 2 : index
    %c8_111 = arith.constant 8 : index
    %c0_112 = arith.constant 0 : index
    %102 = vector.load %arg7[%c2_110, %c8_111, %c0_112] : memref<18x32x64xbf16, #tpu.memory_space<vmem>>, vector<16x16x64xbf16>
    %c448_113 = arith.constant 448 : index
    %c0_114 = arith.constant 0 : index
    %103 = vector.load %arg4[%c448_113, %c0_114] : memref<576x64xbf16, #tpu.memory_space<vmem>>, vector<64x64xbf16>
    %104 = vector.shape_cast %102 : vector<16x16x64xbf16> to vector<256x64xbf16>
    %cst_115 = arith.constant dense<0.000000e+00> : vector<256x64xf32>
    %105 = tpu.matmul %104, %103, %cst_115 {dimension_numbers = #tpu.dot_dimension_numbers<[1], [0], [0], [1], [0, 0, 1, 1], [], []>} : vector<256x64xbf16>, vector<64x64xbf16>, vector<256x64xf32> -> vector<256x64xf32>
    %106 = arith.addf %101, %105 : vector<256x64xf32>
    %c2_116 = arith.constant 2 : index
    %c9_117 = arith.constant 9 : index
    %c0_118 = arith.constant 0 : index
    %107 = vector.load %arg7[%c2_116, %c9_117, %c0_118] : memref<18x32x64xbf16, #tpu.memory_space<vmem>>, vector<16x16x64xbf16>
    %c512_119 = arith.constant 512 : index
    %c0_120 = arith.constant 0 : index
    %108 = vector.load %arg4[%c512_119, %c0_120] : memref<576x64xbf16, #tpu.memory_space<vmem>>, vector<64x64xbf16>
    %109 = vector.shape_cast %107 : vector<16x16x64xbf16> to vector<256x64xbf16>
    %cst_121 = arith.constant dense<0.000000e+00> : vector<256x64xf32>
    %110 = tpu.matmul %109, %108, %cst_121 {dimension_numbers = #tpu.dot_dimension_numbers<[1], [0], [0], [1], [0, 0, 1, 1], [], []>} : vector<256x64xbf16>, vector<64x64xbf16>, vector<256x64xf32> -> vector<256x64xf32>
    %111 = arith.addf %106, %110 : vector<256x64xf32>
    %c0_122 = arith.constant 0 : index
    %c0_123 = arith.constant 0 : index
    %112 = vector.load %arg5[%c0_122, %c0_123] : memref<1x64xf32, #tpu.memory_space<vmem>>, vector<1x64xf32>
    %113 = vector.broadcast %112 : vector<1x64xf32> to vector<256x64xf32>
    %114 = arith.addf %111, %113 : vector<256x64xf32>
    %c0_124 = arith.constant 0 : index
    %c0_125 = arith.constant 0 : index
    %c0_126 = arith.constant 0 : index
    %c0_127 = arith.constant 0 : index
    %115 = vector.load %arg1[%c0_124, %c0_125, %c0_126, %c0_127] : memref<1x16x16x64xf32, #tpu.memory_space<vmem>>, vector<1x16x16x64xf32>
    %116 = vector.shape_cast %115 : vector<1x16x16x64xf32> to vector<16x16x64xf32>
    %117 = vector.shape_cast %116 : vector<16x16x64xf32> to vector<256x64xf32>
    %118 = arith.addf %114, %117 : vector<256x64xf32>
    %cst_128 = arith.constant 0.000000e+00 : f32
    %119 = vector.broadcast %cst_128 : f32 to vector<256x64xf32>
    %120 = arith.maximumf %118, %119 : vector<256x64xf32>
    %121 = vector.shape_cast %120 : vector<256x64xf32> to vector<16x16x64xf32>
    %c0_129 = arith.constant 0 : index
    %c0_130 = arith.constant 0 : index
    %c0_131 = arith.constant 0 : index
    %c0_132 = arith.constant 0 : index
    %122 = vector.load %arg6[%c0_129, %c0_130, %c0_131, %c0_132] : memref<1x16x16x64xf32, #tpu.memory_space<vmem>>, vector<1x16x16x64xf32>
    %123 = vector.shape_cast %122 : vector<1x16x16x64xf32> to vector<16x16x64xf32>
    %124 = vector.shape_cast %121 : vector<16x16x64xf32> to vector<1x16x16x64xf32>
    tpu.vector_store %arg6[%c0_129, %c0_130, %c0_131, %c0_132], %124 {strides = array<i32>} : memref<1x16x16x64xf32, #tpu.memory_space<vmem>>, vector<1x16x16x64xf32>,
    return
  }
  func.func @transform_0(%arg0: i32) -> (i32, i32, i32, i32) {
    %c0_i32 = arith.constant 0 : i32
    %c0_i32_0 = arith.constant 0 : i32
    %c0_i32_1 = arith.constant 0 : i32
    %c0_i32_2 = arith.constant 0 : i32
    return %arg0, %c0_i32, %c0_i32_0, %c0_i32_1 : i32, i32, i32, i32
  }
  func.func @transform_1(%arg0: i32) -> (i32, i32) {
    %c0_i32 = arith.constant 0 : i32
    %c0_i32_0 = arith.constant 0 : i32
    %c0_i32_1 = arith.constant 0 : i32
    return %c0_i32, %c0_i32_0 : i32, i32
  }
  func.func @transform_2(%arg0: i32) -> (i32, i32) {
    %c0_i32 = arith.constant 0 : i32
    %c0_i32_0 = arith.constant 0 : i32
    %c0_i32_1 = arith.constant 0 : i32
    return %c0_i32, %c0_i32_0 : i32, i32
  }
  func.func @transform_3(%arg0: i32) -> (i32, i32) {
    %c0_i32 = arith.constant 0 : i32
    %c0_i32_0 = arith.constant 0 : i32
    %c0_i32_1 = arith.constant 0 : i32
    return %c0_i32, %c0_i32_0 : i32, i32
  }
  func.func @transform_4(%arg0: i32) -> (i32, i32) {
    %c0_i32 = arith.constant 0 : i32
    %c0_i32_0 = arith.constant 0 : i32
    %c0_i32_1 = arith.constant 0 : i32
    return %c0_i32, %c0_i32_0 : i32, i32
  }
  func.func @transform_5(%arg0: i32) -> (i32, i32, i32, i32) {
    %c0_i32 = arith.constant 0 : i32
    %c0_i32_0 = arith.constant 0 : i32
    %c0_i32_1 = arith.constant 0 : i32
    %c0_i32_2 = arith.constant 0 : i32
    return %arg0, %c0_i32, %c0_i32_0, %c0_i32_1 : i32, i32, i32, i32
  }
}

</mosaic_0001>

<bundles_post_ra>
// kernel: tpu_custom_call.1
= control target key start
LH: loop header
LB: loop body
LE: loop exit
PB: predicated region body
PF: predicated region fallthrough
CT: control target
= control target key end

     0   :  { %10 = vsyncpa [#allocation4], 0  ;;  %s14248_s0 = inlined_call_operand.vmem [shape: f32[2,16,16,64], index: 0, kind: input, shape index: {}]   ;;  %s14249_s1 = inlined_call_operand.vmem [shape: bf16[576,64], index: 1, kind: input, shape index: {}]   ;;  %s14250_s2 = inlined_call_operand.vmem [shape: f32[1,64], index: 2, kind: input, shape index: {}]   ;;  %s14251_s3 = inlined_call_operand.vmem [shape: bf16[576,64], index: 3, kind: input, shape index: {}]   ;;  %s14252_s4 = inlined_call_operand.vmem [shape: f32[1,64], index: 4, kind: input, shape index: {}]   ;;  %s14253_s5 = inlined_call_operand.hbm [shape: f32[2,16,16,64], index: 5, kind: output, shape index: {}]  }
   0x1   :  { %12 = vsyncpa [#allocation4 + $0x1], 0  ;;  %s11975_s18 = smov 0   ;;  %s11977_s19 = smov 0  }
   0x2   :  { %s11979_s20 = smov 0   ;;  %s11981_s21 = smov 0  }
   0x3 LB: > { %s11996_s22 = sadd.s32 4294967295, %s11939_s21   ;;  %s9790_s23 = sadd.s32 4294967294, %s11939_s21   ;;  %s11939_s21 = sphi %s11981_s21, %s14263_s21   ;;  %s11935_s20 = sphi %s11979_s20, %s14262_s20   ;;  %s11931_s19 = sphi %s11977_s19, %s14261_s19   ;;  %s11927_s18 = sphi %s11975_s18, %s14260_s18  }
   0x4   : > { %s12000_s24 = sadd.s32 1, %s11939_s21   ;;  %s135_s25 = sadd.s32 1, %s11935_s20 }
   0x5   : > { %s132_s26 = ssub.s32 %s11939_s21, %s12000_s24  ;;  %p145_p0 = scmp.ne.s32.totalorder %s11935_s20, %s11931_s19 }
   0x6   : > { %p133_p1 = scmp.eq.s32.totalorder %s132_s26, 0  ;;  %p146_p2 = scmp.eq.s32.totalorder %s11996_s22, 1 }
   0x7   : > { %p151_p3 = scmp.ne.s32.totalorder %s11931_s19, %s11927_s18  ;;  %p152_p4 = scmp.eq.s32.totalorder %s9790_s23, 1 }
   0x8   : > { %s12011_s27 = scalar_select %p133_p1, %s11935_s20, %s135_s25  }
   0x9   : > { %p12013_p5 = por %p146_p2, %p145_p0  ;;  %p12017_p6 = por %p152_p4, %p151_p3 }
   0xa   : > { %p9793_p7 = scmp.ge.s32.totalorder %s11939_s21, 1  ;;  %p190_p8 = scmp.lt.s32.totalorder %s11939_s21, 3 }
   0xc   : > { %p191_p9 = pnand %p9793_p7, %p190_p8 }
   0xd   : > { %v11800_v0 = vld [vmem:[%s14249_s1 + $0x20] sm:$0xff] (!%p191_p9)   ;;  %vm224_vm0 = vcmask (!%p191_p9), 523264   ;;  %v11801_v1 = vld [vmem:[%s14249_s1 + $0x28] sm:$0xff] (!%p191_p9)   ;;  %v11941_v2 = vmov (!%p191_p9), 0   ;;  %p218_p10 = scmp.lt.s32.totalorder (!%p191_p9), %s11996_s22, 1  ;;  %v11802_v3 = vld [vmem:[%s14249_s1 + $0x30] sm:$0xff] (!%p191_p9)  }
   0xe   : > { %194 = sbr.rel (%p191_p9) target bundleno = 1598 (0x63e), region = 40  ;;  %10526 = vmatprep.subr.bf16.mxu0 (!%p191_p9), %v11800_v0  ;;  %225 = vst.msk [vmem:[#allocation2] sm:$0xff] (!%p191_p9), %vm224_vm0, %v11941_v2  ;;  %226 = vst.msk [vmem:[#allocation2 + $0x8] sm:$0xff] (!%p191_p9), %vm224_vm0, %v11941_v2  ;;  %v11803_v4 = vld [vmem:[%s14249_s1 + $0x38] sm:$0xff] (!%p191_p9)   ;;  %vm831_vm1 = vcmask (!%p191_p9), 1043456   ;;  %v12053_v10 = vld [vmem:[%s14249_s1] sm:$0xff] (!%p191_p9)  }
   0xf   : > { %228 = vst.msk [vmem:[#allocation2 + $0x110] sm:$0xff] (!%p191_p9), %vm224_vm0, %v11941_v2  ;;  %229 = vst.msk [vmem:[#allocation2 + $0x118] sm:$0xff] (!%p191_p9), %vm224_vm0, %v11941_v2  ;;  %10527 = vmatpush3.bf16.msra.mxu0 (!%p191_p9), %v11800_v0  ;;  %vm429_vm2 = vcmask (!%p191_p9), 523268   ;;  %vm431_vm3 = vcmask (!%p191_p9), 519168   ;;  %vm231_vm4 = vcmask (!%p191_p9), 519171   ;;  %vm282_vm8 = vcmask (!%p191_p9), 520196  }
  0x10   : > { %10528 = vmatprep.subr.bf16.mxu0 (!%p191_p9), %v11801_v1  ;;  %vm232_vm5 = vsmask.f32 (!%p191_p9), 7950  ;;  %vm283_vm7 = vsmask.f32 (!%p191_p9), 4352  ;;  %vm1370_vm10 = vsmask.f32 (!%p191_p9), 3328 }
  0x11   : > { %vm12169_vm6 = vmand (!%p191_p9), %vm231_vm4, %vm232_vm5  ;;  %s215_s30 = sand.u32 (!%p191_p9), 1, %s11931_s19   ;;  %s10165_s10 = sshll.u32 (!%p191_p9), %s11996_s22, 12 }
  0x12   : > { %vm12282_vm9 = vmand (!%p191_p9), %vm282_vm8, %vm283_vm7  ;;  %s9794_s8 = sshll.u32 (!%p191_p9), %s215_s30, 8  ;;  %s14195_s14 = scalar_lea.hbm (!%p191_p9), %s14253_s5, %s10165_s10 }
  0x13   : > { %10529 = vmatpush3.bf16.msra.mxu0 (!%p191_p9), %v11801_v1  ;;  %s14074_s9 = scalar_lea.vmem (!%p191_p9), [#allocation3], %s9794_s8  ;;  %s11942_s15 = smov (!%p191_p9), [#allocation3]  }
  0x14   : > { %10530 = vmatprep.subr.bf16.mxu0 (!%p191_p9), %v11802_v3  ;;  %s11881_s16 = sshll.u32 (!%p191_p9), %s11942_s15, 4  ;;  %s11882_s16 = int_to_ptr.vmem [resolvable:$false] %s11881_s16 }
  0x15   : > { %s219_s11 = scalar_select %p218_p10, %s11996_s22, 1  ;;  %v12046_v5 = vld [vmem:[#allocation2 + $0x8] sm:$0xf]  ;;  %v775_v6 = vld [vmem:[#allocation2] sm:$0xf0] }
  0x16   : > { %v832_v8 = vrot.slane %v775_v6, 4  ;;  %v833_v9 = vrot.slane %v12046_v5, 4  ;;  %s14207_s22 = scalar_lea.sflag [#allocation4], %s215_s30  ;;  %s11883_s23 = scalar_lea.vmem %s11882_s16, 8192 }
  0x17   : > { %s10164_s12 = sshll.u32 %s219_s11, 8  ;;  %10531 = vmatpush3.bf16.msra.mxu0 %v11802_v3  ;;  %s9728_s11 = sshll.u32 %s14074_s9, 4  ;;  %s14197_s11 = int_to_ptr.vmem [resolvable:$true] %s9728_s11 }
  0x18   : > { %s12044_s17 = scalar_lea.vmem %s14248_s0, %s10164_s12  ;;  %10532 = vmatprep.subr.bf16.mxu0 %v11803_v4  ;;  %v834_v17 = vsel %vm831_vm1, %v832_v8, %v833_v9  ;;  %v11805_v8 = vld [vmem:[%s14249_s1 + $0x8] sm:$0xff]   ;;  %p11884_p0 = scmp.lt.s32.totalorder %s14197_s11, %s11882_s16 }
  0x19   : > { %v333_v7 = vld [vmem:[%s12044_s17] sm:$0xff]  ;;  %v334_v11 = vld [vmem:[%s12044_s17 + $0x8] sm:$0xff]  ;;  %v335_v12 = vld [vmem:[%s12044_s17 + $0x10] sm:$0xff]  ;;  %10534 = vmatprep.mubr.msk.bf16.mxu0 %vm224_vm0, %v834_v17 }
  0x1a   : > { %v365_v13 = vpack.c.bf16 %v334_v11, %v333_v7  ;;  %v336_v14 = vld [vmem:[%s12044_s17 + $0x18] sm:$0xff]  ;;  %v337_v15 = vld [vmem:[%s12044_s17 + $0x20] sm:$0xff]  ;;  %v338_v16 = vld [vmem:[%s12044_s17 + $0x28] sm:$0xff] }
  0x1b   : > { %v366_v18 = vpack.c.bf16 %v336_v14, %v335_v12  ;;  %v367_v19 = vpack.c.bf16 %v338_v16, %v337_v15  ;;  %v339_v20 = vld [vmem:[%s12044_s17 + $0x30] sm:$0xff]  ;;  %v340_v21 = vld [vmem:[%s12044_s17 + $0x38] sm:$0xff]  ;;  %v341_v22 = vld [vmem:[%s12044_s17 + $0x40] sm:$0xff]  ;;  %10533 = vmatpush3.bf16.msra.mxu0 %v11803_v4 }
  0x1c   : > { %v397_v23 = vrot.slane %v365_v13, 4  ;;  %v368_v24 = vpack.c.bf16 %v340_v21, %v339_v20  ;;  %v342_v25 = vld [vmem:[%s12044_s17 + $0x48] sm:$0xff]  ;;  %v343_v26 = vld [vmem:[%s12044_s17 + $0x50] sm:$0xff]  ;;  %v344_v27 = vld [vmem:[%s12044_s17 + $0x58] sm:$0xff]  ;;  %10566 = vmatprep.subr.bf16.mxu0 %v12053_v10 }
  0x1d   : > { %v398_v28 = vrot.slane %v366_v18, 4  ;;  %v399_v29 = vrot.slane %v367_v19, 4  ;;  %v369_v30 = vpack.c.bf16 %v342_v25, %v341_v22  ;;  %v370_v31 = vpack.c.bf16 %v344_v27, %v343_v26  ;;  %v345_v32 = vld [vmem:[%s12044_s17 + $0x60] sm:$0xff]  ;;  %v346_v33 = vld [vmem:[%s12044_s17 + $0x68] sm:$0xff]  ;;  %v347_v34 = vld [vmem:[%s12044_s17 + $0x70] sm:$0xff] }
  0x1e   : > { %430 = vst.msk [vmem:[#allocation2 + $0x10] sm:$0xf0] %vm429_vm2, %v397_v23  ;;  %v400_v35 = vrot.slane %v368_v24, 4  ;;  %v371_v36 = vpack.c.bf16 %v346_v33, %v345_v32  ;;  %v348_v37 = vld [vmem:[%s12044_s17 + $0x78] sm:$0xff]  ;;  %v349_v38 = vld [vmem:[%s12044_s17 + $0x80] sm:$0xff]  ;;  %v350_v39 = vld [vmem:[%s12044_s17 + $0x88] sm:$0xff] }
  0x1f   : > { %432 = vst.msk [vmem:[#allocation2 + $0x18] sm:$0xf] %vm431_vm3, %v397_v23  ;;  %434 = vst.msk [vmem:[#allocation2 + $0x28] sm:$0xf] %vm431_vm3, %v398_v28  ;;  %v401_v40 = vrot.slane %v369_v30, 4  ;;  %v402_v41 = vrot.slane %v370_v31, 4  ;;  %v372_v42 = vpack.c.bf16 %v348_v37, %v347_v34  ;;  %v373_v43 = vpack.c.bf16 %v350_v39, %v349_v38 }
  0x20   : > { %433 = vst.msk [vmem:[#allocation2 + $0x20] sm:$0xf0] %vm429_vm2, %v398_v28  ;;  %435 = vst.msk [vmem:[#allocation2 + $0x30] sm:$0xf0] %vm429_vm2, %v399_v29  ;;  %v351_v44 = vld [vmem:[%s12044_s17 + $0x90] sm:$0xff]  ;;  %v352_v45 = vld [vmem:[%s12044_s17 + $0x98] sm:$0xff] }
  0x21   : > { %436 = vst.msk [vmem:[#allocation2 + $0x38] sm:$0xf] %vm431_vm3, %v399_v29  ;;  %v353_v46 = vld [vmem:[%s12044_s17 + $0xa0] sm:$0xff]  ;;  %438 = vst.msk [vmem:[#allocation2 + $0x48] sm:$0xf] %vm431_vm3, %v400_v35  ;;  %v403_v47 = vrot.slane %v371_v36, 4  ;;  %v374_v48 = vpack.c.bf16 %v352_v45, %v351_v44 }
  0x22   : > { %437 = vst.msk [vmem:[#allocation2 + $0x40] sm:$0xf0] %vm429_vm2, %v400_v35  ;;  %v354_v49 = vld [vmem:[%s12044_s17 + $0xa8] sm:$0xff]  ;;  %v355_v50 = vld [vmem:[%s12044_s17 + $0xb0] sm:$0xff]  ;;  %v356_v51 = vld [vmem:[%s12044_s17 + $0xb8] sm:$0xff]  ;;  %v404_v52 = vrot.slane %v372_v42, 4 }
  0x23   : > { %439 = vst.msk [vmem:[#allocation2 + $0x50] sm:$0xf0] %vm429_vm2, %v401_v40  ;;  %441 = vst.msk [vmem:[#allocation2 + $0x60] sm:$0xf0] %vm429_vm2, %v402_v41  ;;  %v405_v53 = vrot.slane %v373_v43, 4  ;;  %v375_v54 = vpack.c.bf16 %v354_v49, %v353_v46  ;;  %v376_v55 = vpack.c.bf16 %v356_v51, %v355_v50  ;;  %v357_v56 = vld [vmem:[%s12044_s17 + $0xc0] sm:$0xff] }
  0x24   : > { %440 = vst.msk [vmem:[#allocation2 + $0x58] sm:$0xf] %vm431_vm3, %v401_v40  ;;  %442 = vst.msk [vmem:[#allocation2 + $0x68] sm:$0xf] %vm431_vm3, %v402_v41  ;;  %v358_v57 = vld [vmem:[%s12044_s17 + $0xc8] sm:$0xff]  ;;  %v359_v58 = vld [vmem:[%s12044_s17 + $0xd0] sm:$0xff] }
  0x25   : > { %443 = vst.msk [vmem:[#allocation2 + $0x70] sm:$0xf0] %vm429_vm2, %v403_v47  ;;  %v406_v59 = vrot.slane %v374_v48, 4  ;;  %v377_v60 = vpack.c.bf16 %v358_v57, %v357_v56  ;;  %v360_v61 = vld [vmem:[%s12044_s17 + $0xd8] sm:$0xff]  ;;  %v361_v62 = vld [vmem:[%s12044_s17 + $0xe0] sm:$0xff]  ;;  %v362_v63 = vld [vmem:[%s12044_s17 + $0xe8] sm:$0xff] }
  0x26   : > { %444 = vst.msk [vmem:[#allocation2 + $0x78] sm:$0xf] %vm431_vm3, %v403_v47  ;;  %446 = vst.msk [vmem:[#allocation2 + $0x88] sm:$0xf] %vm431_vm3, %v404_v52  ;;  %v407_v0 = vrot.slane %v375_v54, 4  ;;  %v408_v1 = vrot.slane %v376_v55, 4  ;;  %v378_v2 = vpack.c.bf16 %v360_v61, %v359_v58  ;;  %v379_v3 = vpack.c.bf16 %v362_v63, %v361_v62 }
  0x27   : > { %445 = vst.msk [vmem:[#allocation2 + $0x80] sm:$0xf0] %vm429_vm2, %v404_v52  ;;  %447 = vst.msk [vmem:[#allocation2 + $0x90] sm:$0xf0] %vm429_vm2, %v405_v53  ;;  %v409_v4 = vrot.slane %v377_v60, 4  ;;  %v11806_v28 = vld [vmem:[%s14249_s1 + $0x10] sm:$0xff]  }
  0x28   : > { %448 = vst.msk [vmem:[#allocation2 + $0x98] sm:$0xf] %vm431_vm3, %v405_v53  ;;  %450 = vst.msk [vmem:[#allocation2 + $0xa8] sm:$0xf] %vm431_vm3, %v406_v59  ;;  %v12107_v6 = vld [vmem:[#allocation2 + $0x18] sm:$0xf] }
  0x29   : > { %449 = vst.msk [vmem:[#allocation2 + $0xa0] sm:$0xf0] %vm429_vm2, %v406_v59  ;;  %v12109_v7 = vld [vmem:[#allocation2 + $0x10] sm:$0xf0]  ;;  %451 = vst.msk [vmem:[#allocation2 + $0xb0] sm:$0xf0] %vm429_vm2, %v407_v0 }
  0x2a   : > { %452 = vst.msk [vmem:[#allocation2 + $0xb8] sm:$0xf] %vm431_vm3, %v407_v0  ;;  %454 = vst.msk [vmem:[#allocation2 + $0xc8] sm:$0xf] %vm431_vm3, %v408_v1  ;;  %v410_v9 = vrot.slane %v378_v2, 4  ;;  %v411_v11 = vrot.slane %v379_v3, 4 }
  0x2b   : > { %453 = vst.msk [vmem:[#allocation2 + $0xc0] sm:$0xf0] %vm429_vm2, %v408_v1  ;;  %v835_v12 = vrot.slane %v12109_v7, 4  ;;  %v836_v13 = vrot.slane %v12107_v6, 4  ;;  %v12120_v14 = vld [vmem:[#allocation2 + $0x28] sm:$0xf] }
  0x2c   : > { %v12122_v15 = vld [vmem:[#allocation2 + $0x20] sm:$0xf0]  ;;  %455 = vst.msk [vmem:[#allocation2 + $0xd0] sm:$0xf0] %vm429_vm2, %v409_v4  ;;  %v839_v17 = vrot.slane %v12120_v14, 4 }
  0x2d   : > { %456 = vst.msk [vmem:[#allocation2 + $0xd8] sm:$0xf] %vm431_vm3, %v409_v4  ;;  %v838_v16 = vrot.slane %v12122_v15, 4  ;;  %v12128_v18 = vld [vmem:[#allocation2 + $0x38] sm:$0xf]  ;;  %v837_v20 = vsel %vm831_vm1, %v835_v12, %v836_v13  ;;  %v12178_v41 = vld [vmem:[%s14249_s1 + $0x40] sm:$0xff]  }
  0x2e   : > { %v12130_v19 = vld [vmem:[#allocation2 + $0x30] sm:$0xf0]  ;;  %457 = vst.msk [vmem:[#allocation2 + $0xe0] sm:$0xf0] %vm429_vm2, %v410_v9  ;;  %459 = vst.msk [vmem:[#allocation2 + $0xf0] sm:$0xf0] %vm429_vm2, %v411_v11  ;;  %10535 = vmatmul.mubr.msk.bf16.vlgmr.msra.gmra.mrb[0].mxu0 %vm224_vm0, %v837_v20 }
  0x2f   : > { %458 = vst.msk [vmem:[#allocation2 + $0xe8] sm:$0xf] %vm431_vm3, %v410_v9  ;;  %460 = vst.msk [vmem:[#allocation2 + $0xf8] sm:$0xf] %vm431_vm3, %v411_v11  ;;  %v12137_v21 = vld [vmem:[#allocation2 + $0x48] sm:$0xf]  ;;  %v840_v23 = vsel %vm831_vm1, %v838_v16, %v839_v17  ;;  %10567 = vmatpush3.bf16.msra.mxu0 %v12053_v10 }
  0x30   : > { %v12139_v22 = vld [vmem:[#allocation2 + $0x40] sm:$0xf0]  ;;  %10538 = vmatprep.mubr.msk.bf16.mxu0 %vm224_vm0, %v840_v23  ;;  %v841_v24 = vrot.slane %v12130_v19, 4  ;;  %v842_v25 = vrot.slane %v12128_v18, 4  ;;  %v845_v27 = vrot.slane %v12137_v21, 4  ;;  %10568 = vmatprep.subr.bf16.mxu0 %v11805_v8  ;;  %v11807_v10 = vld [vmem:[%s14249_s1 + $0x18] sm:$0xff]  }
  0x31   : > { %v844_v26 = vrot.slane %v12139_v22, 4  ;;  %v12157_v31 = vld [vmem:[#allocation2 + $0x58] sm:$0xf]  ;;  %v12159_v32 = vld [vmem:[#allocation2 + $0x50] sm:$0xf0] }
  0x32   : > { %v843_v29 = vsel %vm831_vm1, %v841_v24, %v842_v25  ;;  %v12161_v33 = vld [vmem:[#allocation2 + $0x68] sm:$0xf]  ;;  %v12163_v34 = vld [vmem:[#allocation2 + $0x60] sm:$0xf0]  ;;  %v847_v35 = vrot.slane %v12159_v32, 4  ;;  %v848_v36 = vrot.slane %v12157_v31, 4 }
  0x33   : > { %10569 = vmatpush3.bf16.msra.mxu0 %v11805_v8  ;;  %v846_v30 = vsel %vm831_vm1, %v844_v26, %v845_v27  ;;  %v234_v38 = vld [vmem:[#allocation2 + $0x10] sm:$0x8]  ;;  %v850_v39 = vrot.slane %v12163_v34, 4  ;;  %v851_v40 = vrot.slane %v12161_v33, 4  ;;  %v237_v42 = vld [vmem:[#allocation2 + $0x20] sm:$0x8] }
  0x34   : > { %10570 = vmatprep.subr.bf16.mxu0 %v11806_v28  ;;  %v235_v43 = vsel %vm12169_vm6, 0, %v234_v38  ;;  %v240_v44 = vld [vmem:[#allocation2 + $0x30] sm:$0x8]  ;;  %v849_v45 = vsel %vm831_vm1, %v847_v35, %v848_v36  ;;  %v12183_v46 = vld [vmem:[#allocation2 + $0x78] sm:$0xf]  ;;  %v238_v47 = vsel %vm12169_vm6, 0, %v237_v42 }
  0x35   : > { %236 = vst [vmem:[#allocation2 + $0x10] sm:$0x8] %v235_v43  ;;  %v243_v48 = vld [vmem:[#allocation2 + $0x40] sm:$0x8]  ;;  %v852_v49 = vsel %vm831_vm1, %v850_v39, %v851_v40  ;;  %v12188_v50 = vld [vmem:[#allocation2 + $0x70] sm:$0xf0] }
  0x36   : > { %10539 = vmatmul.mubr.msk.bf16.gmra.mrb[4].mxu0 %vm224_vm0, %v843_v29  ;;  %239 = vst [vmem:[#allocation2 + $0x20] sm:$0x8] %v238_v47  ;;  %v241_v51 = vsel %vm12169_vm6, 0, %v240_v44  ;;  %v12193_v52 = vld [vmem:[#allocation2 + $0x88] sm:$0xf]  ;;  %v244_v54 = vsel %vm12169_vm6, 0, %v243_v48 }
  0x37   : > { %10542 = vmatprep.mubr.msk.bf16.mxu0 %vm224_vm0, %v846_v30  ;;  %10571 = vmatpush3.bf16.msra.mxu0 %v11806_v28  ;;  %v12195_v53 = vld [vmem:[#allocation2 + $0x80] sm:$0xf0]  ;;  %242 = vst [vmem:[#allocation2 + $0x30] sm:$0x8] %v241_v51  ;;  %v246_v55 = vld [vmem:[#allocation2 + $0x50] sm:$0x8] }
  0x38   : > { %10572 = vmatprep.subr.bf16.mxu0 %v11807_v10  ;;  %v853_v56 = vrot.slane %v12188_v50, 4  ;;  %v854_v57 = vrot.slane %v12183_v46, 4  ;;  %245 = vst [vmem:[#allocation2 + $0x40] sm:$0x8] %v244_v54  ;;  %v249_v58 = vld [vmem:[#allocation2 + $0x60] sm:$0x8] }
  0x39   : > { %v856_v59 = vrot.slane %v12195_v53, 4  ;;  %v857_v60 = vrot.slane %v12193_v52, 4  ;;  %v247_v61 = vsel %vm12169_vm6, 0, %v246_v55  ;;  %v252_v62 = vld [vmem:[#allocation2 + $0x70] sm:$0x8]  ;;  %v250_v63 = vsel %vm12169_vm6, 0, %v249_v58 }
  0x3a   : > { %248 = vst [vmem:[#allocation2 + $0x50] sm:$0x8] %v247_v61  ;;  %251 = vst [vmem:[#allocation2 + $0x60] sm:$0x8] %v250_v63  ;;  %v253_v0 = vsel %vm12169_vm6, 0, %v252_v62  ;;  %v855_v1 = vsel %vm831_vm1, %v853_v56, %v854_v57  ;;  %v512_v58 = vshrl.u32 %v12046_v5, 16 }
  0x3b   : > { %10573 = vmatpush3.bf16.msra.mxu0 %v11807_v10  ;;  %254 = vst [vmem:[#allocation2 + $0x70] sm:$0x8] %v253_v0  ;;  %v858_v2 = vsel %vm831_vm1, %v856_v59, %v857_v60  ;;  %v12213_v3 = vld [vmem:[#allocation2 + $0x98] sm:$0xf]  ;;  %v12215_v4 = vld [vmem:[#allocation2 + $0x90] sm:$0xf0] }
  0x3c   : > { %10606 = vmatprep.subr.bf16.mxu0 %v12178_v41  ;;  %v12217_v8 = vld [vmem:[#allocation2 + $0xa8] sm:$0xf]  ;;  %v12219_v9 = vld [vmem:[#allocation2 + $0xa0] sm:$0xf0]  ;;  %v859_v11 = vrot.slane %v12215_v4, 4  ;;  %v860_v12 = vrot.slane %v12213_v3, 4 }
  0x3d   : > { %v862_v13 = vrot.slane %v12219_v9, 4  ;;  %v863_v16 = vrot.slane %v12217_v8, 4  ;;  %v255_v20 = vld [vmem:[#allocation2 + $0x80] sm:$0x8]  ;;  %v12229_v24 = vld [vmem:[#allocation2 + $0xb8] sm:$0xf] }
  0x3e   : > { %10543 = vmatmul.mubr.msk.bf16.gmra.mrb[8].mxu0 %vm224_vm0, %v849_v45  ;;  %v861_v17 = vsel %vm831_vm1, %v859_v11, %v860_v12  ;;  %v12231_v25 = vld [vmem:[#allocation2 + $0xb0] sm:$0xf0]  ;;  %v787_v26 = vld [vmem:[#allocation2 + $0xc0] sm:$0xf0]  ;;  %v12233_v27 = vld [vmem:[#allocation2 + $0xc8] sm:$0xf] }
  0x3f   : > { %10546 = vmatprep.mubr.msk.bf16.mxu0 %vm224_vm0, %v852_v49  ;;  %v864_v23 = vsel %vm831_vm1, %v862_v13, %v863_v16  ;;  %v258_v28 = vld [vmem:[#allocation2 + $0x90] sm:$0x8]  ;;  %v256_v29 = vsel %vm12169_vm6, 0, %v255_v20  ;;  %v865_v10 = vrot.slane %v12231_v25, 4  ;;  %v866_v30 = vrot.slane %v12229_v24, 4 }
  0x40   : > { %v868_v35 = vrot.slane %v787_v26, 4  ;;  %257 = vst [vmem:[#allocation2 + $0x80] sm:$0x8] %v256_v29  ;;  %v261_v36 = vld [vmem:[#allocation2 + $0xa0] sm:$0x8]  ;;  %v869_v38 = vrot.slane %v12233_v27, 4 }
  0x41   : > { %v259_v39 = vsel %vm12169_vm6, 0, %v258_v28  ;;  %v264_v40 = vld [vmem:[#allocation2 + $0xb0] sm:$0x8]  ;;  %v267_v42 = vld [vmem:[#allocation2 + $0xc0] sm:$0x8]  ;;  %v262_v43 = vsel %vm12169_vm6, 0, %v261_v36  ;;  %v867_v44 = vsel %vm831_vm1, %v865_v10, %v866_v30 }
  0x42   : > { %260 = vst [vmem:[#allocation2 + $0x90] sm:$0x8] %v259_v39  ;;  %263 = vst [vmem:[#allocation2 + $0xa0] sm:$0x8] %v262_v43  ;;  %v265_v45 = vsel %vm12169_vm6, 0, %v264_v40  ;;  %v870_v48 = vsel %vm831_vm1, %v868_v35, %v869_v38  ;;  %v268_v54 = vsel %vm12169_vm6, 0, %v267_v42 }
  0x43   : > { %v270_v47 = vld [vmem:[#allocation2 + $0xd0] sm:$0x8]  ;;  %v12250_v49 = vld [vmem:[#allocation2 + $0xd8] sm:$0xf]  ;;  %v788_v51 = vld [vmem:[#allocation2 + $0xd0] sm:$0xf0] }
  0x44   : > { %266 = vst [vmem:[#allocation2 + $0xb0] sm:$0x8] %v265_v45  ;;  %v12254_v55 = vld [vmem:[#allocation2 + $0xe8] sm:$0xf]  ;;  %v789_v56 = vld [vmem:[#allocation2 + $0xe0] sm:$0xf0] }
  0x45   : > { %v463_v57 = vld [vmem:[#allocation2] sm:$0xf8]  ;;  %269 = vst [vmem:[#allocation2 + $0xc0] sm:$0x8] %v268_v54  ;;  %v515_v59 = vshll.u32 %v12046_v5, 16  ;;  %v271_v60 = vsel %vm12169_vm6, 0, %v270_v47 }
  0x46   : > { %10547 = vmatmul.mubr.msk.bf16.gmra.mrb[12].mxu0 %vm224_vm0, %v855_v1  ;;  %v871_v61 = vrot.slane %v788_v51, 4  ;;  %v872_v62 = vrot.slane %v12250_v49, 4  ;;  %272 = vst [vmem:[#allocation2 + $0xd0] sm:$0x8] %v271_v60  ;;  %v273_v63 = vld [vmem:[#allocation2 + $0xe0] sm:$0x8] }
  0x47   : > { %10550 = vmatprep.mubr.msk.bf16.mxu0 %vm224_vm0, %v858_v2  ;;  %v874_v0 = vrot.slane %v789_v56, 4  ;;  %v875_v1 = vrot.slane %v12254_v55, 4  ;;  %v504_v2 = vshrl.u32 %v463_v57, 16  ;;  %v507_v11 = vshll.u32 %v463_v57, 16  ;;  %v12267_v13 = vld [vmem:[#allocation2 + $0xf8] sm:$0xf] }
  0x48   : > { %v274_v5 = vsel %vm12169_vm6, 0, %v273_v63  ;;  %v873_v12 = vsel %vm831_vm1, %v871_v61, %v872_v62  ;;  %v790_v16 = vld [vmem:[#allocation2 + $0xf0] sm:$0xf0]  ;;  %v517_v28 = vrot.slane %v515_v59, 4  ;;  %v467_v10 = vld [vmem:[#allocation2 + $0x20] sm:$0xf8] }
  0x49   : > { %275 = vst [vmem:[#allocation2 + $0xe0] sm:$0x8] %v274_v5  ;;  %v876_v20 = vsel %vm831_vm1, %v874_v0, %v875_v1  ;;  %v509_v26 = vrot.slane %v507_v11, 4  ;;  %v465_v29 = vld [vmem:[#allocation2 + $0x10] sm:$0xf8]  ;;  %v877_v30 = vrot.slane %v790_v16, 4 }
  0x4a   : > { %v878_v35 = vrot.slane %v12267_v13, 4  ;;  %v529_v36 = vshrl.u32 %v12107_v6, 16  ;;  %v532_v38 = vshll.u32 %v12107_v6, 16  ;;  %v276_v39 = vld [vmem:[#allocation2 + $0xf0] sm:$0x8]  ;;  %v521_v40 = vshrl.u32 %v465_v29, 16 }
  0x4b   : > { %v524_v42 = vshll.u32 %v465_v29, 16  ;;  %v546_v43 = vshrl.u32 %v12120_v14, 16  ;;  %v541_v51 = vshll.u32 %v467_v10, 16  ;;  %v277_v54 = vsel %vm12169_vm6, 0, %v276_v39  ;;  %v469_v0 = vld [vmem:[#allocation2 + $0x30] sm:$0xf8] }
  0x4c   : > { %v879_v6 = vsel %vm831_vm1, %v877_v30, %v878_v35  ;;  %v531_v56 = vrot.slane %v529_v36, 3  ;;  %v534_v57 = vrot.slane %v532_v38, 4  ;;  %278 = vst [vmem:[#allocation2 + $0xf0] sm:$0x8] %v277_v54  ;;  %v563_v11 = vshrl.u32 %v12128_v18, 16 }
  0x4d   : > { %v526_v59 = vrot.slane %v524_v42, 4  ;;  %v548_v60 = vrot.slane %v546_v43, 3  ;;  %v543_v63 = vrot.slane %v541_v51, 4  ;;  %v566_v5 = vshll.u32 %v12128_v18, 16  ;;  %v291_v38 = vld [vmem:[#allocation2 + $0x38] sm:$0x10] }
  0x4e   : > { %10551 = vmatmul.mubr.msk.bf16.gmra.mrb[16].mxu0 %vm224_vm0, %v861_v17  ;;  %v514_v17 = vrot.slane %v512_v58, 3  ;;  %v523_v58 = vrot.slane %v521_v40, 3  ;;  %v535_v16 = vor.u32 %v534_v57, %v531_v56  ;;  %v558_v29 = vshll.u32 %v469_v0, 16  ;;  %v11809_v51 = vld [vmem:[%s14249_s1 + $0x48] sm:$0xff]  }
  0x4f   : > { %10554 = vmatprep.mubr.msk.bf16.mxu0 %vm224_vm0, %v864_v23  ;;  %v506_v23 = vrot.slane %v504_v2, 3  ;;  %v285_v2 = vld [vmem:[#allocation2 + $0x18] sm:$0x10]  ;;  %v565_v40 = vrot.slane %v563_v11, 3  ;;  %v292_v54 = vsel %vm12282_vm9, 0, %v291_v38 }
  0x50   : > { %v518_v47 = vor.u32 %v517_v28, %v514_v17  ;;  %v580_v17 = vshrl.u32 %v12137_v21, 16  ;;  %v555_v28 = vshrl.u32 %v469_v0, 16  ;;  %293 = vst [vmem:[#allocation2 + $0x38] sm:$0x10] %v292_v54  ;;  %v614_v0 = vshrl.u32 %v12161_v33, 16 }
  0x51   : > { %v510_v45 = vor.u32 %v509_v26, %v506_v23  ;;  %v288_v23 = vld [vmem:[#allocation2 + $0x28] sm:$0x10]  ;;  %v527_v26 = vor.u32 %v526_v59, %v523_v58  ;;  %v473_v59 = vld [vmem:[#allocation2 + $0x50] sm:$0xf8] }
  0x52   : > { %v289_v39 = vsel %vm12282_vm9, 0, %v288_v23  ;;  %v582_v42 = vrot.slane %v580_v17, 3 }
  0x53   : > { %290 = vst [vmem:[#allocation2 + $0x28] sm:$0x10] %v289_v39 }
  0x56   : > { %10555 = vmatmul.mubr.msk.bf16.gmra.mrb[20].mxu0 %vm224_vm0, %v867_v44  ;;  %v549_v44 = vshll.u32 %v12120_v14, 16  ;;  %v519_v14 = vsel %vm283_vm7, %v510_v45, %v518_v47  ;;  %v536_v45 = vsel %vm283_vm7, %v527_v26, %v535_v16  ;;  %v557_v47 = vrot.slane %v555_v28, 3  ;;  %v11810_v26 = vld [vmem:[%s14249_s1 + $0x50] sm:$0xff]   ;;  %v300_v28 = vld [vmem:[#allocation2 + $0x68] sm:$0x10] }
  0x57   : > { %10558 = vmatprep.mubr.msk.bf16.mxu0 %vm224_vm0, %v870_v48  ;;  %v538_v48 = vshrl.u32 %v467_v10, 16  ;;  %v286_v10 = vsel %vm12282_vm9, 0, %v285_v2  ;;  %v617_v16 = vshll.u32 %v12161_v33, 16  ;;  %v301_v38 = vsel %vm12282_vm9, 0, %v300_v28 }
  0x58   : > { %v551_v61 = vrot.slane %v549_v44, 4  ;;  %287 = vst [vmem:[#allocation2 + $0x18] sm:$0x10] %v286_v10  ;;  %v294_v44 = vld [vmem:[#allocation2 + $0x48] sm:$0x10]  ;;  %v616_v10 = vrot.slane %v614_v0, 3 }
  0x59   : > { %v540_v62 = vrot.slane %v538_v48, 3  ;;  %v560_v48 = vrot.slane %v558_v29, 4  ;;  %302 = vst [vmem:[#allocation2 + $0x68] sm:$0x10] %v301_v38 }
  0x5a   : > { %v552_v35 = vor.u32 %v551_v61, %v548_v60  ;;  %v597_v60 = vshrl.u32 %v12157_v31, 16  ;;  %v475_v61 = vld [vmem:[#allocation2 + $0x60] sm:$0xf8] }
  0x5b   : > { %v544_v30 = vor.u32 %v543_v63, %v540_v62  ;;  %v600_v63 = vshll.u32 %v12157_v31, 16  ;;  %v561_v11 = vor.u32 %v560_v48, %v557_v47  ;;  %v606_v31 = vshrl.u32 %v475_v61, 16  ;;  %v479_v48 = vld [vmem:[#allocation2 + $0x80] sm:$0xf8] }
  0x5c   : > { %v609_v23 = vshll.u32 %v475_v61, 16  ;;  %v599_v29 = vrot.slane %v597_v60, 3  ;;  %v634_v47 = vshll.u32 %v12183_v46, 16  ;;  %v640_v61 = vshrl.u32 %v479_v48, 16 }
  0x5d   : > { %v553_v56 = vsel %vm283_vm7, %v544_v30, %v552_v35  ;;  %v477_v30 = vld [vmem:[#allocation2 + $0x70] sm:$0xf8]  ;;  %v303_v35 = vld [vmem:[#allocation2 + $0x78] sm:$0x10] }
  0x5e   : > { %10559 = vmatmul.mubr.msk.bf16.gmra.mrb[24].mxu0 %vm224_vm0, %v873_v12  ;;  %v471_v12 = vld [vmem:[#allocation2 + $0x40] sm:$0xf8]  ;;  %v626_v54 = vshll.u32 %v477_v30, 16 }
  0x5f   : > { %10562 = vmatprep.mubr.msk.bf16.mxu0 %vm224_vm0, %v876_v20  ;;  %v583_v20 = vshll.u32 %v12137_v21, 16  ;;  %v572_v18 = vshrl.u32 %v471_v12, 16  ;;  %v575_v36 = vshll.u32 %v471_v12, 16  ;;  %v568_v21 = vrot.slane %v566_v5, 4 }
  0x60   : > { %v589_v5 = vshrl.u32 %v473_v59, 16  ;;  %v592_v12 = vshll.u32 %v473_v59, 16  ;;  %v306_v59 = vld [vmem:[#allocation2 + $0x88] sm:$0x10] }
  0x61   : > { %v585_v43 = vrot.slane %v583_v20, 4  ;;  %v574_v57 = vrot.slane %v572_v18, 3  ;;  %v577_v58 = vrot.slane %v575_v36, 4  ;;  %v569_v62 = vor.u32 %v568_v21, %v565_v40 }
  0x62   : > { %v591_v36 = vrot.slane %v589_v5, 3  ;;  %v594_v33 = vrot.slane %v592_v12, 4  ;;  %v608_v40 = vrot.slane %v606_v31, 3  ;;  %v611_v21 = vrot.slane %v609_v23, 4 }
  0x63   : > { %v578_v17 = vor.u32 %v577_v58, %v574_v57  ;;  %v586_v20 = vor.u32 %v585_v43, %v582_v42  ;;  %v570_v18 = vsel %vm283_vm7, %v561_v11, %v569_v62  ;;  %v619_v42 = vrot.slane %v617_v16, 4  ;;  %v11811_v43 = vld [vmem:[%s14249_s1 + $0x58] sm:$0xff]   ;;  %v12335_v62 = vld [vmem:[%s14249_s1 + $0x60] sm:$0xff]  }
  0x64   : > { %v648_v57 = vshrl.u32 %v12193_v52, 16  ;;  %v651_v58 = vshll.u32 %v12193_v52, 16  ;;  %v612_v60 = vor.u32 %v611_v21, %v608_v40  ;;  %v628_v11 = vrot.slane %v626_v54, 4  ;;  %v309_v52 = vld [vmem:[#allocation2 + $0x98] sm:$0x10] }
  0x65   : > { %v587_v39 = vsel %vm283_vm7, %v578_v17, %v586_v20  ;;  %v307_v5 = vsel %vm12282_vm9, 0, %v306_v59  ;;  %v481_v20 = vld [vmem:[#allocation2 + $0x90] sm:$0xf8]  ;;  %v665_v31 = vshrl.u32 %v12213_v3, 16  ;;  %v315_v21 = vld [vmem:[#allocation2 + $0xb8] sm:$0x10] }
  0x66   : > { %10563 = vmatmul.mubr.msk.bf16.gmra.mrb[28].mxu0 %vm224_vm0, %v879_v6  ;;  %v297_v6 = vld [vmem:[#allocation2 + $0x58] sm:$0x10]  ;;  %v650_v16 = vrot.slane %v648_v57, 3  ;;  %v653_v17 = vrot.slane %v651_v58, 4  ;;  %308 = vst [vmem:[#allocation2 + $0x88] sm:$0x10] %v307_v5 }
  0x67   : > { %10574 = vmatprep.mubr.msk.bf16.mxu0 %vm224_vm0, %v519_v14  ;;  %v295_v14 = vsel %vm12282_vm9, 0, %v294_v44  ;;  %v298_v2 = vsel %vm12282_vm9, 0, %v297_v6  ;;  %v623_v44 = vshrl.u32 %v477_v30, 16  ;;  %v595_v6 = vor.u32 %v594_v33, %v591_v36  ;;  %v487_v59 = vld [vmem:[#allocation2 + $0xc0] sm:$0xf8] }
  0x68   : > { %296 = vst [vmem:[#allocation2 + $0x48] sm:$0x10] %v295_v14  ;;  %299 = vst [vmem:[#allocation2 + $0x58] sm:$0x10] %v298_v2  ;;  %v643_v14 = vshll.u32 %v479_v48, 16  ;;  %v636_v2 = vrot.slane %v634_v47, 4 }
  0x69   : > { %v310_v30 = vsel %vm12282_vm9, 0, %v309_v52  ;;  %v660_v36 = vshll.u32 %v481_v20, 16  ;;  %v685_v33 = vshll.u32 %v12217_v8, 16  ;;  %v667_v40 = vrot.slane %v665_v31, 3 }
  0x6a   : > { %v645_v28 = vrot.slane %v643_v14, 4  ;;  %311 = vst [vmem:[#allocation2 + $0x98] sm:$0x10] %v310_v30  ;;  %v316_v57 = vsel %vm12282_vm9, 0, %v315_v21  ;;  %v716_v5 = vshrl.u32 %v12233_v27, 16  ;;  %v719_v52 = vshll.u32 %v12233_v27, 16 }
  0x6b   : > { %317 = vst [vmem:[#allocation2 + $0xb8] sm:$0x10] %v316_v57  ;;  %v733_v21 = vshrl.u32 %v12250_v49, 16 }
  0x6c   : > { %v718_v30 = vrot.slane %v716_v5, 3  ;;  %v493_v5 = vld [vmem:[#allocation2 + $0xf0] sm:$0xf8] }
  0x6e   : > { %10575 = vmatmul.mubr.msk.bf16.vlgmr.msra.gmra.mrb[0].mxu0 %vm224_vm0, %v536_v45  ;;  %v631_v45 = vshrl.u32 %v12183_v46, 16  ;;  %v620_v46 = vor.u32 %v619_v42, %v616_v10  ;;  %v682_v10 = vshrl.u32 %v12217_v8, 16  ;;  %v662_v8 = vrot.slane %v660_v36, 4 }
  0x6f   : > { %10607 = vmatpush3.bf16.msra.mxu0 %v12178_v41  ;;  %10578 = vmatprep.mubr.msk.bf16.mxu0 %vm224_vm0, %v553_v56  ;;  %v602_v41 = vrot.slane %v600_v63, 4  ;;  %v625_v63 = vrot.slane %v623_v44, 3 }
  0x70   : > { %10608 = vmatprep.subr.bf16.mxu0 %v11809_v51  ;;  %v633_v0 = vrot.slane %v631_v45, 3  ;;  %v621_v23 = vsel %vm283_vm7, %v612_v60, %v620_v46  ;;  %v684_v48 = vrot.slane %v682_v10, 3 }
  0x71   : > { %v603_v56 = vor.u32 %v602_v41, %v599_v29  ;;  %v668_v29 = vshll.u32 %v12213_v3, 16  ;;  %v483_v41 = vld [vmem:[#allocation2 + $0xa0] sm:$0xf8]  ;;  %v629_v38 = vor.u32 %v628_v11, %v625_v63  ;;  %v699_v63 = vshrl.u32 %v12229_v24, 16 }
  0x72   : > { %v637_v3 = vor.u32 %v636_v2, %v633_v0  ;;  %v677_v44 = vshll.u32 %v483_v41, 16  ;;  %v321_v0 = vld [vmem:[#allocation2 + $0xd8] sm:$0x10]  ;;  %v702_v11 = vshll.u32 %v12229_v24, 16 }
  0x73   : > { %10609 = vmatpush3.bf16.msra.mxu0 %v11809_v51  ;;  %v304_v51 = vsel %vm12282_vm9, 0, %v303_v35  ;;  %v604_v12 = vsel %vm283_vm7, %v595_v6, %v603_v56  ;;  %v312_v35 = vld [vmem:[#allocation2 + $0xa8] sm:$0x10]  ;;  %v670_v47 = vrot.slane %v668_v29, 4  ;;  %v687_v6 = vrot.slane %v685_v33, 4 }
  0x74   : > { %10610 = vmatprep.subr.bf16.mxu0 %v11810_v26  ;;  %305 = vst [vmem:[#allocation2 + $0x78] sm:$0x10] %v304_v51  ;;  %v313_v45 = vsel %vm12282_vm9, 0, %v312_v35  ;;  %v318_v51 = vld [vmem:[#allocation2 + $0xc8] sm:$0x10]  ;;  %v638_v58 = vsel %vm283_vm7, %v629_v38, %v637_v3  ;;  %v701_v29 = vrot.slane %v699_v63, 3 }
  0x75   : > { %314 = vst [vmem:[#allocation2 + $0xa8] sm:$0x10] %v313_v45  ;;  %v485_v56 = vld [vmem:[#allocation2 + $0xb0] sm:$0xf8]  ;;  %v319_v14 = vsel %vm12282_vm9, 0, %v318_v51  ;;  %v704_v10 = vrot.slane %v702_v11, 4 }
  0x76   : > { %10579 = vmatmul.mubr.msk.bf16.gmra.mrb[4].mxu0 %vm224_vm0, %v570_v18  ;;  %v657_v18 = vshrl.u32 %v481_v20, 16  ;;  %320 = vst [vmem:[#allocation2 + $0xc8] sm:$0x10] %v319_v14  ;;  %v691_v2 = vshrl.u32 %v485_v56, 16  ;;  %v708_v20 = vshrl.u32 %v487_v59, 16  ;;  %v721_v35 = vrot.slane %v719_v52, 4 }
  0x77   : > { %10582 = vmatprep.mubr.msk.bf16.mxu0 %vm224_vm0, %v587_v39  ;;  %10611 = vmatpush3.bf16.msra.mxu0 %v11810_v26  ;;  %v642_v26 = vrot.slane %v640_v61, 3  ;;  %v654_v39 = vor.u32 %v653_v17, %v650_v16  ;;  %v679_v61 = vrot.slane %v677_v44, 4  ;;  %v671_v16 = vor.u32 %v670_v47, %v667_v40  ;;  %v489_v33 = vld [vmem:[#allocation2 + $0xd0] sm:$0xf8]  ;;  %v327_v40 = vld [vmem:[#allocation2 + $0xf8] sm:$0x10] }
  0x78   : > { %10612 = vmatprep.subr.bf16.mxu0 %v11811_v43  ;;  %v659_v54 = vrot.slane %v657_v18, 3  ;;  %v694_v17 = vshll.u32 %v485_v56, 16  ;;  %v693_v24 = vrot.slane %v691_v2, 3  ;;  %v710_v36 = vrot.slane %v708_v20, 3  ;;  %v1346_v52 = vld [vmem:[#allocation2 + $0x8] sm:$0x1f] }
  0x79   : > { %v646_v42 = vor.u32 %v645_v28, %v642_v26  ;;  %v711_v26 = vshll.u32 %v487_v59, 16  ;;  %v322_v28 = vsel %vm12282_vm9, 0, %v321_v0  ;;  %v722_v44 = vor.u32 %v721_v35, %v718_v30 }
  0x7a   : > { %323 = vst [vmem:[#allocation2 + $0xd8] sm:$0x10] %v322_v28  ;;  %v696_v18 = vrot.slane %v694_v17, 4  ;;  %v736_v45 = vshll.u32 %v12250_v49, 16  ;;  %v750_v47 = vshrl.u32 %v12254_v55, 16  ;;  %v725_v51 = vshrl.u32 %v489_v33, 16 }
  0x7b   : > { %10613 = vmatpush3.bf16.msra.mxu0 %v11811_v43  ;;  %v674_v43 = vshrl.u32 %v483_v41, 16  ;;  %v655_v60 = vsel %vm283_vm7, %v646_v42, %v654_v39  ;;  %v324_v41 = vld [vmem:[#allocation2 + $0xe8] sm:$0x10]  ;;  %v713_v3 = vrot.slane %v711_v26, 4  ;;  %v491_v42 = vld [vmem:[#allocation2 + $0xe0] sm:$0xf8] }
  0x7c   : > { %10646 = vmatprep.subr.bf16.mxu0 %v12335_v62  ;;  %v325_v39 = vsel %vm12282_vm9, 0, %v324_v41  ;;  %v742_v56 = vshrl.u32 %v491_v42, 16  ;;  %v745_v57 = vshll.u32 %v491_v42, 16  ;;  %v735_v59 = vrot.slane %v733_v21, 3  ;;  %v1348_v42 = vld [vmem:[#allocation2 + $0x28] sm:$0x1f] }
  0x7d   : > { %v676_v46 = vrot.slane %v674_v43, 3  ;;  %326 = vst [vmem:[#allocation2 + $0xe8] sm:$0x10] %v325_v39  ;;  %v705_v43 = vor.u32 %v704_v10, %v701_v29  ;;  %v752_v14 = vrot.slane %v750_v47, 3  ;;  %v770_v20 = vshll.u32 %v12267_v13, 16 }
  0x7e   : > { %10583 = vmatmul.mubr.msk.bf16.gmra.mrb[8].mxu0 %vm224_vm0, %v604_v12  ;;  %v663_v12 = vor.u32 %v662_v8, %v659_v54  ;;  %v728_v54 = vshll.u32 %v489_v33, 16  ;;  %v328_v8 = vsel %vm12282_vm9, 0, %v327_v40  ;;  %v744_v0 = vrot.slane %v742_v56, 3  ;;  %v1347_v40 = vld [vmem:[#allocation2 + $0x18] sm:$0x1f] }
  0x7f   : > { %10586 = vmatprep.mubr.msk.bf16.mxu0 %vm224_vm0, %v621_v23  ;;  %v680_v31 = vor.u32 %v679_v61, %v676_v46  ;;  %v688_v23 = vor.u32 %v687_v6, %v684_v48  ;;  %v697_v48 = vor.u32 %v696_v18, %v693_v24  ;;  %v714_v6 = vor.u32 %v713_v3, %v710_v36 }
  0x80   : > { %v672_v27 = vsel %vm283_vm7, %v663_v12, %v671_v16  ;;  %329 = vst [vmem:[#allocation2 + $0xf8] sm:$0x10] %v328_v8  ;;  %v727_v46 = vrot.slane %v725_v51, 3  ;;  %v730_v61 = vrot.slane %v728_v54, 4  ;;  %v747_v2 = vrot.slane %v745_v57, 4 }
  0x81   : > { %v689_v38 = vsel %vm283_vm7, %v680_v31, %v688_v23  ;;  %v706_v49 = vsel %vm283_vm7, %v697_v48, %v705_v43  ;;  %v723_v63 = vsel %vm283_vm7, %v714_v6, %v722_v44  ;;  %v11872_v12 = vld [vmem:[#allocation2] sm:$0xf0]  ;;  %v759_v26 = vshrl.u32 %v493_v5, 16 }
  0x82   : > { %v1372_v16 = vshrl.u32 %v11872_v12, 16  ;;  %v1375_v17 = vshll.u32 %v11872_v12, 16  ;;  %v731_v31 = vor.u32 %v730_v61, %v727_v46  ;;  %v762_v28 = vshll.u32 %v493_v5, 16  ;;  %v1350_v5 = vld [vmem:[#allocation2 + $0x48] sm:$0x1f] }
  0x83   : > { %v748_v29 = vor.u32 %v747_v2, %v744_v0  ;;  %v1380_v24 = vshrl.u32 %v1346_v52, 16  ;;  %v1383_v10 = vshll.u32 %v1346_v52, 16  ;;  %v772_v35 = vrot.slane %v770_v20, 4 }
  0x84   : > { %v1377_v18 = vrot.slane %v1375_v17, 5  ;;  %v761_v33 = vrot.slane %v759_v26, 3  ;;  %v1389_v21 = vshrl.u32 %v12109_v7, 16  ;;  %v1392_v43 = vshll.u32 %v12109_v7, 16 }
  0x85   : > { %v1382_v3 = vrot.slane %v1380_v24, 4  ;;  %v1385_v39 = vrot.slane %v1383_v10, 5  ;;  %v1406_v44 = vshrl.u32 %v12122_v15, 16  ;;  %v1397_v51 = vshrl.u32 %v1347_v40, 16 }
  0x86   : > { %10587 = vmatmul.mubr.msk.bf16.gmra.mrb[12].mxu0 %vm224_vm0, %v638_v58  ;;  %v753_v58 = vshll.u32 %v12254_v55, 16  ;;  %v767_v55 = vshrl.u32 %v12267_v13, 16  ;;  %v1400_v54 = vshll.u32 %v1347_v40, 16  ;;  %v1414_v56 = vshrl.u32 %v1348_v42, 16 }
  0x87   : > { %10590 = vmatprep.mubr.msk.bf16.mxu0 %vm224_vm0, %v655_v60  ;;  %v738_v60 = vrot.slane %v736_v45, 4  ;;  %v1409_v45 = vshll.u32 %v12122_v15, 16  ;;  %v1386_v6 = vor.u32 %v1385_v39, %v1382_v3  ;;  %v1417_v57 = vshll.u32 %v1348_v42, 16  ;;  %v11813_v3 = vld [vmem:[%s14249_s1 + $0x68] sm:$0xff]  }
  0x88   : > { %v755_v11 = vrot.slane %v753_v58, 4  ;;  %v769_v30 = vrot.slane %v767_v55, 3  ;;  %v1391_v58 = vrot.slane %v1389_v21, 4  ;;  %v1423_v7 = vshrl.u32 %v12130_v19, 16 }
  0x89   : > { %v739_v23 = vor.u32 %v738_v60, %v735_v59  ;;  %v1394_v59 = vrot.slane %v1392_v43, 5  ;;  %v1408_v60 = vrot.slane %v1406_v44, 4  ;;  %v1399_v61 = vrot.slane %v1397_v51, 4 }
  0x8a   : > { %v756_v41 = vor.u32 %v755_v11, %v752_v14  ;;  %v773_v48 = vor.u32 %v772_v35, %v769_v30  ;;  %v1402_v15 = vrot.slane %v1400_v54, 5  ;;  %v1349_v14 = vld [vmem:[#allocation2 + $0x38] sm:$0x1f]  ;;  %v1416_v0 = vrot.slane %v1414_v56, 4 }
  0x8b   : > { %v740_v36 = vsel %vm283_vm7, %v731_v31, %v739_v23  ;;  %v1419_v2 = vrot.slane %v1417_v57, 5  ;;  %v1426_v11 = vshll.u32 %v12130_v19, 16  ;;  %v1440_v52 = vshrl.u32 %v12139_v22, 16 }
  0x8c   : > { %v757_v13 = vsel %vm283_vm7, %v748_v29, %v756_v41  ;;  %v1443_v12 = vshll.u32 %v12139_v22, 16  ;;  %v1434_v17 = vshll.u32 %v1349_v14, 16  ;;  %v1395_v55 = vor.u32 %v1394_v59, %v1391_v58 }
  0x8d   : > { %v1403_v20 = vor.u32 %v1402_v15, %v1399_v61  ;;  %v1425_v23 = vrot.slane %v1423_v7, 4  ;;  %v1420_v26 = vor.u32 %v1419_v2, %v1416_v0  ;;  %v1448_v29 = vshrl.u32 %v1350_v5, 16  ;;  %v11815_v0 = vld [vmem:[%s14249_s1 + $0x78] sm:$0xff]  }
  0x8e   : > { %10591 = vmatmul.mubr.msk.bf16.gmra.mrb[16].mxu0 %vm224_vm0, %v672_v27  ;;  %v1374_v27 = vrot.slane %v1372_v16, 4  ;;  %v1431_v16 = vshrl.u32 %v1349_v14, 16  ;;  %v1451_v41 = vshll.u32 %v1350_v5, 16  ;;  %v1442_v19 = vrot.slane %v1440_v52, 4 }
  0x8f   : > { %10594 = vmatprep.mubr.msk.bf16.mxu0 %vm224_vm0, %v689_v38  ;;  %v764_v38 = vrot.slane %v762_v28, 4  ;;  %v1428_v28 = vrot.slane %v1426_v11, 5  ;;  %v1445_v24 = vrot.slane %v1443_v12, 5  ;;  %v1457_v10 = vshrl.u32 %v12159_v32, 16 }
  0x90   : > { %v1378_v8 = vor.u32 %v1377_v18, %v1374_v27  ;;  %v1460_v22 = vshll.u32 %v12159_v32, 16  ;;  %v1433_v30 = vrot.slane %v1431_v16, 4  ;;  %v1436_v35 = vrot.slane %v1434_v17, 5  ;;  %v1351_v27 = vld [vmem:[#allocation2 + $0x58] sm:$0x1f] }
  0x91   : > { %v765_v47 = vor.u32 %v764_v38, %v761_v33  ;;  %v1404_v18 = vsel %vm1370_vm10, %v1395_v55, %v1403_v20  ;;  %v1450_v38 = vrot.slane %v1448_v29, 4  ;;  %v1474_v39 = vshrl.u32 %v12163_v34, 16 }
  0x92   : > { %v1465_v40 = vshrl.u32 %v1351_v27, 16  ;;  %v1468_v21 = vshll.u32 %v1351_v27, 16  ;;  %v1477_v32 = vshll.u32 %v12163_v34, 16  ;;  %v1429_v43 = vor.u32 %v1428_v28, %v1425_v23 }
  0x93   : > { %v774_v46 = vsel %vm283_vm7, %v765_v47, %v773_v48  ;;  %v1437_v44 = vor.u32 %v1436_v35, %v1433_v30  ;;  %v11814_v48 = vld [vmem:[%s14249_s1 + $0x70] sm:$0xff]   ;;  %v1446_v51 = vor.u32 %v1445_v24, %v1442_v19  ;;  %v1476_v34 = vrot.slane %v1474_v39, 4  ;;  %v12438_v19 = vld [vmem:[%s14249_s1 + $0x80] sm:$0xff]  }
  0x94   : > { %v1467_v56 = vrot.slane %v1465_v40, 4  ;;  %v1470_v57 = vrot.slane %v1468_v21, 5  ;;  %v1479_v58 = vrot.slane %v1477_v32, 5  ;;  %v1511_v7 = vshll.u32 %v12195_v53, 16  ;;  %v364_v32 = vld [vmem:[%s12044_s17 + $0xf8] sm:$0xff] }
  0x95   : > { %v1525_v5 = vshrl.u32 %v12215_v4, 16  ;;  %v1528_v23 = vshll.u32 %v12215_v4, 16  ;;  %v1559_v4 = vshrl.u32 %v12231_v25, 16  ;;  %v1562_v35 = vshll.u32 %v12231_v25, 16  ;;  %v363_v25 = vld [vmem:[%s12044_s17 + $0xf0] sm:$0xff] }
  0x96   : > { %10595 = vmatmul.mubr.msk.bf16.gmra.mrb[20].mxu0 %vm224_vm0, %v706_v49  ;;  %v1411_v49 = vrot.slane %v1409_v45, 5  ;;  %v1459_v45 = vrot.slane %v1457_v10, 4  ;;  %v1480_v11 = vor.u32 %v1479_v58, %v1476_v34  ;;  %v1513_v20 = vrot.slane %v1511_v7, 5  ;;  %v1358_v58 = vld [vmem:[#allocation2 + $0xc8] sm:$0x1f] }
  0x97   : > { %10598 = vmatprep.mubr.msk.bf16.mxu0 %vm224_vm0, %v723_v63  ;;  %v1387_v63 = vsel %vm1370_vm10, %v1378_v8, %v1386_v6  ;;  %v1462_v8 = vrot.slane %v1460_v22, 5  ;;  %v1353_v6 = vld [vmem:[#allocation2 + $0x78] sm:$0x1f]  ;;  %v12440_v24 = vrot.slane %v1525_v5, 4  ;;  %v1545_v10 = vshll.u32 %v12219_v9, 16 }
  0x98   : > { %v1412_v31 = vor.u32 %v1411_v49, %v1408_v60  ;;  %v1494_v60 = vshll.u32 %v12188_v50, 16  ;;  %v1508_v49 = vshrl.u32 %v12195_v53, 16  ;;  %v1499_v15 = vshrl.u32 %v1353_v6, 16  ;;  %v1359_v5 = vld [vmem:[#allocation2 + $0xd8] sm:$0x1f] }
  0x99   : > { %v1463_v2 = vor.u32 %v1462_v8, %v1459_v45  ;;  %v1471_v53 = vor.u32 %v1470_v57, %v1467_v56  ;;  %v1530_v40 = vrot.slane %v1528_v23, 5  ;;  %v12461_v8 = vrot.slane %v1562_v35, 5  ;;  %v12476_v35 = vld [vmem:[#allocation2 + $0x18] sm:$0xf] }
  0x9a   : > { %v1421_v33 = vsel %vm1370_vm10, %v1412_v31, %v1420_v26  ;;  %v12428_v12 = vrot.slane %v1494_v60, 5  ;;  %v12430_v16 = vrot.slane %v1508_v49, 4  ;;  %v1501_v55 = vrot.slane %v1499_v15, 4  ;;  %v1355_v31 = vld [vmem:[#allocation2 + $0x98] sm:$0x1f] }
  0x9b   : > { %v1533_v22 = vshrl.u32 %v1355_v31, 16  ;;  %v1536_v30 = vshll.u32 %v1355_v31, 16  ;;  %v1472_v27 = vsel %vm1370_vm10, %v1463_v2, %v1471_v53  ;;  %v1531_v2 = vor.u32 %v1530_v40, %v12440_v24 }
  0x9c   : > { %v1514_v39 = vor.u32 %v1513_v20, %v12430_v16  ;;  %v11875_v20 = vld [vmem:[#allocation2 + $0xe0] sm:$0xf0]  ;;  %v2542_v1 = vrot.slane %v12476_v35, 4 }
  0x9d   : > { %v1610_v31 = vshrl.u32 %v11875_v20, 16  ;;  %v1613_v23 = vshll.u32 %v11875_v20, 16 }
  0x9e   : > { %10599 = vmatmul.mubr.msk.bf16.gmra.mrb[24].mxu0 %vm224_vm0, %v740_v36  ;;  %v1352_v36 = vld [vmem:[#allocation2 + $0x68] sm:$0x1f] }
  0x9f   : > { %10602 = vmatprep.mubr.msk.bf16.mxu0 %vm224_vm0, %v757_v13  ;;  %v1453_v13 = vrot.slane %v1451_v41, 5  ;;  %v1482_v42 = vshrl.u32 %v1352_v36, 16  ;;  %v1485_v47 = vshll.u32 %v1352_v36, 16  ;;  %v1542_v41 = vshrl.u32 %v12219_v9, 16  ;;  %v1356_v9 = vld [vmem:[#allocation2 + $0xa8] sm:$0x1f] }
  0xa0   : > { %v1550_v56 = vshrl.u32 %v1356_v9, 16  ;;  %v1553_v57 = vshll.u32 %v1356_v9, 16  ;;  %v11876_v9 = vld [vmem:[#allocation2 + $0xf0] sm:$0xf0] }
  0xa1   : > { %v1454_v54 = vor.u32 %v1453_v13, %v1450_v38  ;;  %v1484_v59 = vrot.slane %v1482_v42, 4  ;;  %v1487_v61 = vrot.slane %v1485_v47, 5  ;;  %v12451_v21 = vrot.slane %v1542_v41, 4 }
  0xa2   : > { %v1547_v42 = vrot.slane %v1545_v10, 5  ;;  %v1604_v41 = vshll.u32 %v1359_v5, 16 }
  0xa3   : > { %v1455_v14 = vsel %vm1370_vm10, %v1446_v51, %v1454_v54  ;;  %v1488_v17 = vor.u32 %v1487_v61, %v1484_v59  ;;  %v1538_v51 = vrot.slane %v1536_v30, 5  ;;  %v1357_v54 = vld [vmem:[#allocation2 + $0xb8] sm:$0x1f]  ;;  %v11874_v59 = vld [vmem:[#allocation2 + $0xd0] sm:$0xf0] }
  0xa4   : > { %v1593_v60 = vshrl.u32 %v11874_v59, 16  ;;  %v1596_v49 = vshll.u32 %v11874_v59, 16  ;;  %v1567_v7 = vshrl.u32 %v1357_v54, 16  ;;  %v1570_v37 = vshll.u32 %v1357_v54, 16  ;;  %v1908_v30 = vld [vmem:[#allocation2 + $0x10] sm:$0xf8] }
  0xa5   : > { %v1489_v36 = vsel %vm1370_vm10, %v1480_v11, %v1488_v17  ;;  %v1552_v11 = vrot.slane %v1550_v56, 4  ;;  %v1548_v24 = vor.u32 %v1547_v42, %v12451_v21  ;;  %v1949_v42 = vshrl.u32 %v1908_v30, 16 }
  0xa6   : > { %10603 = vmatmul.mubr.msk.bf16.gmra.mrb[28].mxu0 %vm224_vm0, %v774_v46  ;;  %v1438_v46 = vsel %vm1370_vm10, %v1429_v43, %v1437_v44  ;;  %v12456_v43 = vrot.slane %v1559_v4, 4  ;;  %v11873_v44 = vld [vmem:[#allocation2 + $0xc0] sm:$0xf0]  ;;  %v12470_v16 = vrot.slane %v1596_v49, 5  ;;  %v1569_v17 = vrot.slane %v1567_v7, 4 }
  0xa7   : > { %10614 = vmatprep.mubr.msk.bf16.mxu0 %vm224_vm0, %v1387_v63  ;;  %v1502_v63 = vshll.u32 %v1353_v6, 16  ;;  %v1576_v45 = vshrl.u32 %v11873_v44, 16  ;;  %v1579_v34 = vshll.u32 %v11873_v44, 16  ;;  %v1952_v44 = vshll.u32 %v1908_v30, 16 }
  0xa8   : > { %v1565_v40 = vor.u32 %v12461_v8, %v12456_v43  ;;  %v1951_v59 = vrot.slane %v1949_v42, 3 }
  0xa9   : > { %v1504_v26 = vrot.slane %v1502_v63, 5  ;;  %v1587_v63 = vshll.u32 %v1358_v58, 16  ;;  %v1954_v49 = vrot.slane %v1952_v44, 4 }
  0xae   : > { %10615 = vmatmul.mubr.msk.bf16.vlgmr.msra.gmra.mrb[0].mxu0 %vm224_vm0, %v1404_v18  ;;  %v279_v18 = vld [vmem:[#allocation2 + $0x100] sm:$0x8] }
  0xaf   : > { %10647 = vmatpush3.bf16.msra.mxu0 %v12335_v62  ;;  %10618 = vmatprep.mubr.msk.bf16.mxu0 %vm224_vm0, %v1421_v33  ;;  %v1491_v62 = vshrl.u32 %v12188_v50, 16  ;;  %v1354_v50 = vld [vmem:[#allocation2 + $0x88] sm:$0x1f]  ;;  %v280_v47 = vsel %vm12169_vm6, 0, %v279_v18  ;;  %v1615_v18 = vrot.slane %v1613_v23, 5  ;;  %v1955_v23 = vor.u32 %v1954_v49, %v1951_v59 }
  0xb0   : > { %10648 = vmatprep.subr.bf16.mxu0 %v11813_v3  ;;  %v1516_v28 = vshrl.u32 %v1354_v50, 16  ;;  %v1519_v29 = vshll.u32 %v1354_v50, 16  ;;  %281 = vst [vmem:[#allocation2 + $0x100] sm:$0x8] %v280_v47  ;;  %v1555_v50 = vrot.slane %v1553_v57, 5 }
  0xb1   : > { %v12426_v52 = vrot.slane %v1491_v62, 4  ;;  %v380_v62 = vpack.c.bf16 %v364_v32, %v363_v25  ;;  %v1606_v32 = vrot.slane %v1604_v41, 5 }
  0xb2   : > { %v1518_v38 = vrot.slane %v1516_v28, 4  ;;  %v1521_v13 = vrot.slane %v1519_v29, 5  ;;  %v1589_v28 = vrot.slane %v1587_v63, 5  ;;  %v1601_v29 = vshrl.u32 %v1359_v5, 16  ;;  %v1910_v63 = vld [vmem:[#allocation2 + $0x20] sm:$0xf8] }
  0xb3   : > { %10649 = vmatpush3.bf16.msra.mxu0 %v11813_v3  ;;  %v1497_v33 = vor.u32 %v12428_v12, %v12426_v52  ;;  %v1505_v3 = vor.u32 %v1504_v26, %v1501_v55  ;;  %v412_v61 = vrot.slane %v380_v62, 4  ;;  %v1581_v52 = vrot.slane %v1579_v34, 5 }
  0xb4   : > { %10650 = vmatprep.subr.bf16.mxu0 %v11814_v48  ;;  %v1522_v6 = vor.u32 %v1521_v13, %v1518_v38  ;;  %v12468_v12 = vrot.slane %v1593_v60, 4  ;;  %v1572_v55 = vrot.slane %v1570_v37, 5  ;;  %v1556_v10 = vor.u32 %v1555_v50, %v1552_v11  ;;  %v1361_v13 = vld [vmem:[#allocation2 + $0xf8] sm:$0x1f] }
  0xb5   : > { %v1506_v15 = vsel %vm1370_vm10, %v1497_v33, %v1505_v3  ;;  %461 = vst.msk [vmem:[#allocation2 + $0x100] sm:$0xf0] %vm429_vm2, %v412_v61  ;;  %v1627_v3 = vshrl.u32 %v11876_v9, 16  ;;  %v1603_v25 = vrot.slane %v1601_v29, 4  ;;  %v1638_v56 = vshll.u32 %v1361_v13, 16 }
  0xb6   : > { %10619 = vmatmul.mubr.msk.bf16.gmra.mrb[4].mxu0 %vm224_vm0, %v1438_v46  ;;  %v1578_v46 = vrot.slane %v1576_v45, 4  ;;  %462 = vst.msk [vmem:[#allocation2 + $0x108] sm:$0xf] %vm431_vm3, %v412_v61  ;;  %v1557_v38 = vsel %vm1370_vm10, %v1548_v24, %v1556_v10  ;;  %v1573_v21 = vor.u32 %v1572_v55, %v1569_v17  ;;  %v1599_v57 = vor.u32 %v12470_v16, %v12468_v12  ;;  %v12494_v50 = vld [vmem:[#allocation2 + $0x38] sm:$0xf] }
  0xb7   : > { %10622 = vmatprep.mubr.msk.bf16.mxu0 %vm224_vm0, %v1455_v14  ;;  %10651 = vmatpush3.bf16.msra.mxu0 %v11814_v48  ;;  %v1535_v48 = vrot.slane %v1533_v22, 4  ;;  %v1584_v14 = vshrl.u32 %v1358_v58, 16  ;;  %v1360_v22 = vld [vmem:[#allocation2 + $0xe8] sm:$0x1f]  ;;  %v1629_v58 = vrot.slane %v1627_v3, 4  ;;  %v1607_v60 = vor.u32 %v1606_v32, %v1603_v25 }
  0xb8   : > { %10652 = vmatprep.subr.bf16.mxu0 %v11815_v0  ;;  %v1621_v33 = vshll.u32 %v1360_v22, 16  ;;  %v1582_v54 = vor.u32 %v1581_v52, %v1578_v46  ;;  %v1574_v43 = vsel %vm1370_vm10, %v1565_v40, %v1573_v21  ;;  %v1966_v52 = vshrl.u32 %v1910_v63, 16  ;;  %v12507_v3 = vld [vmem:[#allocation2 + $0x58] sm:$0xf] }
  0xb9   : > { %v1539_v53 = vor.u32 %v1538_v51, %v1535_v48  ;;  %v1586_v26 = vrot.slane %v1584_v14, 4  ;;  %v1957_v48 = vshrl.u32 %v12476_v35, 16  ;;  %v1960_v51 = vshll.u32 %v12476_v35, 16 }
  0xba   : > { %v1623_v47 = vrot.slane %v1621_v33, 5  ;;  %v1640_v14 = vrot.slane %v1638_v56, 5  ;;  %v1608_v11 = vsel %vm1370_vm10, %v1599_v57, %v1607_v60  ;;  %v1969_v12 = vshll.u32 %v1910_v63, 16 }
  0xbb   : > { %10653 = vmatpush3.bf16.msra.mxu0 %v11815_v0  ;;  %v1523_v0 = vsel %vm1370_vm10, %v1514_v39, %v1522_v6  ;;  %v1540_v4 = vsel %vm1370_vm10, %v1531_v2, %v1539_v53  ;;  %v1630_v39 = vshll.u32 %v11876_v9, 16  ;;  %v1590_v34 = vor.u32 %v1589_v28, %v1586_v26  ;;  %v1912_v2 = vld [vmem:[#allocation2 + $0x30] sm:$0xf8] }
  0xbc   : > { %10686 = vmatprep.subr.bf16.mxu0 %v12438_v19  ;;  %v1635_v6 = vshrl.u32 %v1361_v13, 16  ;;  %v1959_v7 = vrot.slane %v1957_v48, 3  ;;  %v1962_v37 = vrot.slane %v1960_v51, 4  ;;  %v1983_v20 = vshrl.u32 %v1912_v2, 16  ;;  %v1916_v9 = vld [vmem:[#allocation2 + $0x50] sm:$0xf8] }
  0xbd   : > { %v1591_v8 = vsel %vm1370_vm10, %v1582_v54, %v1590_v34  ;;  %v1632_v62 = vrot.slane %v1630_v39, 5  ;;  %v1991_v28 = vshrl.u32 %v12494_v50, 16  ;;  %v1994_v29 = vshll.u32 %v12494_v50, 16 }
  0xbe   : > { %10623 = vmatmul.mubr.msk.bf16.gmra.mrb[8].mxu0 %vm224_vm0, %v1472_v27  ;;  %v1612_v27 = vrot.slane %v1610_v31, 4  ;;  %v1986_v31 = vshll.u32 %v1912_v2, 16  ;;  %v1963_v26 = vor.u32 %v1962_v37, %v1959_v7  ;;  %v1968_v41 = vrot.slane %v1966_v52, 3  ;;  %v11817_v37 = vld [vmem:[%s14249_s1 + $0x88] sm:$0xff]  }
  0xbf   : > { %10626 = vmatprep.mubr.msk.bf16.mxu0 %vm224_vm0, %v1489_v36  ;;  %v1618_v36 = vshrl.u32 %v1360_v22, 16  ;;  %v1633_v53 = vor.u32 %v1632_v62, %v1629_v58  ;;  %v1971_v24 = vrot.slane %v1969_v12, 4  ;;  %v1914_v22 = vld [vmem:[#allocation2 + $0x40] sm:$0xf8]  ;;  %v1996_v13 = vrot.slane %v1994_v29, 4 }
  0xc0   : > { %v1616_v46 = vor.u32 %v1615_v18, %v1612_v27  ;;  %v1985_v27 = vrot.slane %v1983_v20, 3  ;;  %v1988_v18 = vrot.slane %v1986_v31, 4  ;;  %v1964_v33 = vsel %vm283_vm7, %v1955_v23, %v1963_v26  ;;  %v1918_v58 = vld [vmem:[#allocation2 + $0x60] sm:$0xf8]  ;;  %v12516_v62 = vld [vmem:[#allocation2 + $0x68] sm:$0xf] }
  0xc1   : > { %v1620_v45 = vrot.slane %v1618_v36, 4  ;;  %v12504_v36 = vld [vmem:[#allocation2 + $0x48] sm:$0xf]  ;;  %v2000_v39 = vshrl.u32 %v1914_v22, 16  ;;  %v2003_v40 = vshll.u32 %v1914_v22, 16  ;;  %v1972_v32 = vor.u32 %v1971_v24, %v1968_v41  ;;  %v11818_v20 = vld [vmem:[%s14249_s1 + $0x90] sm:$0xff]  }
  0xc2   : > { %v2008_v21 = vshrl.u32 %v12504_v36, 16  ;;  %v2011_v25 = vshll.u32 %v12504_v36, 16  ;;  %v1989_v44 = vor.u32 %v1988_v18, %v1985_v27  ;;  %v2020_v48 = vshll.u32 %v1916_v9, 16  ;;  %v1922_v26 = vld [vmem:[#allocation2 + $0x80] sm:$0xf8]  ;;  %v11819_v18 = vld [vmem:[%s14249_s1 + $0x98] sm:$0xff]  }
  0xc3   : > { %v1624_v61 = vor.u32 %v1623_v47, %v1620_v45  ;;  %v2017_v45 = vshrl.u32 %v1916_v9, 16  ;;  %v2025_v51 = vshrl.u32 %v12507_v3, 16  ;;  %v2028_v54 = vshll.u32 %v12507_v3, 16  ;;  %v1924_v27 = vld [vmem:[#allocation2 + $0x90] sm:$0xf8] }
  0xc4   : > { %v2002_v34 = vrot.slane %v2000_v39, 3  ;;  %v2010_v56 = vrot.slane %v2008_v21, 3  ;;  %v2022_v60 = vrot.slane %v2020_v48, 4  ;;  %v2034_v63 = vshrl.u32 %v1918_v58, 16  ;;  %v12543_v39 = vld [vmem:[#allocation2 + $0x98] sm:$0xf] }
  0xc5   : > { %v1625_v5 = vsel %vm1370_vm10, %v1616_v46, %v1624_v61  ;;  %v2019_v57 = vrot.slane %v2017_v45, 3  ;;  %v2027_v49 = vrot.slane %v2025_v51, 3  ;;  %v2030_v7 = vrot.slane %v2028_v54, 4  ;;  %v1920_v46 = vld [vmem:[#allocation2 + $0x70] sm:$0xf8]  ;;  %v12552_v48 = vld [vmem:[%s14249_s1 + $0xa0] sm:$0xff]  }
  0xc6   : > { %10627 = vmatmul.mubr.msk.bf16.gmra.mrb[12].mxu0 %vm224_vm0, %v1506_v15  ;;  %v1637_v15 = vrot.slane %v1635_v6, 4  ;;  %v2005_v6 = vrot.slane %v2003_v40, 4  ;;  %v12522_v61 = vld [vmem:[#allocation2 + $0x78] sm:$0xf]  ;;  %v2037_v2 = vshll.u32 %v1918_v58, 16  ;;  %v2054_v52 = vshll.u32 %v1920_v46, 16 }
  0xc7   : > { %10630 = vmatprep.mubr.msk.bf16.mxu0 %vm224_vm0, %v1523_v0  ;;  %v12491_v0 = vld [vmem:[#allocation2 + $0x28] sm:$0xf]  ;;  %v2023_v12 = vor.u32 %v2022_v60, %v2019_v57  ;;  %v2036_v31 = vrot.slane %v2034_v63, 3  ;;  %v2093_v45 = vshrl.u32 %v12543_v39, 16  ;;  %v1928_v58 = vld [vmem:[#allocation2 + $0xb0] sm:$0xf8] }
  0xc8   : > { %v1974_v16 = vshrl.u32 %v12491_v0, 16  ;;  %v1641_v17 = vor.u32 %v1640_v14, %v1637_v15  ;;  %v1977_v55 = vshll.u32 %v12491_v0, 16  ;;  %v2006_v15 = vor.u32 %v2005_v6, %v2002_v34  ;;  %v12555_v57 = vld [vmem:[#allocation2 + $0xa8] sm:$0xf] }
  0xc9   : > { %v2039_v23 = vrot.slane %v2037_v2, 4  ;;  %v2110_v2 = vshrl.u32 %v12555_v57, 16  ;;  %v2548_v35 = vrot.slane %v12494_v50, 4  ;;  %v2551_v50 = vrot.slane %v12504_v36, 4  ;;  %v11823_v36 = vld [vmem:[%s14249_s1 + $0xb8] sm:$0xff]  }
  0xca   : > { %v1976_v10 = vrot.slane %v1974_v16, 3  ;;  %v1642_v30 = vsel %vm1370_vm10, %v1633_v53, %v1641_v17  ;;  %v2051_v53 = vshrl.u32 %v1920_v46, 16  ;;  %v2031_v16 = vor.u32 %v2030_v7, %v2027_v49 }
  0xcb   : > { %v2059_v17 = vshrl.u32 %v12522_v61, 16  ;;  %v2040_v40 = vor.u32 %v2039_v23, %v2036_v31  ;;  %v2095_v49 = vrot.slane %v2093_v45, 3  ;;  %v2112_v31 = vrot.slane %v2110_v2, 3 }
  0xcc   : > { %v2053_v24 = vrot.slane %v2051_v53, 3  ;;  %v2032_v22 = vsel %vm283_vm7, %v2023_v12, %v2031_v16  ;;  %v2122_v53 = vshll.u32 %v1928_v58, 16 }
  0xce   : > { %10631 = vmatmul.mubr.msk.bf16.gmra.mrb[16].mxu0 %vm224_vm0, %v1540_v4  ;;  %v1979_v4 = vrot.slane %v1977_v55, 4  ;;  %v2062_v55 = vshll.u32 %v12522_v61, 16 }
  0xcf   : > { %10634 = vmatprep.mubr.msk.bf16.mxu0 %vm224_vm0, %v1557_v38  ;;  %v1993_v38 = vrot.slane %v1991_v28, 3  ;;  %v12535_v28 = vld [vmem:[#allocation2 + $0x88] sm:$0xf] }
  0xd0   : > { %v1980_v42 = vor.u32 %v1979_v4, %v1976_v10  ;;  %v2056_v10 = vrot.slane %v2054_v52, 4  ;;  %v2064_v4 = vrot.slane %v2062_v55, 4  ;;  %v2079_v9 = vshll.u32 %v12535_v28, 16 }
  0xd1   : > { %v1997_v47 = vor.u32 %v1996_v13, %v1993_v38  ;;  %v2071_v38 = vshll.u32 %v1922_v26, 16  ;;  %v2076_v13 = vshrl.u32 %v12535_v28, 16 }
  0xd2   : > { %v2081_v6 = vrot.slane %v2079_v9, 4 }
  0xd3   : > { %v1998_v59 = vsel %vm283_vm7, %v1989_v44, %v1997_v47  ;;  %v2088_v44 = vshll.u32 %v1924_v27, 16  ;;  %v2096_v47 = vshll.u32 %v12543_v39, 16  ;;  %v2073_v54 = vrot.slane %v2071_v38, 4 }
  0xd4   : > { %v2078_v34 = vrot.slane %v2076_v13, 3 }
  0xd5   : > { %v2090_v60 = vrot.slane %v2088_v44, 4  ;;  %v2098_v7 = vrot.slane %v2096_v47, 4 }
  0xd6   : > { %10635 = vmatmul.mubr.msk.bf16.gmra.mrb[20].mxu0 %vm224_vm0, %v1574_v43  ;;  %v2013_v43 = vrot.slane %v2011_v25, 4  ;;  %v2057_v25 = vor.u32 %v2056_v10, %v2053_v24  ;;  %v1930_v10 = vld [vmem:[#allocation2 + $0xc0] sm:$0xf8] }
  0xd7   : > { %10638 = vmatprep.mubr.msk.bf16.mxu0 %vm224_vm0, %v1591_v8  ;;  %v1981_v8 = vsel %vm283_vm7, %v1972_v32, %v1980_v42  ;;  %v2085_v32 = vshrl.u32 %v1924_v27, 16  ;;  %v12571_v27 = vld [vmem:[#allocation2 + $0xd8] sm:$0xf]  ;;  %v2136_v38 = vshrl.u32 %v1930_v10, 16  ;;  %v2139_v13 = vshll.u32 %v1930_v10, 16 }
  0xd8   : > { %v2014_v14 = vor.u32 %v2013_v43, %v2010_v56  ;;  %v1926_v56 = vld [vmem:[#allocation2 + $0xa0] sm:$0xf8]  ;;  %v2161_v44 = vshrl.u32 %v12571_v27, 16  ;;  %v2164_v45 = vshll.u32 %v12571_v27, 16 }
  0xd9   : > { %v2105_v63 = vshll.u32 %v1926_v56, 16 }
  0xde   : > { %10639 = vmatmul.mubr.msk.bf16.gmra.mrb[24].mxu0 %vm224_vm0, %v1608_v11  ;;  %v2042_v11 = vshrl.u32 %v12516_v62, 16 }
  0xdf   : > { %10642 = vmatprep.mubr.msk.bf16.mxu0 %vm224_vm0, %v1625_v5  ;;  %v2045_v5 = vshll.u32 %v12516_v62, 16 }
  0xe0   : > { %v2044_v29 = vrot.slane %v2042_v11, 3  ;;  %v2113_v11 = vshll.u32 %v12555_v57, 16 }
  0xe1   : > { %v2047_v41 = vrot.slane %v2045_v5, 4  ;;  %v2119_v5 = vshrl.u32 %v1928_v58, 16 }
  0xe2   : > { %v2115_v23 = vrot.slane %v2113_v11, 4 }
  0xe3   : > { %v2048_v21 = vor.u32 %v2047_v41, %v2044_v29  ;;  %v2124_v29 = vrot.slane %v2122_v53, 4 }
  0xe5   : > { %v2049_v43 = vsel %vm283_vm7, %v2040_v40, %v2048_v21 }
  0xe6   : > { %10643 = vmatmul.mubr.msk.bf16.gmra.mrb[28].mxu0 %vm224_vm0, %v1642_v30  ;;  %v2061_v30 = vrot.slane %v2059_v17, 3  ;;  %v2099_v17 = vor.u32 %v2098_v7, %v2095_v49  ;;  %v2166_v49 = vrot.slane %v2164_v45, 4  ;;  %v1936_v7 = vld [vmem:[#allocation2 + $0xf0] sm:$0xf8] }
  0xe7   : > { %10654 = vmatprep.mubr.msk.bf16.mxu0 %vm224_vm0, %v1964_v33  ;;  %v2068_v33 = vshrl.u32 %v1922_v26, 16  ;;  %v2121_v26 = vrot.slane %v2119_v5, 3  ;;  %v2187_v53 = vshrl.u32 %v1936_v7, 16 }
  0xe8   : > { %v2065_v42 = vor.u32 %v2064_v4, %v2061_v30  ;;  %v12569_v30 = vld [vmem:[#allocation2 + $0xc8] sm:$0xf]  ;;  %v1932_v4 = vld [vmem:[#allocation2 + $0xd0] sm:$0xf8] }
  0xe9   : > { %v2070_v51 = vrot.slane %v2068_v33, 3  ;;  %v2116_v33 = vor.u32 %v2115_v23, %v2112_v31  ;;  %v2125_v9 = vor.u32 %v2124_v29, %v2121_v26  ;;  %v2144_v21 = vshrl.u32 %v12569_v30, 16 }
  0xea   : > { %v2189_v29 = vrot.slane %v2187_v53, 3  ;;  %v12623_v53 = vld [vmem:[#allocation2 + $0x40] sm:$0xf0] }
  0xeb   : > { %v2074_v46 = vor.u32 %v2073_v54, %v2070_v51  ;;  %v2138_v51 = vrot.slane %v2136_v38, 3  ;;  %v1934_v54 = vld [vmem:[#allocation2 + $0xe0] sm:$0xf8] }
  0xee   : > { %10655 = vmatmul.mubr.msk.bf16.vlgmr.msra.gmra.mrb[0].mxu0 %vm224_vm0, %v1981_v8  ;;  %v2087_v8 = vrot.slane %v2085_v32, 3  ;;  %v2153_v32 = vshrl.u32 %v1932_v4, 16 }
  0xef   : > { %10687 = vmatpush3.bf16.msra.mxu0 %v12438_v19  ;;  %10658 = vmatprep.mubr.msk.bf16.mxu0 %vm224_vm0, %v1998_v59  ;;  %v2015_v19 = vsel %vm283_vm7, %v2006_v15, %v2014_v14  ;;  %v2066_v59 = vsel %vm283_vm7, %v2057_v25, %v2065_v42  ;;  %v2082_v15 = vor.u32 %v2081_v6, %v2078_v34  ;;  %v2102_v14 = vshrl.u32 %v1926_v56, 16 }
  0xf0   : > { %10688 = vmatprep.subr.bf16.mxu0 %v11817_v37  ;;  %v2091_v16 = vor.u32 %v2090_v60, %v2087_v8  ;;  %v2147_v25 = vshll.u32 %v12569_v30, 16  ;;  %v2156_v42 = vshll.u32 %v1932_v4, 16  ;;  %v2141_v6 = vrot.slane %v2139_v13, 4  ;;  %v12581_v8 = vld [vmem:[#allocation2 + $0xe8] sm:$0xf] }
  0xf1   : > { %v2083_v55 = vsel %vm283_vm7, %v2074_v46, %v2082_v15  ;;  %v2146_v56 = vrot.slane %v2144_v21, 3  ;;  %v2155_v58 = vrot.slane %v2153_v32, 3  ;;  %v2163_v60 = vrot.slane %v2161_v44, 3  ;;  %v12583_v46 = vld [vmem:[#allocation2 + $0xf8] sm:$0xf] }
  0xf2   : > { %v2170_v15 = vshrl.u32 %v1934_v54, 16  ;;  %v2181_v2 = vshll.u32 %v12581_v8, 16  ;;  %v2142_v11 = vor.u32 %v2141_v6, %v2138_v51  ;;  %v1938_v4 = vld [vmem:[#allocation2 + $0x100] sm:$0xf8] }
  0xf3   : > { %10689 = vmatpush3.bf16.msra.mxu0 %v11817_v37  ;;  %v12558_v37 = vld [vmem:[#allocation2 + $0xb8] sm:$0xf]  ;;  %v2204_v13 = vshrl.u32 %v1938_v4, 16 }
  0xf4   : > { %10690 = vmatprep.subr.bf16.mxu0 %v11818_v20  ;;  %v2127_v52 = vshrl.u32 %v12558_v37, 16  ;;  %v2130_v12 = vshll.u32 %v12558_v37, 16  ;;  %v2183_v23 = vrot.slane %v2181_v2, 4 }
  0xf6   : > { %10659 = vmatmul.mubr.msk.bf16.gmra.mrb[4].mxu0 %vm224_vm0, %v2015_v19  ;;  %v2107_v19 = vrot.slane %v2105_v63, 4  ;;  %v2129_v41 = vrot.slane %v2127_v52, 3  ;;  %v2132_v24 = vrot.slane %v2130_v12, 4  ;;  %v2178_v63 = vshrl.u32 %v12581_v8, 16 }
  0xf7   : > { %10662 = vmatprep.mubr.msk.bf16.mxu0 %vm224_vm0, %v2032_v22  ;;  %10691 = vmatpush3.bf16.msra.mxu0 %v11818_v20  ;;  %v2104_v20 = vrot.slane %v2102_v14, 3  ;;  %v2100_v22 = vsel %vm283_vm7, %v2091_v16, %v2099_v17  ;;  %v2173_v14 = vshll.u32 %v1934_v54, 16  ;;  %v2190_v52 = vshll.u32 %v1936_v7, 16  ;;  %v12611_v7 = vld [vmem:[#allocation2 + $0x20] sm:$0xf0] }
  0xf8   : > { %10692 = vmatprep.subr.bf16.mxu0 %v11819_v18  ;;  %v2133_v40 = vor.u32 %v2132_v24, %v2129_v41  ;;  %v2167_v16 = vor.u32 %v2166_v49, %v2163_v60  ;;  %v2195_v17 = vshrl.u32 %v12583_v46, 16  ;;  %v2180_v31 = vrot.slane %v2178_v63, 3 }
  0xf9   : > { %v2192_v41 = vrot.slane %v2190_v52, 4  ;;  %v2545_v63 = vrot.slane %v12491_v0, 4  ;;  %v11821_v52 = vld [vmem:[%s14249_s1 + $0xa8] sm:$0xff]   ;;  %v2550_v0 = vrot.slane %v12623_v53, 4 }
  0xfa   : > { %v2134_v34 = vsel %vm283_vm7, %v2125_v9, %v2133_v40  ;;  %v2197_v10 = vrot.slane %v2195_v17, 3  ;;  %v2184_v38 = vor.u32 %v2183_v23, %v2180_v31  ;;  %v2207_v9 = vshll.u32 %v1938_v4, 16  ;;  %v12647_v31 = vld [vmem:[#allocation2 + $0x70] sm:$0xf0] }
  0xfb   : > { %10693 = vmatpush3.bf16.msra.mxu0 %v11819_v18  ;;  %v2108_v18 = vor.u32 %v2107_v19, %v2104_v20  ;;  %v2172_v20 = vrot.slane %v2170_v15, 3  ;;  %v2175_v19 = vrot.slane %v2173_v14, 4  ;;  %v2193_v32 = vor.u32 %v2192_v41, %v2189_v29  ;;  %v12613_v15 = vld [vmem:[#allocation2 + $0x30] sm:$0xf0]  ;;  %v12658_v41 = vld [vmem:[%s14249_s1 + $0xc0] sm:$0xff]  }
  0xfc   : > { %10726 = vmatprep.subr.bf16.mxu0 %v12552_v48  ;;  %v2209_v51 = vrot.slane %v2207_v9, 4  ;;  %v2544_v14 = vrot.slane %v12611_v7, 4  ;;  %v2547_v2 = vrot.slane %v12613_v15, 4  ;;  %v2554_v17 = vrot.slane %v12507_v3, 4 }
  0xfd   : > { %v2117_v47 = vsel %vm283_vm7, %v2108_v18, %v2116_v33  ;;  %v12593_v18 = vld [vmem:[#allocation2 + $0x108] sm:$0xf]  ;;  %v2176_v33 = vor.u32 %v2175_v19, %v2172_v20  ;;  %v2552_v20 = vsel %vm831_vm1, %v2550_v0, %v2551_v50  ;;  %v12642_v19 = vld [vmem:[#allocation2 + $0x60] sm:$0xf0]  ;;  %v2557_v23 = vrot.slane %v12516_v62, 4 }
  0xfe   : > { %10663 = vmatmul.mubr.msk.bf16.gmra.mrb[8].mxu0 %vm224_vm0, %v2049_v43  ;;  %v2149_v43 = vrot.slane %v2147_v25, 4  ;;  %v2212_v40 = vshrl.u32 %v12593_v18, 16  ;;  %v2215_v21 = vshll.u32 %v12593_v18, 16  ;;  %v330_v25 = vld [vmem:[#allocation2 + $0x108] sm:$0x10]  ;;  %v2556_v3 = vrot.slane %v12642_v19, 4 }
  0xff   : > { %10666 = vmatprep.mubr.msk.bf16.mxu0 %vm224_vm0, %v2066_v59  ;;  %v2158_v59 = vrot.slane %v2156_v42, 4  ;;  %v2185_v44 = vsel %vm283_vm7, %v2176_v33, %v2184_v38  ;;  %v331_v45 = vsel %vm12282_vm9, 0, %v330_v25  ;;  %v2560_v29 = vrot.slane %v12522_v61, 4  ;;  %v12665_v62 = vld [vmem:[#allocation2 + $0x90] sm:$0xf0] }
 0x100   : > { %v2150_v5 = vor.u32 %v2149_v43, %v2146_v56  ;;  %v2214_v54 = vrot.slane %v2212_v40, 3  ;;  %332 = vst [vmem:[#allocation2 + $0x108] sm:$0x10] %v331_v45  ;;  %v12603_v56 = vld [vmem:[#allocation2 + $0x10] sm:$0xf0]  ;;  %v2563_v4 = vrot.slane %v12535_v28, 4 }
 0x101   : > { %v2159_v12 = vor.u32 %v2158_v59, %v2155_v58  ;;  %v2541_v59 = vrot.slane %v12603_v56, 4  ;;  %v2565_v33 = vrot.slane %v12665_v62, 4  ;;  %v2566_v38 = vrot.slane %v12543_v39, 4  ;;  %v12675_v40 = vld [vmem:[#allocation2 + $0xa0] sm:$0xf0] }
 0x102   : > { %v2151_v26 = vsel %vm283_vm7, %v2142_v11, %v2150_v5  ;;  %v2546_v11 = vsel %vm831_vm1, %v2544_v14, %v2545_v63  ;;  %v2549_v5 = vsel %vm831_vm1, %v2547_v2, %v2548_v35  ;;  %v2568_v25 = vrot.slane %v12675_v40, 4  ;;  %v12687_v45 = vld [vmem:[#allocation2 + $0xc0] sm:$0xf0] }
 0x103   : > { %v2168_v24 = vsel %vm283_vm7, %v2159_v12, %v2167_v16  ;;  %v2543_v49 = vsel %vm831_vm1, %v2541_v59, %v2542_v1  ;;  %v12628_v12 = vld [vmem:[#allocation2 + $0x50] sm:$0xf0]  ;;  %v2567_v9 = vsel %vm831_vm1, %v2565_v33, %v2566_v38  ;;  %v2569_v28 = vrot.slane %v12555_v57, 4  ;;  %v2854_v59 = vld [vmem:[#allocation2 + $0x18] sm:$0x1f] }
 0x104   : > { %v2553_v16 = vrot.slane %v12628_v12, 4  ;;  %v2572_v39 = vrot.slane %v12558_v37, 4  ;;  %v2575_v57 = vrot.slane %v12569_v30, 4  ;;  %v2578_v37 = vrot.slane %v12571_v27, 4  ;;  %v12711_v35 = vld [vmem:[#allocation2 + $0x100] sm:$0xf0] }
 0x105   : > { %v2581_v30 = vrot.slane %v12581_v8, 4  ;;  %v2584_v27 = vrot.slane %v12583_v46, 4  ;;  %v2882_v14 = vshll.u32 %v12603_v56, 16  ;;  %v2887_v63 = vshrl.u32 %v2854_v59, 16 }
 0x106   : > { %10667 = vmatmul.mubr.msk.bf16.gmra.mrb[12].mxu0 %vm224_vm0, %v2083_v55  ;;  %v2198_v55 = vshll.u32 %v12583_v46, 16  ;;  %v2890_v2 = vshll.u32 %v2854_v59, 16  ;;  %v2586_v46 = vrot.slane %v12711_v35, 4  ;;  %v2950_v59 = vshll.u32 %v12628_v12, 16 }
 0x107   : > { %10670 = vmatprep.mubr.msk.bf16.mxu0 %vm224_vm0, %v2100_v22  ;;  %v2884_v50 = vrot.slane %v2882_v14, 5  ;;  %v2889_v8 = vrot.slane %v2887_v63, 4 }
 0x108   : > { %v2200_v22 = vrot.slane %v2198_v55, 4  ;;  %v11822_v55 = vld [vmem:[%s14249_s1 + $0xb0] sm:$0xff]  }
 0x10a   : > { %v2201_v42 = vor.u32 %v2200_v22, %v2197_v10  ;;  %v12662_v22 = vld [vmem:[#allocation2 + $0x80] sm:$0xf0] }
 0x10b   : > { %v2562_v61 = vrot.slane %v12662_v22, 4 }
 0x10c   : > { %v2202_v6 = vsel %vm283_vm7, %v2193_v32, %v2201_v42  ;;  %v2570_v42 = vsel %vm831_vm1, %v2568_v25, %v2569_v28 }
 0x10e   : > { %10671 = vmatmul.mubr.msk.bf16.gmra.mrb[16].mxu0 %vm224_vm0, %v2117_v47  ;;  %v2206_v47 = vrot.slane %v2204_v13, 3  ;;  %v2564_v13 = vsel %vm831_vm1, %v2562_v61, %v2563_v4 }
 0x10f   : > { %10674 = vmatprep.mubr.msk.bf16.mxu0 %vm224_vm0, %v2134_v34  ;;  %v2217_v34 = vrot.slane %v2215_v21, 4  ;;  %v12677_v21 = vld [vmem:[#allocation2 + $0xb0] sm:$0xf0] }
 0x110   : > { %v2210_v43 = vor.u32 %v2209_v51, %v2206_v47  ;;  %v2571_v32 = vrot.slane %v12677_v21, 4  ;;  %v12689_v47 = vld [vmem:[#allocation2 + $0xd0] sm:$0xf0]  ;;  %v2574_v51 = vrot.slane %v12687_v45, 4 }
 0x111   : > { %v2218_v58 = vor.u32 %v2217_v34, %v2214_v54  ;;  %v2577_v54 = vrot.slane %v12689_v47, 4 }
 0x112   : > { %v2576_v34 = vsel %vm831_vm1, %v2574_v51, %v2575_v57  ;;  %v2858_v51 = vld [vmem:[#allocation2 + $0x58] sm:$0x1f] }
 0x113   : > { %v2219_v60 = vsel %vm283_vm7, %v2210_v43, %v2218_v58  ;;  %v12699_v43 = vld [vmem:[#allocation2 + $0xe0] sm:$0xf0]  ;;  %v12701_v58 = vld [vmem:[#allocation2 + $0xf0] sm:$0xf0] }
 0x114   : > { %v2580_v1 = vrot.slane %v12699_v43, 4 }
 0x116   : > { %10675 = vmatmul.mubr.msk.bf16.gmra.mrb[20].mxu0 %vm224_vm0, %v2151_v26  ;;  %v2559_v26 = vrot.slane %v12647_v31, 4 }
 0x117   : > { %10678 = vmatprep.mubr.msk.bf16.mxu0 %vm224_vm0, %v2168_v24  ;;  %v2558_v24 = vsel %vm831_vm1, %v2556_v3, %v2557_v23  ;;  %v2913_v3 = vshrl.u32 %v12613_v15, 16  ;;  %v2916_v23 = vshll.u32 %v12613_v15, 16  ;;  %v2933_v15 = vshll.u32 %v12623_v53, 16 }
 0x118   : > { %v2561_v10 = vsel %vm831_vm1, %v2559_v26, %v2560_v29 }
 0x11e   : > { %10679 = vmatmul.mubr.msk.bf16.gmra.mrb[24].mxu0 %vm224_vm0, %v2185_v44  ;;  %v2573_v44 = vsel %vm831_vm1, %v2571_v32, %v2572_v39  ;;  %v2930_v39 = vshrl.u32 %v12623_v53, 16 }
 0x11f   : > { %10682 = vmatprep.mubr.msk.bf16.mxu0 %vm224_vm0, %v2202_v6  ;;  %v2579_v6 = vsel %vm831_vm1, %v2577_v54, %v2578_v37 }
 0x126   : > { %10683 = vmatmul.mubr.msk.bf16.gmra.mrb[28].mxu0 %vm224_vm0, %v2219_v60  ;;  %v2583_v60 = vrot.slane %v12701_v58, 4 }
 0x127   : > { %10694 = vmatprep.mubr.msk.bf16.mxu0 %vm224_vm0, %v2543_v49  ;;  %v2879_v49 = vshrl.u32 %v12603_v56, 16  ;;  %v2896_v56 = vshrl.u32 %v12611_v7, 16 }
 0x129   : > { %v2881_v0 = vrot.slane %v2879_v49, 4  ;;  %v2898_v61 = vrot.slane %v2896_v56, 4 }
 0x12e   : > { %10695 = vmatmul.mubr.msk.bf16.vlgmr.msra.gmra.mrb[0].mxu0 %vm224_vm0, %v2546_v11  ;;  %v2582_v11 = vsel %vm831_vm1, %v2580_v1, %v2581_v30  ;;  %v2955_v1 = vshrl.u32 %v2858_v51, 16  ;;  %v2958_v30 = vshll.u32 %v2858_v51, 16 }
 0x12f   : > { %10727 = vmatpush3.bf16.msra.mxu0 %v12552_v48  ;;  %10698 = vmatprep.mubr.msk.bf16.mxu0 %vm224_vm0, %v2549_v5  ;;  %v2555_v48 = vsel %vm831_vm1, %v2553_v16, %v2554_v17  ;;  %v2585_v5 = vsel %vm831_vm1, %v2583_v60, %v2584_v27  ;;  %v2892_v16 = vrot.slane %v2890_v2, 5  ;;  %v2856_v17 = vld [vmem:[#allocation2 + $0x38] sm:$0x1f]  ;;  %v2932_v60 = vrot.slane %v2930_v39, 4  ;;  %v11825_v2 = vld [vmem:[%s14249_s1 + $0xc8] sm:$0xff]  }
 0x130   : > { %10728 = vmatprep.subr.bf16.mxu0 %v11821_v52  ;;  %v2921_v26 = vshrl.u32 %v2856_v17, 16  ;;  %v2924_v29 = vshll.u32 %v2856_v17, 16  ;;  %v2935_v27 = vrot.slane %v2933_v15, 5  ;;  %v2964_v17 = vshrl.u32 %v12642_v19, 16  ;;  %v2862_v39 = vld [vmem:[#allocation2 + $0x98] sm:$0x1f] }
 0x132   : > { %v2923_v25 = vrot.slane %v2921_v26, 4  ;;  %v2926_v28 = vrot.slane %v2924_v29, 5  ;;  %v11826_v29 = vld [vmem:[%s14249_s1 + $0xd0] sm:$0xff]  }
 0x133   : > { %10729 = vmatpush3.bf16.msra.mxu0 %v11821_v52  ;;  %v2855_v52 = vld [vmem:[#allocation2 + $0x28] sm:$0x1f] }
 0x134   : > { %10730 = vmatprep.subr.bf16.mxu0 %v11822_v55 }
 0x136   : > { %10699 = vmatmul.mubr.msk.bf16.gmra.mrb[4].mxu0 %vm224_vm0, %v2552_v20  ;;  %v2899_v20 = vshll.u32 %v12611_v7, 16  ;;  %v2915_v7 = vrot.slane %v2913_v3, 4 }
 0x137   : > { %10702 = vmatprep.mubr.msk.bf16.mxu0 %vm224_vm0, %v2555_v48  ;;  %10731 = vmatpush3.bf16.msra.mxu0 %v11822_v55  ;;  %v2587_v55 = vrot.slane %v12593_v18, 4  ;;  %v2904_v48 = vshrl.u32 %v2855_v52, 16 }
 0x138   : > { %10732 = vmatprep.subr.bf16.mxu0 %v11823_v36  ;;  %v2901_v4 = vrot.slane %v2899_v20, 5  ;;  %v2981_v20 = vshrl.u32 %v12647_v31, 16 }
 0x139   : > { %v2588_v18 = vsel %vm831_vm1, %v2586_v46, %v2587_v55  ;;  %v2906_v33 = vrot.slane %v2904_v48, 4  ;;  %v2967_v46 = vshll.u32 %v12642_v19, 16  ;;  %v2984_v48 = vshll.u32 %v12647_v31, 16 }
 0x13a   : > { %v2902_v57 = vor.u32 %v2901_v4, %v2898_v61  ;;  %v2861_v61 = vld [vmem:[#allocation2 + $0x88] sm:$0x1f]  ;;  %v2983_v4 = vrot.slane %v2981_v20, 4 }
 0x13b   : > { %10733 = vmatpush3.bf16.msra.mxu0 %v11823_v36  ;;  %v2907_v36 = vshll.u32 %v2855_v52, 16  ;;  %v2952_v52 = vrot.slane %v2950_v59, 5 }
 0x13c   : > { %10766 = vmatprep.subr.bf16.mxu0 %v12658_v41 }
 0x13d   : > { %v2909_v38 = vrot.slane %v2907_v36, 5 }
 0x13e   : > { %10703 = vmatmul.mubr.msk.bf16.gmra.mrb[8].mxu0 %vm224_vm0, %v2558_v24  ;;  %v2885_v24 = vor.u32 %v2884_v50, %v2881_v0  ;;  %v2957_v0 = vrot.slane %v2955_v1, 4  ;;  %v2960_v50 = vrot.slane %v2958_v30, 5 }
 0x13f   : > { %10706 = vmatprep.mubr.msk.bf16.mxu0 %vm224_vm0, %v2561_v10  ;;  %v2893_v10 = vor.u32 %v2892_v16, %v2889_v8  ;;  %v2910_v54 = vor.u32 %v2909_v38, %v2906_v33  ;;  %v2936_v8 = vor.u32 %v2935_v27, %v2932_v60  ;;  %v2986_v33 = vrot.slane %v2984_v48, 5 }
 0x140   : > { %v2961_v26 = vor.u32 %v2960_v50, %v2957_v0  ;;  %v3035_v0 = vshll.u32 %v12675_v40, 16 }
 0x141   : > { %v2894_v32 = vsel %vm1370_vm10, %v2885_v24, %v2893_v10  ;;  %v2911_v14 = vsel %vm1370_vm10, %v2902_v57, %v2910_v54  ;;  %v2966_v24 = vrot.slane %v2964_v17, 4  ;;  %v2969_v10 = vrot.slane %v2967_v46, 5 }
 0x142   : > { %v3015_v57 = vshrl.u32 %v12665_v62, 16  ;;  %v3018_v54 = vshll.u32 %v12665_v62, 16 }
 0x143   : > { %v2970_v15 = vor.u32 %v2969_v10, %v2966_v24  ;;  %v2865_v10 = vld [vmem:[#allocation2 + $0xc8] sm:$0x1f] }
 0x144   : > { %v3020_v62 = vrot.slane %v3018_v54, 5 }
 0x146   : > { %10707 = vmatmul.mubr.msk.bf16.gmra.mrb[12].mxu0 %vm224_vm0, %v2564_v13  ;;  %v2857_v13 = vld [vmem:[#allocation2 + $0x48] sm:$0x1f] }
 0x147   : > { %10710 = vmatprep.mubr.msk.bf16.mxu0 %vm224_vm0, %v2567_v9  ;;  %v2918_v9 = vrot.slane %v2916_v23, 5 }
 0x149   : > { %v2919_v37 = vor.u32 %v2918_v9, %v2915_v7  ;;  %v11827_v7 = vld [vmem:[%s14249_s1 + $0xd8] sm:$0xff]   ;;  %v2998_v9 = vshrl.u32 %v12662_v22, 16 }
 0x14e   : > { %10711 = vmatmul.mubr.msk.bf16.gmra.mrb[16].mxu0 %vm224_vm0, %v2570_v42  ;;  %v2938_v42 = vshrl.u32 %v2857_v13, 16 }
 0x14f   : > { %10714 = vmatprep.mubr.msk.bf16.mxu0 %vm224_vm0, %v2573_v44  ;;  %v2941_v44 = vshll.u32 %v2857_v13, 16 }
 0x150   : > { %v2940_v53 = vrot.slane %v2938_v42, 4 }
 0x151   : > { %v2943_v49 = vrot.slane %v2941_v44, 5  ;;  %v2987_v44 = vor.u32 %v2986_v33, %v2983_v4  ;;  %v3069_v4 = vshll.u32 %v12687_v45, 16 }
 0x153   : > { %v2944_v16 = vor.u32 %v2943_v49, %v2940_v53  ;;  %v2863_v53 = vld [vmem:[#allocation2 + $0xa8] sm:$0x1f]  ;;  %v3017_v49 = vrot.slane %v3015_v57, 4 }
 0x154   : > { %v3040_v50 = vshrl.u32 %v2863_v53, 16 }
 0x155   : > { %v2945_v19 = vsel %vm1370_vm10, %v2936_v8, %v2944_v16  ;;  %v3049_v8 = vshrl.u32 %v12677_v21, 16  ;;  %v3052_v16 = vshll.u32 %v12677_v21, 16 }
 0x156   : > { %10715 = vmatmul.mubr.msk.bf16.gmra.mrb[20].mxu0 %vm224_vm0, %v2576_v34  ;;  %v2927_v34 = vor.u32 %v2926_v28, %v2923_v25  ;;  %v3001_v25 = vshll.u32 %v12662_v22, 16  ;;  %v3006_v28 = vshrl.u32 %v2861_v61, 16  ;;  %v12760_v22 = vld [vmem:[%s14249_s1 + $0xe0] sm:$0xff]  }
 0x157   : > { %10718 = vmatprep.mubr.msk.bf16.mxu0 %vm224_vm0, %v2579_v6  ;;  %v2947_v6 = vshrl.u32 %v12628_v12, 16  ;;  %v2860_v12 = vld [vmem:[#allocation2 + $0x78] sm:$0x1f] }
 0x158   : > { %v2928_v63 = vsel %vm1370_vm10, %v2919_v37, %v2927_v34  ;;  %v2989_v36 = vshrl.u32 %v2860_v12, 16  ;;  %v2992_v3 = vshll.u32 %v2860_v12, 16  ;;  %v3023_v37 = vshrl.u32 %v2862_v39, 16 }
 0x159   : > { %v3026_v34 = vshll.u32 %v2862_v39, 16  ;;  %v3003_v59 = vrot.slane %v3001_v25, 5  ;;  %v3008_v1 = vrot.slane %v3006_v28, 4  ;;  %v3043_v12 = vshll.u32 %v2863_v53, 16 }
 0x15a   : > { %v2991_v31 = vrot.slane %v2989_v36, 4  ;;  %v2994_v38 = vrot.slane %v2992_v3, 5  ;;  %v3037_v36 = vrot.slane %v3035_v0, 5  ;;  %v3042_v3 = vrot.slane %v3040_v50, 4 }
 0x15b   : > { %v3117_v53 = vshrl.u32 %v12701_v58, 16 }
 0x15c   : > { %v2995_v51 = vor.u32 %v2994_v38, %v2991_v31  ;;  %v3074_v38 = vshrl.u32 %v2865_v10, 16 }
 0x15d   : > { %v3119_v50 = vrot.slane %v3117_v53, 4 }
 0x15e   : > { %10719 = vmatmul.mubr.msk.bf16.gmra.mrb[24].mxu0 %vm224_vm0, %v2582_v11  ;;  %v2859_v11 = vld [vmem:[#allocation2 + $0x68] sm:$0x1f]  ;;  %v2996_v27 = vsel %vm1370_vm10, %v2987_v44, %v2995_v51  ;;  %v3071_v44 = vrot.slane %v3069_v4, 5 }
 0x15f   : > { %10722 = vmatprep.mubr.msk.bf16.mxu0 %vm224_vm0, %v2585_v5  ;;  %v2949_v5 = vrot.slane %v2947_v6, 4  ;;  %v2972_v55 = vshrl.u32 %v2859_v11, 16  ;;  %v2975_v56 = vshll.u32 %v2859_v11, 16  ;;  %v3000_v6 = vrot.slane %v2998_v9, 4 }
 0x160   : > { %v3086_v9 = vshll.u32 %v12689_v47, 16 }
 0x161   : > { %v2953_v23 = vor.u32 %v2952_v52, %v2949_v5  ;;  %v3004_v11 = vor.u32 %v3003_v59, %v3000_v6  ;;  %v3032_v52 = vshrl.u32 %v12675_v40, 16  ;;  %v3054_v40 = vrot.slane %v3052_v16, 5 }
 0x162   : > { %v3088_v54 = vrot.slane %v3086_v9, 5  ;;  %v3100_v6 = vshrl.u32 %v12699_v43, 16  ;;  %v3103_v59 = vshll.u32 %v12699_v43, 16  ;;  %v12799_v9 = vld [vmem:[#allocation2 + $0x38] sm:$0xf] }
 0x163   : > { %v2962_v13 = vsel %vm1370_vm10, %v2953_v23, %v2961_v26  ;;  %v3034_v48 = vrot.slane %v3032_v52, 4  ;;  %v3045_v23 = vrot.slane %v3043_v12, 5  ;;  %v3051_v26 = vrot.slane %v3049_v8, 4  ;;  %v2869_v8 = vld [vmem:[#allocation2 + $0x108] sm:$0x1f] }
 0x165   : > { %v3038_v21 = vor.u32 %v3037_v36, %v3034_v48  ;;  %v3055_v33 = vor.u32 %v3054_v40, %v3051_v26  ;;  %v3134_v48 = vshrl.u32 %v12711_v35, 16  ;;  %v3137_v36 = vshll.u32 %v12711_v35, 16 }
 0x166   : > { %10723 = vmatmul.mubr.msk.bf16.gmra.mrb[28].mxu0 %vm224_vm0, %v2588_v18  ;;  %v2977_v18 = vrot.slane %v2975_v56, 5 }
 0x167   : > { %10734 = vmatprep.mubr.msk.bf16.mxu0 %vm224_vm0, %v2894_v32  ;;  %v3009_v32 = vshll.u32 %v2861_v61, 16  ;;  %v3066_v61 = vshrl.u32 %v12687_v45, 16  ;;  %v3076_v45 = vrot.slane %v3074_v38, 4 }
 0x169   : > { %v3011_v30 = vrot.slane %v3009_v32, 5  ;;  %v3068_v39 = vrot.slane %v3066_v61, 4 }
 0x16b   : > { %v3012_v5 = vor.u32 %v3011_v30, %v3008_v1  ;;  %v2868_v30 = vld [vmem:[#allocation2 + $0xf8] sm:$0x1f] }
 0x16d   : > { %v3013_v20 = vsel %vm1370_vm10, %v3004_v11, %v3012_v5  ;;  %v3102_v11 = vrot.slane %v3100_v6, 4  ;;  %v3105_v5 = vrot.slane %v3103_v59, 5 }
 0x16e   : > { %10735 = vmatmul.mubr.msk.bf16.vlgmr.msra.gmra.mrb[0].mxu0 %vm224_vm0, %v2911_v14  ;;  %v3025_v14 = vrot.slane %v3023_v37, 4 }
 0x16f   : > { %10767 = vmatpush3.bf16.msra.mxu0 %v12658_v41  ;;  %10738 = vmatprep.mubr.msk.bf16.mxu0 %vm224_vm0, %v2928_v63  ;;  %v2974_v41 = vrot.slane %v2972_v55, 4  ;;  %v3028_v63 = vrot.slane %v3026_v34, 5  ;;  %v3021_v55 = vor.u32 %v3020_v62, %v3017_v49  ;;  %v3120_v49 = vshll.u32 %v12701_v58, 16 }
 0x170   : > { %10768 = vmatprep.subr.bf16.mxu0 %v11825_v2  ;;  %v3106_v58 = vor.u32 %v3105_v5, %v3102_v11  ;;  %v3424_v11 = vld [vmem:[#allocation2 + $0x60] sm:$0xf8] }
 0x171   : > { %v2978_v42 = vor.u32 %v2977_v18, %v2974_v41  ;;  %v3029_v56 = vor.u32 %v3028_v63, %v3025_v14  ;;  %v2866_v41 = vld [vmem:[#allocation2 + $0xd8] sm:$0x1f]  ;;  %v3046_v18 = vor.u32 %v3045_v23, %v3042_v3  ;;  %v3125_v63 = vshrl.u32 %v2868_v30, 16 }
 0x172   : > { %v3091_v25 = vshrl.u32 %v2866_v41, 16  ;;  %v3094_v28 = vshll.u32 %v2866_v41, 16  ;;  %v3122_v12 = vrot.slane %v3120_v49, 5  ;;  %v3142_v3 = vshrl.u32 %v2869_v8, 16 }
 0x173   : > { %10769 = vmatpush3.bf16.msra.mxu0 %v11825_v2  ;;  %v2979_v60 = vsel %vm1370_vm10, %v2970_v15, %v2978_v42  ;;  %v2864_v2 = vld [vmem:[#allocation2 + $0xb8] sm:$0x1f]  ;;  %v3030_v24 = vsel %vm1370_vm10, %v3021_v55, %v3029_v56  ;;  %v3047_v32 = vsel %vm1370_vm10, %v3038_v21, %v3046_v18  ;;  %v2867_v15 = vld [vmem:[#allocation2 + $0xe8] sm:$0x1f]  ;;  %v3416_v55 = vld [vmem:[#allocation2 + $0x20] sm:$0xf8] }
 0x174   : > { %10770 = vmatprep.subr.bf16.mxu0 %v11826_v29  ;;  %v3057_v17 = vshrl.u32 %v2864_v2, 16  ;;  %v3060_v46 = vshll.u32 %v2864_v2, 16  ;;  %v3093_v37 = vrot.slane %v3091_v25, 4  ;;  %v3096_v34 = vrot.slane %v3094_v28, 5  ;;  %v12789_v56 = vld [vmem:[#allocation2 + $0x28] sm:$0xf] }
 0x175   : > { %v3111_v1 = vshll.u32 %v2867_v15, 16  ;;  %v3128_v2 = vshll.u32 %v2868_v30, 16  ;;  %v3145_v23 = vshll.u32 %v2869_v8, 16  ;;  %v3457_v26 = vshrl.u32 %v3416_v55, 16  ;;  %v3420_v25 = vld [vmem:[#allocation2 + $0x40] sm:$0xf8] }
 0x176   : > { %10739 = vmatmul.mubr.msk.bf16.gmra.mrb[4].mxu0 %vm224_vm0, %v2945_v19  ;;  %v3062_v19 = vrot.slane %v3060_v46, 5  ;;  %v3097_v14 = vor.u32 %v3096_v34, %v3093_v37  ;;  %v3460_v40 = vshll.u32 %v3416_v55, 16  ;;  %v3136_v21 = vrot.slane %v3134_v48, 4  ;;  %v12801_v28 = vld [vmem:[#allocation2 + $0x48] sm:$0xf] }
 0x177   : > { %10742 = vmatprep.mubr.msk.bf16.mxu0 %vm224_vm0, %v2962_v13  ;;  %10771 = vmatpush3.bf16.msra.mxu0 %v11826_v29  ;;  %v3059_v29 = vrot.slane %v3057_v17, 4  ;;  %v3077_v13 = vshll.u32 %v2865_v10, 16  ;;  %v3113_v52 = vrot.slane %v3111_v1, 5  ;;  %v3127_v17 = vrot.slane %v3125_v63, 4  ;;  %v3422_v1 = vld [vmem:[#allocation2 + $0x50] sm:$0xf8] }
 0x178   : > { %10772 = vmatprep.subr.bf16.mxu0 %v11827_v7  ;;  %v3130_v46 = vrot.slane %v3128_v2, 5  ;;  %v3139_v18 = vrot.slane %v3137_v36, 5  ;;  %v3144_v61 = vrot.slane %v3142_v3, 4  ;;  %v3147_v4 = vrot.slane %v3145_v23, 5  ;;  %v12810_v30 = vld [vmem:[#allocation2 + $0x58] sm:$0xf] }
 0x179   : > { %v3063_v31 = vor.u32 %v3062_v19, %v3059_v29  ;;  %v3079_v51 = vrot.slane %v3077_v13, 5  ;;  %v3465_v29 = vshrl.u32 %v12789_v56, 16  ;;  %v3468_v19 = vshll.u32 %v12789_v56, 16  ;;  %v3418_v13 = vld [vmem:[#allocation2 + $0x30] sm:$0xf8] }
 0x17a   : > { %v3131_v10 = vor.u32 %v3130_v46, %v3127_v17  ;;  %v3462_v35 = vrot.slane %v3460_v40, 4  ;;  %v3494_v37 = vshll.u32 %v3420_v25, 16  ;;  %v3499_v34 = vshrl.u32 %v12801_v28, 16 }
 0x17b   : > { %10773 = vmatpush3.bf16.msra.mxu0 %v11827_v7  ;;  %v3083_v7 = vshrl.u32 %v12689_v47, 16  ;;  %v3064_v42 = vsel %vm1370_vm10, %v3055_v33, %v3063_v31  ;;  %v3108_v47 = vshrl.u32 %v2867_v15, 16  ;;  %v3459_v33 = vrot.slane %v3457_v26, 3  ;;  %v3426_v26 = vld [vmem:[#allocation2 + $0x70] sm:$0xf8] }
 0x17c   : > { %10806 = vmatprep.subr.bf16.mxu0 %v12760_v22  ;;  %v3467_v31 = vrot.slane %v3465_v29, 3  ;;  %v3470_v38 = vrot.slane %v3468_v19, 4  ;;  %v3474_v15 = vshrl.u32 %v3418_v13, 16  ;;  %v3502_v6 = vshll.u32 %v12801_v28, 16 }
 0x17d   : > { %v3085_v57 = vrot.slane %v3083_v7, 4  ;;  %v3110_v43 = vrot.slane %v3108_v47, 4  ;;  %v3501_v63 = vrot.slane %v3499_v34, 3  ;;  %v3508_v5 = vshrl.u32 %v3422_v1, 16 }
 0x17e   : > { %10743 = vmatmul.mubr.msk.bf16.gmra.mrb[8].mxu0 %vm224_vm0, %v2979_v60  ;;  %v3072_v60 = vor.u32 %v3071_v44, %v3068_v39  ;;  %v3148_v39 = vor.u32 %v3147_v4, %v3144_v61  ;;  %v3463_v44 = vor.u32 %v3462_v35, %v3459_v33  ;;  %v3476_v47 = vrot.slane %v3474_v15, 3  ;;  %v3428_v61 = vld [vmem:[#allocation2 + $0x80] sm:$0xf8]  ;;  %v12828_v4 = vld [vmem:[#allocation2 + $0x88] sm:$0xf] }
 0x17f   : > { %10746 = vmatprep.mubr.msk.bf16.mxu0 %vm224_vm0, %v2996_v27  ;;  %v3080_v27 = vor.u32 %v3079_v51, %v3076_v45  ;;  %v3089_v62 = vor.u32 %v3088_v54, %v3085_v57  ;;  %v3471_v45 = vor.u32 %v3470_v38, %v3467_v31  ;;  %v3482_v51 = vshrl.u32 %v12799_v9, 16 }
 0x180   : > { %v3485_v57 = vshll.u32 %v12799_v9, 16  ;;  %v3491_v54 = vshrl.u32 %v3420_v25, 16  ;;  %v3504_v2 = vrot.slane %v3502_v6, 4  ;;  %v3528_v17 = vshll.u32 %v3424_v11, 16 }
 0x181   : > { %v3081_v0 = vsel %vm1370_vm10, %v3072_v60, %v3080_v27  ;;  %v3098_v16 = vsel %vm1370_vm10, %v3089_v62, %v3097_v14  ;;  %v3472_v60 = vsel %vm283_vm7, %v3463_v44, %v3471_v45  ;;  %v3484_v53 = vrot.slane %v3482_v51, 3  ;;  %v11830_v45 = vld [vmem:[%s14249_s1 + $0xf0] sm:$0xff]  }
 0x182   : > { %v3487_v49 = vrot.slane %v3485_v57, 4  ;;  %v3493_v62 = vrot.slane %v3491_v54, 3  ;;  %v3496_v14 = vrot.slane %v3494_v37, 4  ;;  %v3505_v55 = vor.u32 %v3504_v2, %v3501_v63 }
 0x183   : > { %v3510_v48 = vrot.slane %v3508_v5, 3  ;;  %v3530_v19 = vrot.slane %v3528_v17, 4  ;;  %v3542_v31 = vshrl.u32 %v3426_v26, 16  ;;  %v3545_v38 = vshll.u32 %v3426_v26, 16 }
 0x184   : > { %v3488_v8 = vor.u32 %v3487_v49, %v3484_v53  ;;  %v3497_v46 = vor.u32 %v3496_v14, %v3493_v62  ;;  %v3559_v25 = vshrl.u32 %v3428_v61, 16  ;;  %v3570_v15 = vshll.u32 %v12828_v4, 16  ;;  %v11831_v53 = vld [vmem:[%s14249_s1 + $0xf8] sm:$0xff]   ;;  %v3432_v49 = vld [vmem:[#allocation2 + $0xa0] sm:$0xf8] }
 0x185   : > { %v3544_v57 = vrot.slane %v3542_v31, 3  ;;  %v3547_v54 = vrot.slane %v3545_v38, 4  ;;  %v12847_v62 = vld [vmem:[#allocation2 + $0xa8] sm:$0xf] }
 0x186   : > { %10747 = vmatmul.mubr.msk.bf16.gmra.mrb[12].mxu0 %vm224_vm0, %v3013_v20  ;;  %v3114_v20 = vor.u32 %v3113_v52, %v3110_v43  ;;  %v3511_v43 = vshll.u32 %v3422_v1, 16  ;;  %v3516_v52 = vshrl.u32 %v12810_v30, 16  ;;  %v3561_v34 = vrot.slane %v3559_v25, 3  ;;  %v3430_v1 = vld [vmem:[#allocation2 + $0x90] sm:$0xf8] }
 0x187   : > { %10750 = vmatprep.mubr.msk.bf16.mxu0 %vm224_vm0, %v3030_v24  ;;  %v3123_v24 = vor.u32 %v3122_v12, %v3119_v50  ;;  %v12815_v50 = vld [vmem:[#allocation2 + $0x68] sm:$0xf]  ;;  %v3548_v14 = vor.u32 %v3547_v54, %v3544_v57  ;;  %v3576_v2 = vshrl.u32 %v3430_v1, 16  ;;  %v3604_v17 = vshll.u32 %v12847_v62, 16 }
 0x188   : > { %v3115_v41 = vsel %vm1370_vm10, %v3106_v58, %v3114_v20  ;;  %v3533_v58 = vshrl.u32 %v12815_v50, 16  ;;  %v3536_v20 = vshll.u32 %v12815_v50, 16  ;;  %v3513_v36 = vrot.slane %v3511_v43, 4 }
 0x189   : > { %v3132_v7 = vsel %vm1370_vm10, %v3123_v24, %v3131_v10  ;;  %v3518_v3 = vrot.slane %v3516_v52, 3  ;;  %v11829_v24 = vld [vmem:[%s14249_s1 + $0xe8] sm:$0xff]   ;;  %v12825_v10 = vld [vmem:[#allocation2 + $0x78] sm:$0xf] }
 0x18a   : > { %v3514_v33 = vor.u32 %v3513_v36, %v3510_v48  ;;  %v12861_v48 = vld [vmem:[#allocation2 + $0xb8] sm:$0xf] }
 0x18e   : > { %10751 = vmatmul.mubr.msk.bf16.gmra.mrb[16].mxu0 %vm224_vm0, %v3047_v32  ;;  %v3140_v32 = vor.u32 %v3139_v18, %v3136_v21  ;;  %v3535_v21 = vrot.slane %v3533_v58, 3  ;;  %v3538_v18 = vrot.slane %v3536_v20, 4  ;;  %v3578_v58 = vrot.slane %v3576_v2, 3  ;;  %v3434_v20 = vld [vmem:[#allocation2 + $0xb0] sm:$0xf8] }
 0x18f   : > { %10754 = vmatprep.mubr.msk.bf16.mxu0 %vm224_vm0, %v3064_v42  ;;  %v3477_v42 = vshll.u32 %v3418_v13, 16  ;;  %v3550_v13 = vshrl.u32 %v12825_v10, 16 }
 0x190   : > { %v3149_v59 = vsel %vm1370_vm10, %v3140_v32, %v3148_v39  ;;  %v3562_v32 = vshll.u32 %v3428_v61, 16  ;;  %v3567_v39 = vshrl.u32 %v12828_v4, 16  ;;  %v3539_v44 = vor.u32 %v3538_v18, %v3535_v21 }
 0x191   : > { %v3479_v27 = vrot.slane %v3477_v42, 4  ;;  %v3610_v21 = vshrl.u32 %v3434_v20, 16  ;;  %v3613_v18 = vshll.u32 %v3434_v20, 16  ;;  %v3618_v61 = vshrl.u32 %v12861_v48, 16 }
 0x192   : > { %v3564_v6 = vrot.slane %v3562_v32, 4 }
 0x193   : > { %v3480_v12 = vor.u32 %v3479_v27, %v3476_v47  ;;  %v3572_v47 = vrot.slane %v3570_v15, 4  ;;  %v12842_v27 = vld [vmem:[#allocation2 + $0x98] sm:$0xf] }
 0x194   : > { %v3565_v5 = vor.u32 %v3564_v6, %v3561_v34  ;;  %v3584_v52 = vshrl.u32 %v12842_v27, 16  ;;  %v12874_v34 = vld [vmem:[#allocation2 + $0xd8] sm:$0xf] }
 0x195   : > { %v3489_v40 = vsel %vm283_vm7, %v3480_v12, %v3488_v8  ;;  %v3593_v12 = vshrl.u32 %v3432_v49, 16  ;;  %v3596_v8 = vshll.u32 %v3432_v49, 16  ;;  %v3652_v2 = vshrl.u32 %v12874_v34, 16 }
 0x196   : > { %10755 = vmatmul.mubr.msk.bf16.gmra.mrb[20].mxu0 %vm224_vm0, %v3081_v0  ;;  %v3519_v0 = vshll.u32 %v12810_v30, 16 }
 0x197   : > { %10758 = vmatprep.mubr.msk.bf16.mxu0 %vm224_vm0, %v3098_v16  ;;  %v3525_v16 = vshrl.u32 %v3424_v11, 16  ;;  %v3579_v11 = vshll.u32 %v3430_v1, 16  ;;  %v3440_v1 = vld [vmem:[#allocation2 + $0xe0] sm:$0xf8] }
 0x198   : > { %v3521_v23 = vrot.slane %v3519_v0, 4  ;;  %v3587_v0 = vshll.u32 %v12842_v27, 16 }
 0x199   : > { %v3527_v29 = vrot.slane %v3525_v16, 3  ;;  %v3601_v16 = vshrl.u32 %v12847_v62, 16 }
 0x19a   : > { %v3522_v35 = vor.u32 %v3521_v23, %v3518_v3  ;;  %v3581_v3 = vrot.slane %v3579_v11, 4  ;;  %v3586_v23 = vrot.slane %v3584_v52, 3  ;;  %v3589_v26 = vrot.slane %v3587_v0, 4 }
 0x19b   : > { %v3531_v42 = vor.u32 %v3530_v19, %v3527_v29  ;;  %v3598_v29 = vrot.slane %v3596_v8, 4  ;;  %v3603_v19 = vrot.slane %v3601_v16, 3  ;;  %v3655_v11 = vshll.u32 %v12874_v34, 16 }
 0x19c   : > { %v3523_v51 = vsel %vm283_vm7, %v3514_v33, %v3522_v35  ;;  %v3621_v33 = vshll.u32 %v12861_v48, 16  ;;  %v12867_v35 = vld [vmem:[#allocation2 + $0xc8] sm:$0xf]  ;;  %v3582_v31 = vor.u32 %v3581_v3, %v3578_v58  ;;  %v3590_v38 = vor.u32 %v3589_v26, %v3586_v23 }
 0x19d   : > { %v3638_v15 = vshll.u32 %v12867_v35, 16  ;;  %v3654_v58 = vrot.slane %v3652_v2, 3  ;;  %v3657_v20 = vrot.slane %v3655_v11, 4 }
 0x19e   : > { %10759 = vmatmul.mubr.msk.bf16.gmra.mrb[24].mxu0 %vm224_vm0, %v3115_v41  ;;  %v3506_v41 = vsel %vm283_vm7, %v3497_v46, %v3505_v55  ;;  %v12858_v46 = vld [vmem:[%s14249_s1 + $0x100] sm:$0xff]   ;;  %v3591_v57 = vsel %vm283_vm7, %v3582_v31, %v3590_v38 }
 0x19f   : > { %10762 = vmatprep.mubr.msk.bf16.mxu0 %vm224_vm0, %v3132_v7  ;;  %v3553_v7 = vshll.u32 %v12825_v10, 16  ;;  %v3658_v38 = vor.u32 %v3657_v20, %v3654_v58 }
 0x1a1   : > { %v3555_v37 = vrot.slane %v3553_v7, 4 }
 0x1a6   : > { %10763 = vmatmul.mubr.msk.bf16.gmra.mrb[28].mxu0 %vm224_vm0, %v3149_v59  ;;  %v3569_v59 = vrot.slane %v3567_v39, 3  ;;  %v3635_v39 = vshrl.u32 %v12867_v35, 16 }
 0x1a7   : > { %10774 = vmatprep.mubr.msk.bf16.mxu0 %vm224_vm0, %v3472_v60  ;;  %v3540_v60 = vsel %vm283_vm7, %v3531_v42, %v3539_v44  ;;  %v3612_v42 = vrot.slane %v3610_v21, 3  ;;  %v3615_v44 = vrot.slane %v3613_v18, 4 }
 0x1a8   : > { %v3573_v43 = vor.u32 %v3572_v47, %v3569_v59  ;;  %v3637_v59 = vrot.slane %v3635_v39, 3  ;;  %v3640_v47 = vrot.slane %v3638_v15, 4 }
 0x1aa   : > { %v3574_v36 = vsel %vm283_vm7, %v3565_v5, %v3573_v43  ;;  %v3661_v5 = vshrl.u32 %v3440_v1, 16  ;;  %v3664_v43 = vshll.u32 %v3440_v1, 16  ;;  %v3641_v8 = vor.u32 %v3640_v47, %v3637_v59  ;;  %v12899_v1 = vld [vmem:[#allocation2 + $0x118] sm:$0xf] }
 0x1ab   : > { %v3720_v2 = vshrl.u32 %v12899_v1, 16  ;;  %v3723_v11 = vshll.u32 %v12899_v1, 16 }
 0x1ac   : > { %v3663_v3 = vrot.slane %v3661_v5, 3  ;;  %v3666_v23 = vrot.slane %v3664_v43, 4 }
 0x1ae   : > { %10775 = vmatmul.mubr.msk.bf16.vlgmr.msra.gmra.mrb[0].mxu0 %vm224_vm0, %v3489_v40  ;;  %v3595_v40 = vrot.slane %v3593_v12, 3 }
 0x1af   : > { %10807 = vmatpush3.bf16.msra.mxu0 %v12760_v22  ;;  %10778 = vmatprep.mubr.msk.bf16.mxu0 %vm224_vm0, %v3506_v41  ;;  %v3552_v22 = vrot.slane %v3550_v13, 3  ;;  %v3436_v41 = vld [vmem:[#allocation2 + $0xc0] sm:$0xf8] }
 0x1b0   : > { %10808 = vmatprep.subr.bf16.mxu0 %v11829_v24  ;;  %v3627_v13 = vshrl.u32 %v3436_v41, 16  ;;  %v3630_v7 = vshll.u32 %v3436_v41, 16  ;;  %v3599_v25 = vor.u32 %v3598_v29, %v3595_v40  ;;  %v12886_v29 = vld [vmem:[#allocation2 + $0xf8] sm:$0xf]  ;;  %v12889_v41 = vld [vmem:[#allocation2 + $0x108] sm:$0xf] }
 0x1b1   : > { %v3556_v63 = vor.u32 %v3555_v37, %v3552_v22  ;;  %v3438_v37 = vld [vmem:[#allocation2 + $0xd0] sm:$0xf8]  ;;  %v3703_v39 = vshrl.u32 %v12889_v41, 16  ;;  %v3706_v15 = vshll.u32 %v12889_v41, 16 }
 0x1b2   : > { %v3629_v54 = vrot.slane %v3627_v13, 3  ;;  %v3632_v22 = vrot.slane %v3630_v7, 4  ;;  %v3667_v13 = vor.u32 %v3666_v23, %v3663_v3  ;;  %v4050_v3 = vrot.slane %v12789_v56, 4 }
 0x1b3   : > { %10809 = vmatpush3.bf16.msra.mxu0 %v11829_v24  ;;  %v3557_v55 = vsel %vm283_vm7, %v3548_v14, %v3556_v63  ;;  %v3606_v24 = vrot.slane %v3604_v17, 4  ;;  %v3644_v14 = vshrl.u32 %v3438_v37, 16  ;;  %v3647_v63 = vshll.u32 %v3438_v37, 16 }
 0x1b4   : > { %10810 = vmatprep.subr.bf16.mxu0 %v11830_v45  ;;  %v3633_v12 = vor.u32 %v3632_v22, %v3629_v54  ;;  %v3446_v22 = vld [vmem:[#allocation2 + $0x110] sm:$0xf8]  ;;  %v3705_v59 = vrot.slane %v3703_v39, 3  ;;  %v3708_v47 = vrot.slane %v3706_v15, 4  ;;  %v4056_v56 = vrot.slane %v12801_v28, 4 }
 0x1b5   : > { %v3607_v32 = vor.u32 %v3606_v24, %v3603_v19  ;;  %v3646_v17 = vrot.slane %v3644_v14, 3  ;;  %v3444_v24 = vld [vmem:[#allocation2 + $0x100] sm:$0xf8]  ;;  %v3712_v14 = vshrl.u32 %v3446_v22, 16  ;;  %v4059_v28 = vrot.slane %v12810_v30, 4  ;;  %v11835_v30 = vld [vmem:[%s14249_s1 + $0x118] sm:$0xff]  }
 0x1b6   : > { %10779 = vmatmul.mubr.msk.bf16.gmra.mrb[4].mxu0 %vm224_vm0, %v3523_v51  ;;  %v3623_v51 = vrot.slane %v3621_v33, 4  ;;  %v3642_v19 = vsel %vm283_vm7, %v3633_v12, %v3641_v8  ;;  %v3689_v33 = vshll.u32 %v12886_v29, 16  ;;  %v3709_v43 = vor.u32 %v3708_v47, %v3705_v59  ;;  %v12946_v15 = vld [vmem:[#allocation2 + $0x70] sm:$0xf0] }
 0x1b7   : > { %10782 = vmatprep.mubr.msk.bf16.mxu0 %vm224_vm0, %v3540_v60  ;;  %10811 = vmatpush3.bf16.msra.mxu0 %v11830_v45  ;;  %v3620_v45 = vrot.slane %v3618_v61, 3  ;;  %v3608_v6 = vsel %vm283_vm7, %v3599_v25, %v3607_v32  ;;  %v12877_v60 = vld [vmem:[#allocation2 + $0xe8] sm:$0xf]  ;;  %v3686_v61 = vshrl.u32 %v12886_v29, 16  ;;  %v3695_v25 = vshrl.u32 %v3444_v24, 16 }
 0x1b8   : > { %10812 = vmatprep.subr.bf16.mxu0 %v11831_v53  ;;  %v3669_v52 = vshrl.u32 %v12877_v60, 16  ;;  %v3672_v0 = vshll.u32 %v12877_v60, 16  ;;  %v3698_v32 = vshll.u32 %v3444_v24, 16  ;;  %v3722_v8 = vrot.slane %v3720_v2, 3 }
 0x1b9   : > { %v3624_v49 = vor.u32 %v3623_v51, %v3620_v45  ;;  %v3688_v45 = vrot.slane %v3686_v61, 3  ;;  %v3691_v51 = vrot.slane %v3689_v33, 4  ;;  %v3697_v37 = vrot.slane %v3695_v25, 3 }
 0x1ba   : > { %v3671_v26 = vrot.slane %v3669_v52, 3  ;;  %v3674_v40 = vrot.slane %v3672_v0, 4  ;;  %v3714_v0 = vrot.slane %v3712_v14, 3  ;;  %v4062_v25 = vrot.slane %v12815_v50, 4  ;;  %v12975_v14 = vld [vmem:[#allocation2 + $0xc0] sm:$0xf0] }
 0x1bb   : > { %10813 = vmatpush3.bf16.msra.mxu0 %v11831_v53  ;;  %v3616_v53 = vor.u32 %v3615_v44, %v3612_v42  ;;  %v4064_v50 = vrot.slane %v12946_v15, 4  ;;  %v4074_v59 = vrot.slane %v12847_v62, 4  ;;  %v4079_v2 = vrot.slane %v12975_v14, 4 }
 0x1bc   : > { %10846 = vmatprep.subr.bf16.mxu0 %v12858_v46  ;;  %v3675_v7 = vor.u32 %v3674_v40, %v3671_v26  ;;  %v12915_v40 = vld [vmem:[#allocation2 + $0x30] sm:$0xf0]  ;;  %v4080_v62 = vrot.slane %v12867_v35, 4  ;;  %v4086_v35 = vrot.slane %v12877_v60, 4 }
 0x1bd   : > { %v3625_v16 = vsel %vm283_vm7, %v3616_v53, %v3624_v49  ;;  %v3692_v49 = vor.u32 %v3691_v51, %v3688_v45  ;;  %v4052_v24 = vrot.slane %v12915_v40, 4  ;;  %v4068_v51 = vrot.slane %v12828_v4, 4 }
 0x1be   : > { %10783 = vmatmul.mubr.msk.bf16.gmra.mrb[8].mxu0 %vm224_vm0, %v3557_v55  ;;  %v3649_v55 = vrot.slane %v3647_v63, 4  ;;  %v3676_v54 = vsel %vm283_vm7, %v3667_v13, %v3675_v7  ;;  %v3715_v63 = vshll.u32 %v3446_v22, 16  ;;  %v12932_v13 = vld [vmem:[#allocation2 + $0x60] sm:$0xf0]  ;;  %v12961_v22 = vld [vmem:[#allocation2 + $0x90] sm:$0xf0] }
 0x1bf   : > { %10786 = vmatprep.mubr.msk.bf16.mxu0 %vm224_vm0, %v3574_v36  ;;  %v3442_v36 = vld [vmem:[#allocation2 + $0xf0] sm:$0xf8]  ;;  %v4061_v7 = vrot.slane %v12932_v13, 4 }
 0x1c0   : > { %v3678_v21 = vshrl.u32 %v3442_v36, 16  ;;  %v3681_v18 = vshll.u32 %v3442_v36, 16  ;;  %v3650_v31 = vor.u32 %v3649_v55, %v3646_v17  ;;  %v3717_v12 = vrot.slane %v3715_v63, 4  ;;  %v12907_v55 = vld [vmem:[#allocation2 + $0x20] sm:$0xf0] }
 0x1c1   : > { %v4049_v36 = vrot.slane %v12907_v55, 4  ;;  %v4390_v60 = vshll.u32 %v12907_v55, 16 }
 0x1c2   : > { %v3680_v42 = vrot.slane %v3678_v21, 3  ;;  %v3683_v44 = vrot.slane %v3681_v18, 4  ;;  %v3718_v58 = vor.u32 %v3717_v12, %v3714_v0  ;;  %v4053_v21 = vrot.slane %v12799_v9, 4 }
 0x1c3   : > { %v4051_v26 = vsel %vm831_vm1, %v4049_v36, %v4050_v3  ;;  %v4089_v3 = vrot.slane %v12886_v29, 4 }
 0x1c4   : > { %v3684_v53 = vor.u32 %v3683_v44, %v3680_v42  ;;  %v4054_v61 = vsel %vm831_vm1, %v4052_v24, %v4053_v21  ;;  %v12951_v42 = vld [vmem:[#allocation2 + $0x80] sm:$0xf0]  ;;  %v4065_v44 = vrot.slane %v12825_v10, 4  ;;  %v4070_v10 = vrot.slane %v12961_v22, 4 }
 0x1c5   : > { %v4067_v45 = vrot.slane %v12951_v42, 4  ;;  %v4092_v21 = vrot.slane %v12889_v41, 4 }
 0x1c6   : > { %10787 = vmatmul.mubr.msk.bf16.gmra.mrb[12].mxu0 %vm224_vm0, %v3591_v57  ;;  %v3659_v57 = vsel %vm283_vm7, %v3650_v31, %v3658_v38  ;;  %v3693_v52 = vsel %vm283_vm7, %v3684_v53, %v3692_v49  ;;  %v12927_v31 = vld [vmem:[#allocation2 + $0x50] sm:$0xf0]  ;;  %v11833_v38 = vld [vmem:[%s14249_s1 + $0x108] sm:$0xff]  }
 0x1c7   : > { %10790 = vmatprep.mubr.msk.bf16.mxu0 %vm224_vm0, %v3608_v6  ;;  %v3700_v6 = vrot.slane %v3698_v32, 4  ;;  %v4058_v9 = vrot.slane %v12927_v31, 4  ;;  %v11834_v32 = vld [vmem:[%s14249_s1 + $0x110] sm:$0xff]  }
 0x1c8   : > { %v12973_v49 = vld [vmem:[#allocation2 + $0xb0] sm:$0xf0] }
 0x1c9   : > { %v3701_v5 = vor.u32 %v3700_v6, %v3697_v37  ;;  %v4060_v39 = vsel %vm831_vm1, %v4058_v9, %v4059_v28  ;;  %v12963_v37 = vld [vmem:[#allocation2 + $0xa0] sm:$0xf0]  ;;  %v4071_v6 = vrot.slane %v12842_v27, 4  ;;  %v4076_v63 = vrot.slane %v12973_v49, 4  ;;  %v13011_v28 = vld [vmem:[#allocation2 + $0x110] sm:$0xf0] }
 0x1ca   : > { %v4073_v4 = vrot.slane %v12963_v37, 4  ;;  %v4077_v27 = vrot.slane %v12861_v48, 4  ;;  %v4083_v48 = vrot.slane %v12874_v34, 4  ;;  %v4387_v34 = vshrl.u32 %v12907_v55, 16 }
 0x1cb   : > { %v3710_v17 = vsel %vm283_vm7, %v3701_v5, %v3709_v43  ;;  %v4072_v47 = vsel %vm831_vm1, %v4070_v10, %v4071_v6  ;;  %v4081_v5 = vsel %vm831_vm1, %v4079_v2, %v4080_v62  ;;  %v12985_v43 = vld [vmem:[#allocation2 + $0xd0] sm:$0xf0]  ;;  %v4407_v55 = vshll.u32 %v12915_v40, 16  ;;  %v4366_v2 = vld [vmem:[#allocation2 + $0x68] sm:$0x1f] }
 0x1cc   : > { %v4075_v53 = vsel %vm831_vm1, %v4073_v4, %v4074_v59  ;;  %v4082_v0 = vrot.slane %v12985_v43, 4  ;;  %v4094_v41 = vrot.slane %v13011_v28, 4 }
 0x1ce   : > { %10791 = vmatmul.mubr.msk.bf16.gmra.mrb[16].mxu0 %vm224_vm0, %v3625_v16  ;;  %v3725_v16 = vrot.slane %v3723_v11, 4  ;;  %v4078_v11 = vsel %vm831_vm1, %v4076_v63, %v4077_v27 }
 0x1cf   : > { %10794 = vmatprep.mubr.msk.bf16.mxu0 %vm224_vm0, %v3642_v19  ;;  %v12917_v19 = vld [vmem:[#allocation2 + $0x40] sm:$0xf0] }
 0x1d0   : > { %v3726_v20 = vor.u32 %v3725_v16, %v3722_v8  ;;  %v4055_v18 = vrot.slane %v12917_v19, 4  ;;  %v4084_v8 = vsel %vm831_vm1, %v4082_v0, %v4083_v48  ;;  %v12996_v16 = vld [vmem:[#allocation2 + $0xf0] sm:$0xf0] }
 0x1d1   : > { %v4088_v36 = vrot.slane %v12996_v16, 4 }
 0x1d2   : > { %v3727_v23 = vsel %vm283_vm7, %v3718_v58, %v3726_v20  ;;  %v4057_v33 = vsel %vm831_vm1, %v4055_v18, %v4056_v56  ;;  %v4362_v58 = vld [vmem:[#allocation2 + $0x28] sm:$0x1f]  ;;  %v12999_v20 = vld [vmem:[#allocation2 + $0x100] sm:$0xf0]  ;;  %v4363_v56 = vld [vmem:[#allocation2 + $0x38] sm:$0x1f] }
 0x1d3   : > { %v4091_v24 = vrot.slane %v12999_v20, 4  ;;  %v4090_v18 = vsel %vm831_vm1, %v4088_v36, %v4089_v3 }
 0x1d5   : > { %v4093_v29 = vsel %vm831_vm1, %v4091_v24, %v4092_v21  ;;  %v4367_v24 = vld [vmem:[#allocation2 + $0x78] sm:$0x1f] }
 0x1d6   : > { %10795 = vmatmul.mubr.msk.bf16.gmra.mrb[20].mxu0 %vm224_vm0, %v3659_v57  ;;  %v4066_v57 = vsel %vm831_vm1, %v4064_v50, %v4065_v44  ;;  %v4421_v44 = vshrl.u32 %v12917_v19, 16 }
 0x1d7   : > { %10798 = vmatprep.mubr.msk.bf16.mxu0 %vm224_vm0, %v3676_v54  ;;  %v4069_v54 = vsel %vm831_vm1, %v4067_v45, %v4068_v51  ;;  %v4424_v45 = vshll.u32 %v12917_v19, 16  ;;  %v4438_v19 = vshrl.u32 %v12927_v31, 16 }
 0x1d9   : > { %v4426_v63 = vrot.slane %v4424_v45, 5 }
 0x1de   : > { %10799 = vmatmul.mubr.msk.bf16.gmra.mrb[24].mxu0 %vm224_vm0, %v3693_v52  ;;  %v12987_v52 = vld [vmem:[#allocation2 + $0xe0] sm:$0xf0] }
 0x1df   : > { %10802 = vmatprep.mubr.msk.bf16.mxu0 %vm224_vm0, %v3710_v17  ;;  %v4085_v12 = vrot.slane %v12987_v52, 4 }
 0x1e1   : > { %v4087_v17 = vsel %vm831_vm1, %v4085_v12, %v4086_v35  ;;  %v4455_v12 = vshrl.u32 %v12932_v13, 16  ;;  %v4458_v35 = vshll.u32 %v12932_v13, 16  ;;  %v4475_v13 = vshll.u32 %v12946_v15, 16 }
 0x1e3   : > { %v4460_v21 = vrot.slane %v4458_v35, 5 }
 0x1e6   : > { %10803 = vmatmul.mubr.msk.bf16.gmra.mrb[28].mxu0 %vm224_vm0, %v3727_v23  ;;  %v4395_v23 = vshrl.u32 %v4362_v58, 16 }
 0x1e7   : > { %10814 = vmatprep.mubr.msk.bf16.mxu0 %vm224_vm0, %v4051_v26  ;;  %v4398_v26 = vshll.u32 %v4362_v58, 16 }
 0x1e9   : > { %v4400_v9 = vrot.slane %v4398_v26, 5 }
 0x1ee   : > { %10815 = vmatmul.mubr.msk.bf16.vlgmr.msra.gmra.mrb[0].mxu0 %vm224_vm0, %v4054_v61  ;;  %v4389_v61 = vrot.slane %v4387_v34, 4  ;;  %v4440_v34 = vrot.slane %v4438_v19, 4 }
 0x1ef   : > { %10847 = vmatpush3.bf16.msra.mxu0 %v12858_v46  ;;  %10818 = vmatprep.mubr.msk.bf16.mxu0 %vm224_vm0, %v4057_v33  ;;  %v4063_v46 = vsel %vm831_vm1, %v4061_v7, %v4062_v25  ;;  %v4392_v33 = vrot.slane %v4390_v60, 5  ;;  %v4404_v7 = vshrl.u32 %v12915_v40, 16  ;;  %v4412_v25 = vshrl.u32 %v4363_v56, 16 }
 0x1f0   : > { %10848 = vmatprep.subr.bf16.mxu0 %v11833_v38 }
 0x1f1   : > { %v4406_v40 = vrot.slane %v4404_v7, 4  ;;  %v4414_v10 = vrot.slane %v4412_v25, 4 }
 0x1f3   : > { %10849 = vmatpush3.bf16.msra.mxu0 %v11833_v38  ;;  %v4397_v38 = vrot.slane %v4395_v23, 4 }
 0x1f4   : > { %10850 = vmatprep.subr.bf16.mxu0 %v11834_v32 }
 0x1f5   : > { %v4401_v50 = vor.u32 %v4400_v9, %v4397_v38  ;;  %v4480_v38 = vshrl.u32 %v4367_v24, 16  ;;  %v4483_v9 = vshll.u32 %v4367_v24, 16 }
 0x1f6   : > { %10819 = vmatmul.mubr.msk.bf16.gmra.mrb[4].mxu0 %vm224_vm0, %v4060_v39  ;;  %v4364_v39 = vld [vmem:[#allocation2 + $0x48] sm:$0x1f] }
 0x1f7   : > { %10822 = vmatprep.mubr.msk.bf16.mxu0 %vm224_vm0, %v4063_v46  ;;  %10851 = vmatpush3.bf16.msra.mxu0 %v11834_v32  ;;  %v4415_v32 = vshll.u32 %v4363_v56, 16  ;;  %v4095_v46 = vrot.slane %v12899_v1, 4  ;;  %v4429_v51 = vshrl.u32 %v4364_v39, 16  ;;  %v4485_v45 = vrot.slane %v4483_v9, 5 }
 0x1f8   : > { %10852 = vmatprep.subr.bf16.mxu0 %v11835_v30 }
 0x1f9   : > { %v4417_v6 = vrot.slane %v4415_v32, 5  ;;  %v4096_v4 = vsel %vm831_vm1, %v4094_v41, %v4095_v46  ;;  %v4431_v1 = vrot.slane %v4429_v51, 4  ;;  %v4492_v41 = vshll.u32 %v12951_v42, 16 }
 0x1fb   : > { %10853 = vmatpush3.bf16.msra.mxu0 %v11835_v30  ;;  %v4393_v30 = vor.u32 %v4392_v33, %v4389_v61  ;;  %v4472_v33 = vshrl.u32 %v12946_v15, 16  ;;  %v4482_v15 = vrot.slane %v4480_v38, 4 }
 0x1fd   : > { %v4402_v59 = vsel %vm1370_vm10, %v4393_v30, %v4401_v50  ;;  %v4474_v50 = vrot.slane %v4472_v33, 4  ;;  %v4557_v33 = vshrl.u32 %v12975_v14, 16 }
 0x1fe   : > { %10823 = vmatmul.mubr.msk.bf16.gmra.mrb[8].mxu0 %vm224_vm0, %v4066_v57  ;;  %v4432_v57 = vshll.u32 %v4364_v39, 16  ;;  %v4489_v39 = vshrl.u32 %v12951_v42, 16  ;;  %v4506_v42 = vshrl.u32 %v12961_v22, 16 }
 0x1ff   : > { %10826 = vmatprep.mubr.msk.bf16.mxu0 %vm224_vm0, %v4069_v54  ;;  %v4409_v54 = vrot.slane %v4407_v55, 5 }
 0x200   : > { %v4434_v27 = vrot.slane %v4432_v57, 5 }
 0x201   : > { %v4410_v62 = vor.u32 %v4409_v54, %v4406_v40  ;;  %v4369_v40 = vld [vmem:[#allocation2 + $0x98] sm:$0x1f]  ;;  %v4491_v54 = vrot.slane %v4489_v39, 4 }
 0x202   : > { %v4435_v36 = vor.u32 %v4434_v27, %v4431_v1  ;;  %v4514_v1 = vshrl.u32 %v4369_v40, 16  ;;  %v4517_v27 = vshll.u32 %v4369_v40, 16  ;;  %v4373_v39 = vld [vmem:[#allocation2 + $0xd8] sm:$0x1f] }
 0x203   : > { %v4585_v40 = vshll.u32 %v4373_v39, 16 }
 0x206   : > { %10827 = vmatmul.mubr.msk.bf16.gmra.mrb[12].mxu0 %vm224_vm0, %v4072_v47  ;;  %v4365_v47 = vld [vmem:[#allocation2 + $0x58] sm:$0x1f] }
 0x207   : > { %10830 = vmatprep.mubr.msk.bf16.mxu0 %vm224_vm0, %v4075_v53  ;;  %v4423_v53 = vrot.slane %v4421_v44, 4  ;;  %v4446_v0 = vshrl.u32 %v4365_v47, 16  ;;  %v4449_v48 = vshll.u32 %v4365_v47, 16  ;;  %v4477_v44 = vrot.slane %v4475_v13, 5 }
 0x208   : > { %v4560_v13 = vshll.u32 %v12975_v14, 16  ;;  %v4574_v14 = vshrl.u32 %v12985_v43, 16 }
 0x209   : > { %v4427_v58 = vor.u32 %v4426_v63, %v4423_v53  ;;  %v4448_v23 = vrot.slane %v4446_v0, 4  ;;  %v4451_v26 = vrot.slane %v4449_v48, 5  ;;  %v4478_v47 = vor.u32 %v4477_v44, %v4474_v50  ;;  %v4374_v44 = vld [vmem:[#allocation2 + $0xe8] sm:$0x1f] }
 0x20a   : > { %v4486_v53 = vor.u32 %v4485_v45, %v4482_v15  ;;  %v4509_v63 = vshll.u32 %v12961_v22, 16 }
 0x20b   : > { %v4436_v61 = vsel %vm1370_vm10, %v4427_v58, %v4435_v36  ;;  %v4452_v55 = vor.u32 %v4451_v26, %v4448_v23  ;;  %v4371_v58 = vld [vmem:[#allocation2 + $0xb8] sm:$0x1f]  ;;  %v4540_v23 = vshrl.u32 %v12973_v49, 16 }
 0x20c   : > { %v4487_v48 = vsel %vm1370_vm10, %v4478_v47, %v4486_v53  ;;  %v4511_v35 = vrot.slane %v4509_v63, 5  ;;  %v4548_v26 = vshrl.u32 %v4371_v58, 16  ;;  %v4551_v24 = vshll.u32 %v4371_v58, 16 }
 0x20e   : > { %10831 = vmatmul.mubr.msk.bf16.gmra.mrb[16].mxu0 %vm224_vm0, %v4078_v11  ;;  %v4418_v11 = vor.u32 %v4417_v6, %v4414_v10  ;;  %v4494_v10 = vrot.slane %v4492_v41, 5  ;;  %v4559_v41 = vrot.slane %v4557_v33, 4  ;;  %v4377_v33 = vld [vmem:[#allocation2 + $0x118] sm:$0x1f] }
 0x20f   : > { %10834 = vmatprep.mubr.msk.bf16.mxu0 %vm224_vm0, %v4081_v5  ;;  %v4441_v5 = vshll.u32 %v12927_v31, 16  ;;  %v4457_v31 = vrot.slane %v4455_v12, 4  ;;  %v4508_v12 = vrot.slane %v4506_v42, 4  ;;  %v4576_v42 = vrot.slane %v4574_v14, 4  ;;  %v11838_v14 = vld [vmem:[%s14251_s3 + $0x30] sm:$0xff]  }
 0x210   : > { %v4419_v3 = vsel %vm1370_vm10, %v4410_v62, %v4418_v11  ;;  %v4526_v62 = vshll.u32 %v12963_v37, 16 }
 0x211   : > { %v4443_v60 = vrot.slane %v4441_v5, 5  ;;  %v4461_v25 = vor.u32 %v4460_v21, %v4457_v31  ;;  %v4495_v5 = vor.u32 %v4494_v10, %v4491_v54  ;;  %v4372_v31 = vld [vmem:[#allocation2 + $0xc8] sm:$0x1f]  ;;  %v4512_v21 = vor.u32 %v4511_v35, %v4508_v12 }
 0x212   : > { %v4528_v36 = vrot.slane %v4526_v62, 5  ;;  %v4565_v38 = vshrl.u32 %v4372_v31, 16  ;;  %v4568_v9 = vshll.u32 %v4372_v31, 16  ;;  %v4591_v54 = vshrl.u32 %v12987_v52, 16 }
 0x213   : > { %v4444_v7 = vor.u32 %v4443_v60, %v4440_v34  ;;  %v4594_v10 = vshll.u32 %v12987_v52, 16  ;;  %v4608_v52 = vshrl.u32 %v12996_v16, 16 }
 0x214   : > { %v4570_v50 = vrot.slane %v4568_v9, 5  ;;  %v4645_v9 = vshll.u32 %v13011_v28, 16 }
 0x215   : > { %v4453_v51 = vsel %vm1370_vm10, %v4444_v7, %v4452_v55  ;;  %v4553_v55 = vrot.slane %v4551_v24, 5 }
 0x216   : > { %10835 = vmatmul.mubr.msk.bf16.gmra.mrb[20].mxu0 %vm224_vm0, %v4084_v8  ;;  %v4463_v8 = vshrl.u32 %v4366_v2, 16 }
 0x217   : > { %10838 = vmatprep.mubr.msk.bf16.mxu0 %vm224_vm0, %v4087_v17  ;;  %v4466_v17 = vshll.u32 %v4366_v2, 16  ;;  %v4523_v2 = vshrl.u32 %v12963_v37, 16  ;;  %v4543_v37 = vshll.u32 %v12973_v49, 16  ;;  %v4550_v49 = vrot.slane %v4548_v26, 4 }
 0x219   : > { %v4468_v56 = vrot.slane %v4466_v17, 5  ;;  %v4519_v17 = vrot.slane %v4517_v27, 5  ;;  %v4525_v22 = vrot.slane %v4523_v2, 4  ;;  %v4545_v7 = vrot.slane %v4543_v37, 5 }
 0x21a   : > { %v4554_v45 = vor.u32 %v4553_v55, %v4550_v49  ;;  %v4587_v27 = vrot.slane %v4585_v40, 5  ;;  %v4593_v2 = vrot.slane %v4591_v54, 4  ;;  %v13095_v40 = vld [vmem:[#allocation2] sm:$0xf0] }
 0x21b   : > { %v5458_v54 = vrot.slane %v13095_v40, 4 }
 0x21e   : > { %10839 = vmatmul.mubr.msk.bf16.gmra.mrb[24].mxu0 %vm224_vm0, %v4090_v18  ;;  %v4465_v18 = vrot.slane %v4463_v8, 4  ;;  %v4516_v8 = vrot.slane %v4514_v1, 4 }
 0x21f   : > { %10842 = vmatprep.mubr.msk.bf16.mxu0 %vm224_vm0, %v4093_v29  ;;  %v4368_v29 = vld [vmem:[#allocation2 + $0x88] sm:$0x1f] }
 0x220   : > { %v4469_v32 = vor.u32 %v4468_v56, %v4465_v18  ;;  %v4497_v46 = vshrl.u32 %v4368_v29, 16  ;;  %v4500_v30 = vshll.u32 %v4368_v29, 16  ;;  %v4520_v18 = vor.u32 %v4519_v17, %v4516_v8 }
 0x221   : > { %v4529_v56 = vor.u32 %v4528_v36, %v4525_v22  ;;  %v4542_v29 = vrot.slane %v4540_v23, 4  ;;  %v4625_v36 = vshrl.u32 %v12999_v20, 16  ;;  %v4610_v23 = vrot.slane %v4608_v52, 4 }
 0x222   : > { %v4470_v57 = vsel %vm1370_vm10, %v4461_v25, %v4469_v32  ;;  %v4499_v6 = vrot.slane %v4497_v46, 4  ;;  %v4521_v25 = vsel %vm1370_vm10, %v4512_v21, %v4520_v18  ;;  %v4562_v46 = vrot.slane %v4560_v13, 5 }
 0x223   : > { %v4546_v15 = vor.u32 %v4545_v7, %v4542_v29  ;;  %v4627_v21 = vrot.slane %v4625_v36, 4  ;;  %v4650_v29 = vshrl.u32 %v4377_v33, 16  ;;  %v4653_v7 = vshll.u32 %v4377_v33, 16 }
 0x225   : > { %v4555_v53 = vsel %vm1370_vm10, %v4546_v15, %v4554_v45  ;;  %v11836_v15 = vld [vmem:[%s14251_s3 + $0x20] sm:$0xff]   ;;  %v11837_v45 = vld [vmem:[%s14251_s3 + $0x28] sm:$0xff]  }
 0x226   : > { %10843 = vmatmul.mubr.msk.bf16.gmra.mrb[28].mxu0 %vm224_vm0, %v4096_v4  ;;  %v4502_v4 = vrot.slane %v4500_v30, 5  ;;  %v4567_v30 = vrot.slane %v4565_v38, 4  ;;  %10886 = vmatprep.subr.bf16.mxu1 %v11836_v15 }
 0x227   : > { %10854 = vmatprep.mubr.msk.bf16.mxu0 %vm224_vm0, %v4402_v59  ;;  %v4370_v59 = vld [vmem:[#allocation2 + $0xa8] sm:$0x1f]  ;;  %10887 = vmatpush3.bf16.msra.mxu1 %v11836_v15 }
 0x228   : > { %v4531_v11 = vshrl.u32 %v4370_v59, 16  ;;  %v4534_v19 = vshll.u32 %v4370_v59, 16  ;;  %v4503_v0 = vor.u32 %v4502_v4, %v4499_v6  ;;  %v4599_v6 = vshrl.u32 %v4374_v44, 16  ;;  %10888 = vmatprep.subr.bf16.mxu1 %v11837_v45 }
 0x229   : > { %v4602_v4 = vshll.u32 %v4374_v44, 16  ;;  %v4563_v59 = vor.u32 %v4562_v46, %v4559_v41  ;;  %v4571_v47 = vor.u32 %v4570_v50, %v4567_v30  ;;  %v4652_v41 = vrot.slane %v4650_v29, 4 }
 0x22a   : > { %v4536_v34 = vrot.slane %v4534_v19, 5  ;;  %v4504_v60 = vsel %vm1370_vm10, %v4495_v5, %v4503_v0  ;;  %v4601_v62 = vrot.slane %v4599_v6, 4  ;;  %v4375_v19 = vld [vmem:[#allocation2 + $0xf8] sm:$0x1f]  ;;  %v4376_v0 = vld [vmem:[#allocation2 + $0x108] sm:$0x1f] }
 0x22b   : > { %v4572_v5 = vsel %vm1370_vm10, %v4563_v59, %v4571_v47  ;;  %v4616_v12 = vshrl.u32 %v4375_v19, 16  ;;  %v4619_v35 = vshll.u32 %v4375_v19, 16  ;;  %v4655_v46 = vrot.slane %v4653_v7, 5  ;;  %10889 = vmatpush3.bf16.msra.mxu1 %v11837_v45  ;;  %v13110_v59 = vld [vmem:[%s14250_s2] ss:$0 sm:$0xff] }
 0x22c   : > { %10890 = vmatprep.subr.bf16.mxu1 %v11838_v14 }
 0x22d   : > { %v4618_v26 = vrot.slane %v4616_v12, 4  ;;  %v4621_v24 = vrot.slane %v4619_v35, 5  ;;  %v4656_v44 = vor.u32 %v4655_v46, %v4652_v41 }
 0x22e   : > { %10855 = vmatmul.mubr.msk.bf16.vlgmr.msra.gmra.mrb[0].mxu0 %vm224_vm0, %v4419_v3  ;;  %v4533_v3 = vrot.slane %v4531_v11, 4  ;;  %v4604_v11 = vrot.slane %v4602_v4, 5  ;;  %v13104_v4 = vld [vmem:[%s14251_s3] sm:$0xff]  }
 0x22f   : > { %10858 = vmatprep.mubr.msk.bf16.mxu0 %vm224_vm0, %v4436_v61  ;;  %v4622_v38 = vor.u32 %v4621_v24, %v4618_v26  ;;  %10891 = vmatpush3.bf16.msra.mxu1 %v11838_v14 }
 0x230   : > { %v4537_v61 = vor.u32 %v4536_v34, %v4533_v3  ;;  %v4605_v22 = vor.u32 %v4604_v11, %v4601_v62  ;;  %v4628_v3 = vshll.u32 %v12999_v20, 16  ;;  %v4633_v34 = vshrl.u32 %v4376_v0, 16 }
 0x231   : > { %v4642_v20 = vshrl.u32 %v13011_v28, 16 }
 0x232   : > { %v4538_v32 = vsel %vm1370_vm10, %v4529_v56, %v4537_v61  ;;  %v4630_v18 = vrot.slane %v4628_v3, 5  ;;  %v4635_v56 = vrot.slane %v4633_v34, 4 }
 0x234   : > { %v4631_v49 = vor.u32 %v4630_v18, %v4627_v21 }
 0x236   : > { %10859 = vmatmul.mubr.msk.bf16.gmra.mrb[4].mxu0 %vm224_vm0, %v4453_v51  ;;  %v4577_v51 = vshll.u32 %v12985_v43, 16  ;;  %v4596_v43 = vrot.slane %v4594_v10, 5 }
 0x237   : > { %10862 = vmatprep.mubr.msk.bf16.mxu0 %vm224_vm0, %v4470_v57  ;;  %v4582_v57 = vshrl.u32 %v4373_v39, 16  ;;  %v4647_v39 = vrot.slane %v4645_v9, 5 }
 0x238   : > { %v4579_v63 = vrot.slane %v4577_v51, 5  ;;  %v4597_v58 = vor.u32 %v4596_v43, %v4593_v2  ;;  %v11839_v51 = vld [vmem:[%s14251_s3 + $0x38] sm:$0xff]  }
 0x239   : > { %v4584_v1 = vrot.slane %v4582_v57, 4  ;;  %v13093_v57 = vld [vmem:[#allocation2 + $0x8] sm:$0xf]  ;;  %10892 = vmatprep.subr.bf16.mxu1 %v11839_v51 }
 0x23a   : > { %v4580_v8 = vor.u32 %v4579_v63, %v4576_v42  ;;  %v4606_v31 = vsel %vm1370_vm10, %v4597_v58, %v4605_v22  ;;  %v5459_v10 = vrot.slane %v13093_v57, 4  ;;  %10893 = vmatpush3.bf16.msra.mxu1 %v11839_v51 }
 0x23b   : > { %v4588_v17 = vor.u32 %v4587_v27, %v4584_v1  ;;  %10926 = vmatprep.subr.bf16.mxu1 %v13104_v4 }
 0x23c   : > { %v5460_v6 = vsel %vm831_vm1, %v5458_v54, %v5459_v10 }
 0x23d   : > { %10894 = vmatprep.mubr.msk.bf16.mxu1 %vm224_vm0, %v5460_v6 }
 0x23e   : > { %10863 = vmatmul.mubr.msk.bf16.gmra.mrb[8].mxu0 %vm224_vm0, %v4487_v48  ;;  %v4611_v48 = vshll.u32 %v12996_v16, 16  ;;  %v4589_v16 = vsel %vm1370_vm10, %v4580_v8, %v4588_v17 }
 0x23f   : > { %10866 = vmatprep.mubr.msk.bf16.mxu0 %vm224_vm0, %v4504_v60  ;;  %v4636_v60 = vshll.u32 %v4376_v0, 16 }
 0x240   : > { %v4613_v37 = vrot.slane %v4611_v48, 5 }
 0x241   : > { %v4638_v61 = vrot.slane %v4636_v60, 5 }
 0x242   : > { %v4614_v13 = vor.u32 %v4613_v37, %v4610_v23 }
 0x243   : > { %v4639_v55 = vor.u32 %v4638_v61, %v4635_v56 }
 0x245   : > { %v4640_v30 = vsel %vm1370_vm10, %v4631_v49, %v4639_v55 }
 0x246   : > { %10867 = vmatmul.mubr.msk.bf16.gmra.mrb[12].mxu0 %vm224_vm0, %v4521_v25  ;;  %v4623_v25 = vsel %vm1370_vm10, %v4614_v13, %v4622_v38 }
 0x247   : > { %10870 = vmatprep.mubr.msk.bf16.mxu0 %vm224_vm0, %v4538_v32  ;;  %v4644_v32 = vrot.slane %v4642_v20, 4 }
 0x249   : > { %v4648_v50 = vor.u32 %v4647_v39, %v4644_v32 }
 0x24b   : > { %v4657_v28 = vsel %vm1370_vm10, %v4648_v50, %v4656_v44  ;;  %v11841_v50 = vld [vmem:[%s14251_s3 + $0x8] sm:$0xff]  }
 0x24e   : > { %10871 = vmatmul.mubr.msk.bf16.gmra.mrb[16].mxu0 %vm224_vm0, %v4555_v53 }
 0x24f   : > { %10874 = vmatprep.mubr.msk.bf16.mxu0 %vm224_vm0, %v4572_v5 }
 0x256   : > { %10875 = vmatmul.mubr.msk.bf16.gmra.mrb[20].mxu0 %vm224_vm0, %v4589_v16 }
 0x257   : > { %10878 = vmatprep.mubr.msk.bf16.mxu0 %vm224_vm0, %v4606_v31 }
 0x25e   : > { %10879 = vmatmul.mubr.msk.bf16.gmra.mrb[24].mxu0 %vm224_vm0, %v4623_v25 }
 0x25f   : > { %10882 = vmatprep.mubr.msk.bf16.mxu0 %vm224_vm0, %v4640_v30 }
 0x266   : > { %10883 = vmatmul.mubr.msk.bf16.gmra.mrb[28].mxu0 %vm224_vm0, %v4657_v28 }
 0x301   : > { %v10856_v47 = vpop.f32.mrb[0].mxu0 }
 0x302   : > { %v4932_v53 = vadd.f32 %v10856_v47, %v13110_v59  ;;  %v4764_v42 = vpop.f32.mrb[1].mxu0  ;;  %v11842_v47 = vld [vmem:[%s14251_s3 + $0x10] sm:$0xff]  }
 0x303   : > { %v4930_v63 = vadd.f32 %v13110_v59, %v4764_v42  ;;  %v10857_v1 = vpop.f32.mrb[2].mxu0 }
 0x304   : > { %v4933_v27 = vadd.f32 %v10857_v1, %v13110_v59  ;;  %v4767_v2 = vpop.f32.mrb[3].mxu0  ;;  %v4964_v62 = vmax.f32 %v4932_v53, 0.0 }
 0x305   : > { %v4931_v43 = vadd.f32 %v13110_v59, %v4767_v2  ;;  %v4962_v19 = vmax.f32 %v4930_v63, 0.0 }
 0x306   : > { %v4965_v11 = vmax.f32 %v4933_v27, 0.0 }
 0x307   : > { %v4963_v5 = vmax.f32 %v4931_v43, 0.0 }
 0x308   : > { %v4995_v0 = vpack.c.bf16 %v4965_v11, %v4964_v62 }
 0x309   : > { %v4994_v52 = vpack.c.bf16 %v4963_v5, %v4962_v19  ;;  %v10860_v48 = vpop.f32.mrb[4].mxu0 }
 0x30a   : > { %v5027_v12 = vrot.slane %v4995_v0, 4  ;;  %v4936_v35 = vadd.f32 %v10860_v48, %v13110_v59  ;;  %v4780_v8 = vpop.f32.mrb[5].mxu0 }
 0x30b   : > { %v5026_v17 = vrot.slane %v4994_v52, 4  ;;  %v4934_v58 = vadd.f32 %v13110_v59, %v4780_v8  ;;  %v10861_v22 = vpop.f32.mrb[6].mxu0 }
 0x30c   : > { %5060 = vst.msk [vmem:[#allocation2 + $0x20] sm:$0xf0] %vm429_vm2, %v5027_v12  ;;  %v4937_v36 = vadd.f32 %v10861_v22, %v13110_v59  ;;  %v4783_v3 = vpop.f32.mrb[7].mxu0  ;;  %v4968_v60 = vmax.f32 %v4936_v35, 0.0  ;;  %v11843_v22 = vld [vmem:[%s14251_s3 + $0x18] sm:$0xff]  }
 0x30d   : > { %5061 = vst.msk [vmem:[#allocation2 + $0x28] sm:$0xf] %vm431_vm3, %v5027_v12  ;;  %5059 = vst.msk [vmem:[#allocation2 + $0x18] sm:$0xf] %vm431_vm3, %v5026_v17  ;;  %v4935_v34 = vadd.f32 %v13110_v59, %v4783_v3  ;;  %v4966_v37 = vmax.f32 %v4934_v58, 0.0 }
 0x30e   : > { %5058 = vst.msk [vmem:[#allocation2 + $0x10] sm:$0xf0] %vm429_vm2, %v5026_v17  ;;  %v4969_v23 = vmax.f32 %v4937_v36, 0.0 }
 0x30f   : > { %v4967_v26 = vmax.f32 %v4935_v34, 0.0 }
 0x310   : > { %v4997_v24 = vpack.c.bf16 %v4969_v23, %v4968_v60 }
 0x311   : > { %v4996_v16 = vpack.c.bf16 %v4967_v26, %v4966_v37  ;;  %v10864_v31 = vpop.f32.mrb[8].mxu0 }
 0x312   : > { %v5029_v21 = vrot.slane %v4997_v24, 4  ;;  %v4940_v18 = vadd.f32 %v10864_v31, %v13110_v59  ;;  %v4796_v56 = vpop.f32.mrb[9].mxu0  ;;  %v13186_v24 = vld [vmem:[%s14251_s3 + $0x40] sm:$0xff]  }
 0x313   : > { %v5028_v61 = vrot.slane %v4996_v16, 4  ;;  %v4938_v33 = vadd.f32 %v13110_v59, %v4796_v56  ;;  %v10865_v13 = vpop.f32.mrb[10].mxu0  ;;  %v13136_v49 = vld [vmem:[#allocation2 + $0x20] sm:$0xf0] }
 0x314   : > { %5064 = vst.msk [vmem:[#allocation2 + $0x40] sm:$0xf0] %vm429_vm2, %v5029_v21  ;;  %v4941_v38 = vadd.f32 %v10865_v13, %v13110_v59  ;;  %v4799_v20 = vpop.f32.mrb[11].mxu0  ;;  %v13129_v9 = vld [vmem:[#allocation2 + $0x18] sm:$0xf]  ;;  %v4972_v55 = vmax.f32 %v4940_v18, 0.0 }
 0x315   : > { %5065 = vst.msk [vmem:[#allocation2 + $0x48] sm:$0xf] %vm431_vm3, %v5029_v21  ;;  %v13131_v29 = vld [vmem:[#allocation2 + $0x10] sm:$0xf0]  ;;  %5063 = vst.msk [vmem:[#allocation2 + $0x38] sm:$0xf] %vm431_vm3, %v5028_v61  ;;  %v4939_v7 = vadd.f32 %v13110_v59, %v4799_v20 }
 0x316   : > { %5062 = vst.msk [vmem:[#allocation2 + $0x30] sm:$0xf0] %vm429_vm2, %v5028_v61  ;;  %v4973_v25 = vmax.f32 %v4941_v38, 0.0  ;;  %v5461_v32 = vrot.slane %v13131_v29, 4  ;;  %v5462_v39 = vrot.slane %v13129_v9, 4  ;;  %v4970_v46 = vmax.f32 %v4938_v33, 0.0 }
 0x317   : > { %v13140_v41 = vld [vmem:[#allocation2 + $0x28] sm:$0xf]  ;;  %v4971_v30 = vmax.f32 %v4939_v7, 0.0  ;;  %v5464_v15 = vrot.slane %v13136_v49, 4 }
 0x318   : > { %v4999_v44 = vpack.c.bf16 %v4973_v25, %v4972_v55  ;;  %v5463_v28 = vsel %vm831_vm1, %v5461_v32, %v5462_v39  ;;  %v5465_v51 = vrot.slane %v13140_v41, 4 }
 0x319   : > { %v4998_v45 = vpack.c.bf16 %v4971_v30, %v4970_v46  ;;  %10895 = vmatmul.mubr.msk.bf16.vlgmr.msra.gmra.mrb[0].mxu1 %vm224_vm0, %v5463_v28  ;;  %v10868_v14 = vpop.f32.mrb[12].mxu0 }
 0x31a   : > { %v5031_v54 = vrot.slane %v4999_v44, 4  ;;  %10927 = vmatpush3.bf16.msra.mxu1 %v13104_v4  ;;  %v4944_v10 = vadd.f32 %v10868_v14, %v13110_v59  ;;  %v4812_v6 = vpop.f32.mrb[13].mxu0  ;;  %v5466_v42 = vsel %vm831_vm1, %v5464_v15, %v5465_v51 }
 0x31b   : > { %v5030_v53 = vrot.slane %v4998_v45, 4  ;;  %v4942_v63 = vadd.f32 %v13110_v59, %v4812_v6  ;;  %v10869_v1 = vpop.f32.mrb[14].mxu0  ;;  %v13158_v2 = vld [vmem:[#allocation2 + $0x40] sm:$0xf0]  ;;  %10928 = vmatprep.subr.bf16.mxu1 %v11841_v50  ;;  %10898 = vmatprep.mubr.msk.bf16.mxu1 %vm224_vm0, %v5466_v42 }
 0x31c   : > { %v13156_v27 = vld [vmem:[#allocation2 + $0x48] sm:$0xf]  ;;  %5068 = vst.msk [vmem:[#allocation2 + $0x60] sm:$0xf0] %vm429_vm2, %v5031_v54  ;;  %v4945_v4 = vadd.f32 %v10869_v1, %v13110_v59  ;;  %v4815_v43 = vpop.f32.mrb[15].mxu0  ;;  %v4976_v52 = vmax.f32 %v4944_v10, 0.0 }
 0x31d   : > { %5069 = vst.msk [vmem:[#allocation2 + $0x68] sm:$0xf] %vm431_vm3, %v5031_v54  ;;  %v13164_v62 = vld [vmem:[#allocation2 + $0x38] sm:$0xf]  ;;  %v13166_v11 = vld [vmem:[#allocation2 + $0x30] sm:$0xf0]  ;;  %v4943_v19 = vadd.f32 %v13110_v59, %v4815_v43 }
 0x31e   : > { %5066 = vst.msk [vmem:[#allocation2 + $0x50] sm:$0xf0] %vm429_vm2, %v5030_v53  ;;  %v5467_v5 = vrot.slane %v13166_v11, 4  ;;  %v5468_v0 = vrot.slane %v13164_v62, 4  ;;  %v4977_v48 = vmax.f32 %v4945_v4, 0.0  ;;  %v5470_v12 = vrot.slane %v13158_v2, 4  ;;  %10929 = vmatpush3.bf16.msra.mxu1 %v11841_v50 }
 0x31f   : > { %5067 = vst.msk [vmem:[#allocation2 + $0x58] sm:$0xf] %vm431_vm3, %v5030_v53  ;;  %v5471_v35 = vrot.slane %v13156_v27, 4  ;;  %v4974_v8 = vmax.f32 %v4942_v63, 0.0  ;;  %v4975_v17 = vmax.f32 %v4943_v19, 0.0  ;;  %10930 = vmatprep.subr.bf16.mxu1 %v11842_v47 }
 0x320   : > { %v5469_v58 = vsel %vm831_vm1, %v5467_v5, %v5468_v0  ;;  %v5001_v36 = vpack.c.bf16 %v4977_v48, %v4976_v52 }
 0x321   : > { %v5000_v3 = vpack.c.bf16 %v4975_v17, %v4974_v8  ;;  %10899 = vmatmul.mubr.msk.bf16.gmra.mrb[4].mxu1 %vm224_vm0, %v5469_v58  ;;  %v10872_v34 = vpop.f32.mrb[16].mxu0  ;;  %v5472_v60 = vsel %vm831_vm1, %v5470_v12, %v5471_v35 }
 0x322   : > { %v5033_v23 = vrot.slane %v5001_v36, 4  ;;  %v4948_v37 = vadd.f32 %v10872_v34, %v13110_v59  ;;  %10902 = vmatprep.mubr.msk.bf16.mxu1 %vm224_vm0, %v5472_v60  ;;  %v4828_v26 = vpop.f32.mrb[17].mxu0  ;;  %10931 = vmatpush3.bf16.msra.mxu1 %v11842_v47 }
 0x323   : > { %v5032_v16 = vrot.slane %v5000_v3, 4  ;;  %v4946_v31 = vadd.f32 %v13110_v59, %v4828_v26  ;;  %v10873_v21 = vpop.f32.mrb[18].mxu0  ;;  %v13191_v56 = vld [vmem:[#allocation2 + $0x60] sm:$0xf0]  ;;  %10932 = vmatprep.subr.bf16.mxu1 %v11843_v22 }
 0x324   : > { %v13189_v18 = vld [vmem:[#allocation2 + $0x68] sm:$0xf]  ;;  %5072 = vst.msk [vmem:[#allocation2 + $0x80] sm:$0xf0] %vm429_vm2, %v5033_v23  ;;  %v4949_v61 = vadd.f32 %v10873_v21, %v13110_v59  ;;  %v4831_v33 = vpop.f32.mrb[19].mxu0  ;;  %v4980_v25 = vmax.f32 %v4948_v37, 0.0 }
 0x325   : > { %5073 = vst.msk [vmem:[#allocation2 + $0x88] sm:$0xf] %vm431_vm3, %v5033_v23  ;;  %v13198_v38 = vld [vmem:[#allocation2 + $0x50] sm:$0xf0]  ;;  %5071 = vst.msk [vmem:[#allocation2 + $0x78] sm:$0xf] %vm431_vm3, %v5032_v16  ;;  %v4947_v20 = vadd.f32 %v13110_v59, %v4831_v33 }
 0x326   : > { %v13196_v13 = vld [vmem:[#allocation2 + $0x58] sm:$0xf]  ;;  %5070 = vst.msk [vmem:[#allocation2 + $0x70] sm:$0xf0] %vm429_vm2, %v5032_v16  ;;  %v5473_v7 = vrot.slane %v13198_v38, 4  ;;  %v4981_v32 = vmax.f32 %v4949_v61, 0.0  ;;  %10933 = vmatpush3.bf16.msra.mxu1 %v11843_v22 }
 0x327   : > { %v5474_v55 = vrot.slane %v13196_v13, 4  ;;  %v5476_v39 = vrot.slane %v13191_v56, 4  ;;  %v5477_v46 = vrot.slane %v13189_v18, 4  ;;  %v4978_v30 = vmax.f32 %v4946_v31, 0.0  ;;  %10966 = vmatprep.subr.bf16.mxu1 %v13186_v24 }
 0x328   : > { %v4979_v50 = vmax.f32 %v4947_v20, 0.0  ;;  %v5003_v28 = vpack.c.bf16 %v4981_v32, %v4980_v25 }
 0x329   : > { %v5475_v44 = vsel %vm831_vm1, %v5473_v7, %v5474_v55  ;;  %v10876_v45 = vpop.f32.mrb[20].mxu0  ;;  %v5478_v14 = vsel %vm831_vm1, %v5476_v39, %v5477_v46 }
 0x32a   : > { %v5002_v15 = vpack.c.bf16 %v4979_v50, %v4978_v30  ;;  %10903 = vmatmul.mubr.msk.bf16.gmra.mrb[8].mxu1 %vm224_vm0, %v5475_v44  ;;  %v5035_v51 = vrot.slane %v5003_v28, 4  ;;  %v4952_v54 = vadd.f32 %v10876_v45, %v13110_v59  ;;  %v4844_v10 = vpop.f32.mrb[21].mxu0 }
 0x32b   : > { %10906 = vmatprep.mubr.msk.bf16.mxu1 %vm224_vm0, %v5478_v14  ;;  %v4950_v47 = vadd.f32 %v13110_v59, %v4844_v10  ;;  %v10877_v53 = vpop.f32.mrb[22].mxu0  ;;  %v13216_v63 = vld [vmem:[#allocation2 + $0x80] sm:$0xf0] }
 0x32c   : > { %v5034_v6 = vrot.slane %v5002_v15, 4  ;;  %v13214_v42 = vld [vmem:[#allocation2 + $0x88] sm:$0xf]  ;;  %5076 = vst.msk [vmem:[#allocation2 + $0xa0] sm:$0xf0] %vm429_vm2, %v5035_v51  ;;  %v4953_v1 = vadd.f32 %v10877_v53, %v13110_v59  ;;  %v4847_v4 = vpop.f32.mrb[23].mxu0 }
 0x32d   : > { %5077 = vst.msk [vmem:[#allocation2 + $0xa8] sm:$0xf] %vm431_vm3, %v5035_v51  ;;  %v13221_v43 = vld [vmem:[#allocation2 + $0x78] sm:$0xf]  ;;  %v13223_v19 = vld [vmem:[#allocation2 + $0x70] sm:$0xf0]  ;;  %v4951_v5 = vadd.f32 %v13110_v59, %v4847_v4 }
 0x32e   : > { %5074 = vst.msk [vmem:[#allocation2 + $0x90] sm:$0xf0] %vm429_vm2, %v5034_v6  ;;  %v5479_v0 = vrot.slane %v13223_v19, 4  ;;  %v5480_v52 = vrot.slane %v13221_v43, 4  ;;  %v4984_v48 = vmax.f32 %v4952_v54, 0.0  ;;  %v4985_v12 = vmax.f32 %v4953_v1, 0.0 }
 0x32f   : > { %5075 = vst.msk [vmem:[#allocation2 + $0x98] sm:$0xf] %vm431_vm3, %v5034_v6  ;;  %v5482_v35 = vrot.slane %v13216_v63, 4  ;;  %v5483_v8 = vrot.slane %v13214_v42, 4  ;;  %v4982_v17 = vmax.f32 %v4950_v47, 0.0  ;;  %v4983_v58 = vmax.f32 %v4951_v5, 0.0 }
 0x330   : > { %v5481_v22 = vsel %vm831_vm1, %v5479_v0, %v5480_v52  ;;  %v5005_v36 = vpack.c.bf16 %v4985_v12, %v4984_v48 }
 0x331   : > { %v5004_v3 = vpack.c.bf16 %v4983_v58, %v4982_v17  ;;  %v10880_v34 = vpop.f32.mrb[24].mxu0  ;;  %v5484_v60 = vsel %vm831_vm1, %v5482_v35, %v5483_v8 }
 0x332   : > { %10907 = vmatmul.mubr.msk.bf16.gmra.mrb[12].mxu1 %vm224_vm0, %v5481_v22  ;;  %v5037_v23 = vrot.slane %v5005_v36, 4  ;;  %v4956_v37 = vadd.f32 %v10880_v34, %v13110_v59  ;;  %v4860_v26 = vpop.f32.mrb[25].mxu0 }
 0x333   : > { %10910 = vmatprep.mubr.msk.bf16.mxu1 %vm224_vm0, %v5484_v60  ;;  %v5036_v16 = vrot.slane %v5004_v3, 4  ;;  %v4954_v31 = vadd.f32 %v13110_v59, %v4860_v26  ;;  %v10881_v21 = vpop.f32.mrb[26].mxu0  ;;  %v13240_v33 = vld [vmem:[#allocation2 + $0xa0] sm:$0xf0] }
 0x334   : > { %v13238_v61 = vld [vmem:[#allocation2 + $0xa8] sm:$0xf]  ;;  %5080 = vst.msk [vmem:[#allocation2 + $0xc0] sm:$0xf0] %vm429_vm2, %v5037_v23  ;;  %v4957_v20 = vadd.f32 %v10881_v21, %v13110_v59  ;;  %v4863_v7 = vpop.f32.mrb[27].mxu0  ;;  %v4988_v30 = vmax.f32 %v4956_v37, 0.0 }
 0x335   : > { %5081 = vst.msk [vmem:[#allocation2 + $0xc8] sm:$0xf] %vm431_vm3, %v5037_v23  ;;  %v13247_v25 = vld [vmem:[#allocation2 + $0x90] sm:$0xf0]  ;;  %5079 = vst.msk [vmem:[#allocation2 + $0xb8] sm:$0xf] %vm431_vm3, %v5036_v16  ;;  %v4955_v32 = vadd.f32 %v13110_v59, %v4863_v7 }
 0x336   : > { %v13245_v55 = vld [vmem:[#allocation2 + $0x98] sm:$0xf]  ;;  %5078 = vst.msk [vmem:[#allocation2 + $0xb0] sm:$0xf0] %vm429_vm2, %v5036_v16  ;;  %v5485_v39 = vrot.slane %v13247_v25, 4  ;;  %v4989_v50 = vmax.f32 %v4957_v20, 0.0 }
 0x337   : > { %v5486_v46 = vrot.slane %v13245_v55, 4  ;;  %v5488_v44 = vrot.slane %v13240_v33, 4  ;;  %v5489_v28 = vrot.slane %v13238_v61, 4  ;;  %v4986_v15 = vmax.f32 %v4954_v31, 0.0  ;;  %v5090_v31 = vld [vmem:[#allocation2] sm:$0xf8] }
 0x338   : > { %v4987_v45 = vmax.f32 %v4955_v32, 0.0  ;;  %v5007_v51 = vpack.c.bf16 %v4989_v50, %v4988_v30  ;;  %v5139_v7 = vshrl.u32 %v13093_v57, 16  ;;  %v5142_v32 = vshll.u32 %v13093_v57, 16 }
 0x339   : > { %v5487_v14 = vsel %vm831_vm1, %v5485_v39, %v5486_v46  ;;  %v10884_v10 = vpop.f32.mrb[28].mxu0  ;;  %v5490_v6 = vsel %vm831_vm1, %v5488_v44, %v5489_v28  ;;  %v5131_v46 = vshrl.u32 %v5090_v31, 16  ;;  %v5134_v28 = vshll.u32 %v5090_v31, 16 }
 0x33a   : > { %v5006_v54 = vpack.c.bf16 %v4987_v45, %v4986_v15  ;;  %10911 = vmatmul.mubr.msk.bf16.gmra.mrb[16].mxu1 %vm224_vm0, %v5487_v14  ;;  %v5039_v47 = vrot.slane %v5007_v51, 4  ;;  %v4960_v53 = vadd.f32 %v10884_v10, %v13110_v59  ;;  %v4876_v1 = vpop.f32.mrb[29].mxu0  ;;  %v5141_v10 = vrot.slane %v5139_v7, 3 }
 0x33b   : > { %10914 = vmatprep.mubr.msk.bf16.mxu1 %vm224_vm0, %v5490_v6  ;;  %v4958_v5 = vadd.f32 %v13110_v59, %v4876_v1  ;;  %v10885_v0 = vpop.f32.mrb[30].mxu0  ;;  %v13264_v48 = vld [vmem:[#allocation2 + $0xc0] sm:$0xf0]  ;;  %v5144_v1 = vrot.slane %v5142_v32, 4  ;;  %v5173_v31 = vshrl.u32 %v13140_v41, 16 }
 0x33c   : > { %v5038_v4 = vrot.slane %v5006_v54, 4  ;;  %v13262_v52 = vld [vmem:[#allocation2 + $0xc8] sm:$0xf]  ;;  %5084 = vst.msk [vmem:[#allocation2 + $0xe0] sm:$0xf0] %vm429_vm2, %v5039_v47  ;;  %v4961_v12 = vadd.f32 %v10885_v0, %v13110_v59  ;;  %v4879_v35 = vpop.f32.mrb[31].mxu0 }
 0x33d   : > { %5085 = vst.msk [vmem:[#allocation2 + $0xe8] sm:$0xf] %vm431_vm3, %v5039_v47  ;;  %v13269_v8 = vld [vmem:[#allocation2 + $0xb8] sm:$0xf]  ;;  %v13271_v17 = vld [vmem:[#allocation2 + $0xb0] sm:$0xf0]  ;;  %v4959_v58 = vadd.f32 %v13110_v59, %v4879_v35 }
 0x33e   : > { %5082 = vst.msk [vmem:[#allocation2 + $0xd0] sm:$0xf0] %vm429_vm2, %v5038_v4  ;;  %v5491_v22 = vrot.slane %v13271_v17, 4  ;;  %v5492_v36 = vrot.slane %v13269_v8, 4  ;;  %v4992_v3 = vmax.f32 %v4960_v53, 0.0  ;;  %v4993_v34 = vmax.f32 %v4961_v12, 0.0 }
 0x33f   : > { %5083 = vst.msk [vmem:[#allocation2 + $0xd8] sm:$0xf] %vm431_vm3, %v5038_v4  ;;  %v5494_v60 = vrot.slane %v13264_v48, 4  ;;  %v5495_v23 = vrot.slane %v13262_v52, 4  ;;  %v4990_v37 = vmax.f32 %v4958_v5, 0.0  ;;  %v4991_v26 = vmax.f32 %v4959_v58, 0.0 }
 0x340   : > { %v5493_v16 = vsel %vm831_vm1, %v5491_v22, %v5492_v36  ;;  %v5009_v21 = vpack.c.bf16 %v4993_v34, %v4992_v3  ;;  %v5133_v47 = vrot.slane %v5131_v46, 3  ;;  %v5136_v53 = vrot.slane %v5134_v28, 4  ;;  %v5092_v4 = vld [vmem:[#allocation2 + $0x10] sm:$0xf8]  ;;  %v5094_v0 = vld [vmem:[#allocation2 + $0x20] sm:$0xf8] }
 0x341   : > { %v5008_v20 = vpack.c.bf16 %v4991_v26, %v4990_v37  ;;  %v5496_v59 = vsel %vm831_vm1, %v5494_v60, %v5495_v23  ;;  %v5156_v12 = vshrl.u32 %v13129_v9, 16  ;;  %v5159_v35 = vshll.u32 %v13129_v9, 16  ;;  %v5096_v46 = vld [vmem:[#allocation2 + $0x30] sm:$0xf8] }
 0x342   : > { %10915 = vmatmul.mubr.msk.bf16.gmra.mrb[20].mxu1 %vm224_vm0, %v5493_v16  ;;  %v5041_v39 = vrot.slane %v5009_v21, 4  ;;  %v5148_v58 = vshrl.u32 %v5092_v4, 16  ;;  %v5151_v22 = vshll.u32 %v5092_v4, 16  ;;  %v5137_v36 = vor.u32 %v5136_v53, %v5133_v47 }
 0x343   : > { %10918 = vmatprep.mubr.msk.bf16.mxu1 %vm224_vm0, %v5496_v59  ;;  %v5040_v30 = vrot.slane %v5008_v20, 4  ;;  %v13288_v44 = vld [vmem:[#allocation2 + $0xe0] sm:$0xf0]  ;;  %v5145_v3 = vor.u32 %v5144_v1, %v5141_v10  ;;  %v5165_v23 = vshrl.u32 %v5094_v0, 16  ;;  %v5168_v37 = vshll.u32 %v5094_v0, 16 }
 0x344   : > { %v13286_v50 = vld [vmem:[#allocation2 + $0xe8] sm:$0xf]  ;;  %5088 = vst.msk [vmem:[#allocation2 + $0x100] sm:$0xf0] %vm429_vm2, %v5041_v39  ;;  %v5500_v51 = vrot.slane %v13288_v44, 4  ;;  %v5176_v9 = vshll.u32 %v13140_v41, 16 }
 0x345   : > { %5089 = vst.msk [vmem:[#allocation2 + $0x108] sm:$0xf] %vm431_vm3, %v5041_v39  ;;  %v13294_v45 = vld [vmem:[#allocation2 + $0xd0] sm:$0xf0]  ;;  %5087 = vst.msk [vmem:[#allocation2 + $0xf8] sm:$0xf] %vm431_vm3, %v5040_v30  ;;  %v5146_v39 = vsel %vm283_vm7, %v5137_v36, %v5145_v3 }
 0x346   : > { %v13292_v15 = vld [vmem:[#allocation2 + $0xd8] sm:$0xf]  ;;  %5086 = vst.msk [vmem:[#allocation2 + $0xf0] sm:$0xf0] %vm429_vm2, %v5040_v30  ;;  %v5497_v57 = vrot.slane %v13294_v45, 4  ;;  %v5501_v54 = vrot.slane %v13286_v50, 4 }
 0x347   : > { %v5498_v14 = vrot.slane %v13292_v15, 4  ;;  %v5158_v21 = vrot.slane %v5156_v12, 3  ;;  %v5161_v20 = vrot.slane %v5159_v35, 4  ;;  %v5150_v59 = vrot.slane %v5148_v58, 3 }
 0x348   : > { %v5502_v5 = vsel %vm831_vm1, %v5500_v51, %v5501_v54  ;;  %v5153_v7 = vrot.slane %v5151_v22, 4  ;;  %v5167_v30 = vrot.slane %v5165_v23, 3  ;;  %v5170_v28 = vrot.slane %v5168_v37, 4  ;;  %v5098_v51 = vld [vmem:[#allocation2 + $0x40] sm:$0xf8]  ;;  %v11845_v22 = vld [vmem:[%s14251_s3 + $0x48] sm:$0xff]  }
 0x349   : > { %v5499_v6 = vsel %vm831_vm1, %v5497_v57, %v5498_v14  ;;  %v5175_v57 = vrot.slane %v5173_v31, 3  ;;  %v5178_v14 = vrot.slane %v5176_v9, 4  ;;  %v5162_v41 = vor.u32 %v5161_v20, %v5158_v21 }
 0x34a   : > { %10919 = vmatmul.mubr.msk.bf16.gmra.mrb[24].mxu1 %vm224_vm0, %v5499_v6  ;;  %v5154_v54 = vor.u32 %v5153_v7, %v5150_v59  ;;  %v5182_v10 = vshrl.u32 %v5096_v46, 16  ;;  %v5185_v6 = vshll.u32 %v5096_v46, 16  ;;  %v5190_v47 = vshrl.u32 %v13164_v62, 16 }
 0x34b   : > { %10922 = vmatprep.mubr.msk.bf16.mxu1 %vm224_vm0, %v5502_v5  ;;  %v5193_v53 = vshll.u32 %v13164_v62, 16  ;;  %v5199_v1 = vshrl.u32 %v5098_v51, 16  ;;  %v5202_v4 = vshll.u32 %v5098_v51, 16  ;;  %v5207_v5 = vshrl.u32 %v13156_v27, 16 }
 0x34c   : > { %v13308_v34 = vld [vmem:[#allocation2 + $0xf8] sm:$0xf]  ;;  %v5210_v0 = vshll.u32 %v13156_v27, 16  ;;  %v5171_v12 = vor.u32 %v5170_v28, %v5167_v30  ;;  %v5179_v35 = vor.u32 %v5178_v14, %v5175_v57  ;;  %v5163_v58 = vsel %vm283_vm7, %v5154_v54, %v5162_v41 }
 0x34d   : > { %v13310_v60 = vld [vmem:[#allocation2 + $0xf0] sm:$0xf0]  ;;  %v5504_v16 = vrot.slane %v13308_v34, 4  ;;  %v5184_v36 = vrot.slane %v5182_v10, 3  ;;  %v5187_v3 = vrot.slane %v5185_v6, 4  ;;  %v5192_v23 = vrot.slane %v5190_v47, 3 }
 0x34e   : > { %v5503_v26 = vrot.slane %v13310_v60, 4  ;;  %v5195_v37 = vrot.slane %v5193_v53, 4  ;;  %v5201_v62 = vrot.slane %v5199_v1, 3  ;;  %v5209_v31 = vrot.slane %v5207_v5, 3  ;;  %v11847_v47 = vld [vmem:[%s14251_s3 + $0x58] sm:$0xff]  }
 0x34f   : > { %v5212_v9 = vrot.slane %v5210_v0, 4  ;;  %v5180_v27 = vsel %vm283_vm7, %v5171_v12, %v5179_v35  ;;  %v5224_v59 = vshrl.u32 %v13196_v13, 16  ;;  %v5227_v7 = vshll.u32 %v13196_v13, 16  ;;  %v5106_v35 = vld [vmem:[#allocation2 + $0x80] sm:$0xf8] }
 0x350   : > { %v5505_v32 = vsel %vm831_vm1, %v5503_v26, %v5504_v16  ;;  %v5100_v26 = vld [vmem:[#allocation2 + $0x50] sm:$0xf8]  ;;  %v5204_v16 = vrot.slane %v5202_v4, 4  ;;  %v5188_v46 = vor.u32 %v5187_v3, %v5184_v36  ;;  %v5196_v30 = vor.u32 %v5195_v37, %v5192_v23 }
 0x351   : > { %v5216_v21 = vshrl.u32 %v5100_v26, 16  ;;  %v5219_v20 = vshll.u32 %v5100_v26, 16  ;;  %v5213_v57 = vor.u32 %v5212_v9, %v5209_v31  ;;  %v5241_v51 = vshrl.u32 %v13189_v18, 16  ;;  %v5104_v4 = vld [vmem:[#allocation2 + $0x70] sm:$0xf8]  ;;  %v13351_v26 = vld [vmem:[%s14251_s3 + $0x60] sm:$0xff]  }
 0x352   : > { %10923 = vmatmul.mubr.msk.bf16.gmra.mrb[28].mxu1 %vm224_vm0, %v5505_v32  ;;  %v5102_v32 = vld [vmem:[#allocation2 + $0x60] sm:$0xf8]  ;;  %v5205_v28 = vor.u32 %v5204_v16, %v5201_v62  ;;  %v5244_v54 = vshll.u32 %v13189_v18, 16  ;;  %v5226_v6 = vrot.slane %v5224_v59, 3  ;;  %v5229_v13 = vrot.slane %v5227_v7, 4 }
 0x353   : > { %10934 = vmatprep.mubr.msk.bf16.mxu1 %vm224_vm0, %v5146_v39  ;;  %v11846_v39 = vld [vmem:[%s14251_s3 + $0x50] sm:$0xff]   ;;  %v5233_v14 = vshrl.u32 %v5102_v32, 16  ;;  %v5218_v41 = vrot.slane %v5216_v21, 3  ;;  %v5221_v10 = vrot.slane %v5219_v20, 4  ;;  %v5197_v53 = vsel %vm283_vm7, %v5188_v46, %v5196_v30 }
 0x354   : > { %v5214_v1 = vsel %vm283_vm7, %v5205_v28, %v5213_v57  ;;  %v5243_v18 = vrot.slane %v5241_v51, 3  ;;  %v5246_v12 = vrot.slane %v5244_v54, 4  ;;  %v5250_v36 = vshrl.u32 %v5104_v4, 16 }
 0x355   : > { %v5235_v5 = vrot.slane %v5233_v14, 3  ;;  %v5253_v3 = vshll.u32 %v5104_v4, 16  ;;  %v5258_v23 = vshrl.u32 %v13221_v43, 16  ;;  %v5261_v37 = vshll.u32 %v13221_v43, 16 }
 0x356   : > { %v5267_v62 = vshrl.u32 %v5106_v35, 16  ;;  %v5270_v16 = vshll.u32 %v5106_v35, 16  ;;  %v5275_v31 = vshrl.u32 %v13214_v42, 16  ;;  %v5278_v9 = vshll.u32 %v13214_v42, 16 }
 0x357   : > { %v5247_v21 = vor.u32 %v5246_v12, %v5243_v18  ;;  %v5252_v59 = vrot.slane %v5250_v36, 3  ;;  %v5255_v7 = vrot.slane %v5253_v3, 4  ;;  %v5260_v43 = vrot.slane %v5258_v23, 3 }
 0x358   : > { %v5269_v46 = vrot.slane %v5267_v62, 3  ;;  %v5272_v30 = vrot.slane %v5270_v16, 4  ;;  %v5277_v28 = vrot.slane %v5275_v31, 3  ;;  %v5280_v57 = vrot.slane %v5278_v9, 4  ;;  %v5114_v62 = vld [vmem:[#allocation2 + $0xc0] sm:$0xf8] }
 0x359   : > { %v5292_v51 = vshrl.u32 %v13245_v55, 16  ;;  %v5295_v54 = vshll.u32 %v13245_v55, 16  ;;  %v5309_v4 = vshrl.u32 %v13238_v61, 16  ;;  %v5112_v55 = vld [vmem:[#allocation2 + $0xb0] sm:$0xf8] }
 0x35a   : > { %10935 = vmatmul.mubr.msk.bf16.vlgmr.msra.gmra.mrb[0].mxu1 %vm224_vm0, %v5163_v58  ;;  %v5222_v58 = vor.u32 %v5221_v10, %v5218_v41  ;;  %v5110_v41 = vld [vmem:[#allocation2 + $0xa0] sm:$0xf8]  ;;  %v5256_v10 = vor.u32 %v5255_v7, %v5252_v59  ;;  %v5318_v31 = vshrl.u32 %v5112_v55, 16  ;;  %v5321_v9 = vshll.u32 %v5112_v55, 16 }
 0x35b   : > { %10967 = vmatpush3.bf16.msra.mxu1 %v13186_v24  ;;  %10938 = vmatprep.mubr.msk.bf16.mxu1 %vm224_vm0, %v5180_v27  ;;  %v5236_v24 = vshll.u32 %v5102_v32, 16  ;;  %v5263_v32 = vrot.slane %v5261_v37, 4  ;;  %v5294_v12 = vrot.slane %v5292_v51, 3  ;;  %v5297_v35 = vrot.slane %v5295_v54, 4 }
 0x35c   : > { %10968 = vmatprep.subr.bf16.mxu1 %v11845_v22  ;;  %v5311_v23 = vrot.slane %v5309_v4, 3  ;;  %v5338_v59 = vshll.u32 %v5114_v62, 16  ;;  %v5343_v7 = vshrl.u32 %v13262_v52, 16 }
 0x35d   : > { %v5238_v0 = vrot.slane %v5236_v24, 4 }
 0x35e   : > { %v5345_v51 = vrot.slane %v5343_v7, 3 }
 0x35f   : > { %10969 = vmatpush3.bf16.msra.mxu1 %v11845_v22  ;;  %v5230_v22 = vor.u32 %v5229_v13, %v5226_v6  ;;  %v5239_v27 = vor.u32 %v5238_v0, %v5235_v5  ;;  %v5264_v6 = vor.u32 %v5263_v32, %v5260_v43  ;;  %v5273_v13 = vor.u32 %v5272_v30, %v5269_v46 }
 0x360   : > { %10970 = vmatprep.subr.bf16.mxu1 %v11846_v39  ;;  %v5312_v5 = vshll.u32 %v13238_v61, 16  ;;  %v5298_v61 = vor.u32 %v5297_v35, %v5294_v12  ;;  %v5346_v43 = vshll.u32 %v13262_v52, 16  ;;  %v5320_v30 = vrot.slane %v5318_v31, 3  ;;  %v5118_v52 = vld [vmem:[#allocation2 + $0xe0] sm:$0xf8] }
 0x361   : > { %v5231_v20 = vsel %vm283_vm7, %v5222_v58, %v5230_v22  ;;  %v5248_v42 = vsel %vm283_vm7, %v5239_v27, %v5247_v21  ;;  %v5265_v58 = vsel %vm283_vm7, %v5256_v10, %v5264_v6  ;;  %v5326_v27 = vshrl.u32 %v13269_v8, 16  ;;  %v5120_v31 = vld [vmem:[#allocation2 + $0xf0] sm:$0xf8] }
 0x362   : > { %10939 = vmatmul.mubr.msk.bf16.gmra.mrb[4].mxu1 %vm224_vm0, %v5197_v53  ;;  %v5301_v53 = vshrl.u32 %v5110_v41, 16  ;;  %v5314_v37 = vrot.slane %v5312_v5, 4  ;;  %v5329_v21 = vshll.u32 %v13269_v8, 16  ;;  %v5348_v54 = vrot.slane %v5346_v43, 4 }
 0x363   : > { %10942 = vmatprep.mubr.msk.bf16.mxu1 %vm224_vm0, %v5214_v1  ;;  %10971 = vmatpush3.bf16.msra.mxu1 %v11846_v39  ;;  %v5108_v39 = vld [vmem:[#allocation2 + $0x90] sm:$0xf8]  ;;  %v5304_v1 = vshll.u32 %v5110_v41, 16  ;;  %v5377_v12 = vshrl.u32 %v13286_v50, 16  ;;  %v5380_v35 = vshll.u32 %v13286_v50, 16  ;;  %v6000_v50 = vshll.u32 %v13095_v40, 16 }
 0x364   : > { %10972 = vmatprep.subr.bf16.mxu1 %v11847_v47  ;;  %v5284_v14 = vshrl.u32 %v5108_v39, 16  ;;  %v5287_v24 = vshll.u32 %v5108_v39, 16  ;;  %v5303_v36 = vrot.slane %v5301_v53, 3  ;;  %v5315_v39 = vor.u32 %v5314_v37, %v5311_v23  ;;  %v5116_v41 = vld [vmem:[#allocation2 + $0xd0] sm:$0xf8] }
 0x365   : > { %v5306_v3 = vrot.slane %v5304_v1, 4  ;;  %v5352_v10 = vshrl.u32 %v5116_v41, 16  ;;  %v5355_v6 = vshll.u32 %v5116_v41, 16  ;;  %v5349_v5 = vor.u32 %v5348_v54, %v5345_v51  ;;  %v5972_v37 = vld [vmem:[#allocation2 + $0x8] sm:$0x1f] }
 0x366   : > { %v5286_v0 = vrot.slane %v5284_v14, 3  ;;  %v5289_v18 = vrot.slane %v5287_v24, 4  ;;  %v5340_v24 = vrot.slane %v5338_v59, 4  ;;  %v6008_v59 = vshll.u32 %v5972_v37, 16 }
 0x367   : > { %10973 = vmatpush3.bf16.msra.mxu1 %v11847_v47  ;;  %v5281_v47 = vor.u32 %v5280_v57, %v5277_v28  ;;  %v5307_v32 = vor.u32 %v5306_v3, %v5303_v36  ;;  %v5323_v28 = vrot.slane %v5321_v9, 4  ;;  %v5328_v57 = vrot.slane %v5326_v27, 3 }
 0x368   : > { %11006 = vmatprep.subr.bf16.mxu1 %v13351_v26  ;;  %v5290_v16 = vor.u32 %v5289_v18, %v5286_v0  ;;  %v5369_v0 = vshrl.u32 %v5118_v52, 16  ;;  %v5372_v18 = vshll.u32 %v5118_v52, 16  ;;  %v5997_v9 = vshrl.u32 %v13095_v40, 16 }
 0x369   : > { %v5282_v22 = vsel %vm283_vm7, %v5273_v13, %v5281_v47  ;;  %v5316_v8 = vsel %vm283_vm7, %v5307_v32, %v5315_v39  ;;  %v5360_v13 = vshrl.u32 %v13292_v15, 16  ;;  %v5363_v47 = vshll.u32 %v13292_v15, 16 }
 0x36a   : > { %10943 = vmatmul.mubr.msk.bf16.gmra.mrb[8].mxu1 %vm224_vm0, %v5231_v20  ;;  %v5335_v20 = vshrl.u32 %v5114_v62, 16  ;;  %v5299_v46 = vsel %vm283_vm7, %v5290_v16, %v5298_v61  ;;  %v5324_v53 = vor.u32 %v5323_v28, %v5320_v30  ;;  %v5371_v15 = vrot.slane %v5369_v0, 3 }
 0x36b   : > { %10946 = vmatprep.mubr.msk.bf16.mxu1 %vm224_vm0, %v5248_v42  ;;  %v5331_v42 = vrot.slane %v5329_v21, 4  ;;  %v5362_v55 = vrot.slane %v5360_v13, 3  ;;  %v5365_v36 = vrot.slane %v5363_v47, 4  ;;  %v5374_v62 = vrot.slane %v5372_v18, 4  ;;  %v5974_v47 = vld [vmem:[#allocation2 + $0x28] sm:$0x1f] }
 0x36c   : > { %v5337_v14 = vrot.slane %v5335_v20, 3  ;;  %v5379_v16 = vrot.slane %v5377_v12, 3  ;;  %v5382_v61 = vrot.slane %v5380_v35, 4  ;;  %v6005_v20 = vshrl.u32 %v5972_v37, 16 }
 0x36d   : > { %v5332_v1 = vor.u32 %v5331_v42, %v5328_v57  ;;  %v5366_v21 = vor.u32 %v5365_v36, %v5362_v55  ;;  %v5386_v7 = vshrl.u32 %v5120_v31, 16  ;;  %v5389_v43 = vshll.u32 %v5120_v31, 16 }
 0x36e   : > { %v5341_v4 = vor.u32 %v5340_v24, %v5337_v14  ;;  %v5394_v32 = vshrl.u32 %v13308_v34, 16  ;;  %v5397_v39 = vshll.u32 %v13308_v34, 16  ;;  %v5383_v30 = vor.u32 %v5382_v61, %v5379_v16  ;;  %v5973_v24 = vld [vmem:[#allocation2 + $0x18] sm:$0x1f]  ;;  %v5976_v61 = vld [vmem:[#allocation2 + $0x48] sm:$0x1f] }
 0x36f   : > { %v5333_v3 = vsel %vm283_vm7, %v5324_v53, %v5332_v1  ;;  %v5999_v28 = vrot.slane %v5997_v9, 4  ;;  %v6002_v42 = vrot.slane %v6000_v50, 5  ;;  %v6007_v14 = vrot.slane %v6005_v20, 4 }
 0x370   : > { %v5350_v23 = vsel %vm283_vm7, %v5341_v4, %v5349_v5  ;;  %v6010_v40 = vrot.slane %v6008_v59, 5  ;;  %v5388_v51 = vrot.slane %v5386_v7, 3  ;;  %v5391_v54 = vrot.slane %v5389_v43, 4 }
 0x371   : > { %v5396_v41 = vrot.slane %v5394_v32, 3  ;;  %v6017_v34 = vshll.u32 %v13131_v29, 16  ;;  %v6025_v13 = vshll.u32 %v5973_v24, 16  ;;  %v6003_v53 = vor.u32 %v6002_v42, %v5999_v28 }
 0x372   : > { %10947 = vmatmul.mubr.msk.bf16.gmra.mrb[12].mxu1 %vm224_vm0, %v5265_v58  ;;  %v5354_v58 = vrot.slane %v5352_v10, 3  ;;  %v6014_v10 = vshrl.u32 %v13131_v29, 16  ;;  %v6011_v1 = vor.u32 %v6010_v40, %v6007_v14  ;;  %v5392_v4 = vor.u32 %v5391_v54, %v5388_v51  ;;  %v5977_v14 = vld [vmem:[#allocation2 + $0x58] sm:$0x1f] }
 0x373   : > { %10950 = vmatprep.mubr.msk.bf16.mxu1 %vm224_vm0, %v5282_v22  ;;  %v5357_v22 = vrot.slane %v5355_v6, 4  ;;  %v6022_v6 = vshrl.u32 %v5973_v24, 16  ;;  %v6031_v0 = vshrl.u32 %v13136_v49, 16  ;;  %v6034_v18 = vshll.u32 %v13136_v49, 16 }
 0x374   : > { %v6039_v12 = vshrl.u32 %v5974_v47, 16  ;;  %v6042_v35 = vshll.u32 %v5974_v47, 16  ;;  %v6027_v36 = vrot.slane %v6025_v13, 5  ;;  %v6012_v29 = vsel %vm1370_vm10, %v6003_v53, %v6011_v1 }
 0x375   : > { %v5358_v27 = vor.u32 %v5357_v22, %v5354_v58  ;;  %v6016_v58 = vrot.slane %v6014_v10, 4  ;;  %v6019_v22 = vrot.slane %v6017_v34, 5  ;;  %v6024_v55 = vrot.slane %v6022_v6, 4  ;;  %v5978_v34 = vld [vmem:[#allocation2 + $0x68] sm:$0x1f]  ;;  %v11850_v6 = vld [vmem:[%s14251_s3 + $0x70] sm:$0xff]  }
 0x376   : > { %v6033_v37 = vrot.slane %v6031_v0, 4  ;;  %v6044_v16 = vrot.slane %v6042_v35, 5  ;;  %v6048_v9 = vshrl.u32 %v13166_v11, 16  ;;  %v6051_v50 = vshll.u32 %v13166_v11, 16 }
 0x377   : > { %v5367_v57 = vsel %vm283_vm7, %v5358_v27, %v5366_v21  ;;  %v6020_v49 = vor.u32 %v6019_v22, %v6016_v58  ;;  %v6028_v31 = vor.u32 %v6027_v36, %v6024_v55  ;;  %v6065_v20 = vshrl.u32 %v13158_v2, 16  ;;  %v11851_v58 = vld [vmem:[%s14251_s3 + $0x78] sm:$0xff]  }
 0x378   : > { %v6068_v59 = vshll.u32 %v13158_v2, 16  ;;  %v6073_v7 = vshrl.u32 %v5976_v61, 16  ;;  %v6076_v43 = vshll.u32 %v5976_v61, 16  ;;  %v6050_v28 = vrot.slane %v6048_v9, 4  ;;  %v5979_v36 = vld [vmem:[#allocation2 + $0x78] sm:$0x1f] }
 0x379   : > { %v6067_v40 = vrot.slane %v6065_v20, 4  ;;  %v6093_v10 = vshll.u32 %v5977_v14, 16  ;;  %v6110_v0 = vshll.u32 %v5978_v34, 16  ;;  %v6119_v61 = vshll.u32 %v13223_v19, 16  ;;  %v13431_v9 = vld [vmem:[%s14251_s3 + $0x80] sm:$0xff]  }
 0x37a   : > { %10951 = vmatmul.mubr.msk.bf16.gmra.mrb[16].mxu1 %vm224_vm0, %v5299_v46  ;;  %v5375_v46 = vor.u32 %v5374_v62, %v5371_v15  ;;  %v6036_v15 = vrot.slane %v6034_v18, 5  ;;  %v6041_v62 = vrot.slane %v6039_v12, 4  ;;  %v6070_v24 = vrot.slane %v6068_v59, 5 }
 0x37b   : > { %10954 = vmatprep.mubr.msk.bf16.mxu1 %vm224_vm0, %v5316_v8  ;;  %v5399_v8 = vrot.slane %v5397_v39, 4  ;;  %v6075_v51 = vrot.slane %v6073_v7, 4  ;;  %v6078_v54 = vrot.slane %v6076_v43, 5  ;;  %v6095_v35 = vrot.slane %v6093_v10, 5 }
 0x37c   : > { %v5384_v52 = vsel %vm283_vm7, %v5375_v46, %v5383_v30  ;;  %v6037_v32 = vor.u32 %v6036_v15, %v6033_v37  ;;  %v6045_v39 = vor.u32 %v6044_v16, %v6041_v62  ;;  %v6029_v46 = vsel %vm1370_vm10, %v6020_v49, %v6028_v31  ;;  %v11849_v30 = vld [vmem:[%s14251_s3 + $0x68] sm:$0xff]  }
 0x37d   : > { %v5400_v5 = vor.u32 %v5399_v8, %v5396_v41  ;;  %v6082_v41 = vshrl.u32 %v13198_v38, 16  ;;  %v6085_v8 = vshll.u32 %v13198_v38, 16  ;;  %v6071_v53 = vor.u32 %v6070_v24, %v6067_v40  ;;  %v5980_v37 = vld [vmem:[#allocation2 + $0x88] sm:$0x1f] }
 0x37e   : > { %v6046_v2 = vsel %vm1370_vm10, %v6037_v32, %v6045_v39  ;;  %v6079_v1 = vor.u32 %v6078_v54, %v6075_v51  ;;  %v6116_v16 = vshrl.u32 %v13223_v19, 16  ;;  %v6124_v49 = vshrl.u32 %v5979_v36, 16  ;;  %v5982_v54 = vld [vmem:[#allocation2 + $0xa8] sm:$0x1f] }
 0x37f   : > { %v6084_v18 = vrot.slane %v6082_v41, 4  ;;  %v6087_v38 = vrot.slane %v6085_v8, 5  ;;  %v6127_v31 = vshll.u32 %v5979_v36, 16  ;;  %v6144_v20 = vshll.u32 %v5980_v37, 16 }
 0x380   : > { %v6080_v55 = vsel %vm1370_vm10, %v6071_v53, %v6079_v1  ;;  %v6118_v19 = vrot.slane %v6116_v16, 4  ;;  %v6121_v32 = vrot.slane %v6119_v61, 5  ;;  %v6126_v39 = vrot.slane %v6124_v49, 4 }
 0x381   : > { %v6088_v15 = vor.u32 %v6087_v38, %v6084_v18  ;;  %v6153_v40 = vshll.u32 %v13247_v25, 16  ;;  %v6167_v10 = vshrl.u32 %v13240_v33, 16 }
 0x382   : > { %10955 = vmatmul.mubr.msk.bf16.gmra.mrb[20].mxu1 %vm224_vm0, %v5333_v3  ;;  %v5401_v3 = vsel %vm283_vm7, %v5392_v4, %v5400_v5  ;;  %v6102_v4 = vshll.u32 %v13191_v56, 16  ;;  %v6107_v5 = vshrl.u32 %v5978_v34, 16  ;;  %v6170_v34 = vshll.u32 %v13240_v33, 16 }
 0x383   : > { %10958 = vmatprep.mubr.msk.bf16.mxu1 %vm224_vm0, %v5350_v23  ;;  %v5975_v23 = vld [vmem:[#allocation2 + $0x38] sm:$0x1f]  ;;  %v6155_v53 = vrot.slane %v6153_v40, 5 }
 0x384   : > { %v6056_v27 = vshrl.u32 %v5975_v23, 16  ;;  %v6059_v21 = vshll.u32 %v5975_v23, 16  ;;  %v6112_v23 = vrot.slane %v6110_v0, 5  ;;  %v6169_v0 = vrot.slane %v6167_v10, 4 }
 0x385   : > { %v6172_v18 = vrot.slane %v6170_v34, 5 }
 0x386   : > { %v6058_v42 = vrot.slane %v6056_v27, 4  ;;  %v6061_v11 = vrot.slane %v6059_v21, 5  ;;  %v6136_v27 = vshll.u32 %v13216_v63, 16  ;;  %v6141_v21 = vshrl.u32 %v5980_v37, 16 }
 0x388   : > { %v6062_v47 = vor.u32 %v6061_v11, %v6058_v42  ;;  %v6143_v42 = vrot.slane %v6141_v21, 4  ;;  %v6146_v11 = vrot.slane %v6144_v20, 5 }
 0x38a   : > { %10959 = vmatmul.mubr.msk.bf16.gmra.mrb[24].mxu1 %vm224_vm0, %v5367_v57  ;;  %v6053_v57 = vrot.slane %v6051_v50, 5  ;;  %v6133_v50 = vshrl.u32 %v13216_v63, 16 }
 0x38b   : > { %10962 = vmatprep.mubr.msk.bf16.mxu1 %vm224_vm0, %v5384_v52  ;;  %v6090_v52 = vshrl.u32 %v5977_v14, 16  ;;  %v6150_v14 = vshrl.u32 %v13247_v25, 16 }
 0x38c   : > { %v6054_v13 = vor.u32 %v6053_v57, %v6050_v28  ;;  %v6135_v28 = vrot.slane %v6133_v50, 4  ;;  %v6138_v57 = vrot.slane %v6136_v27, 5  ;;  %v5985_v27 = vld [vmem:[#allocation2 + $0xd8] sm:$0x1f] }
 0x38d   : > { %v6092_v12 = vrot.slane %v6090_v52, 4  ;;  %v6147_v52 = vor.u32 %v6146_v11, %v6143_v42  ;;  %v6235_v42 = vshrl.u32 %v13288_v44, 16  ;;  %v6238_v11 = vshll.u32 %v13288_v44, 16 }
 0x38e   : > { %v6063_v22 = vsel %vm1370_vm10, %v6054_v13, %v6062_v47  ;;  %v6139_v8 = vor.u32 %v6138_v57, %v6135_v28  ;;  %v6178_v13 = vshll.u32 %v5982_v54, 16  ;;  %v6152_v47 = vrot.slane %v6150_v14, 4 }
 0x38f   : > { %v6096_v62 = vor.u32 %v6095_v35, %v6092_v12  ;;  %v5984_v35 = vld [vmem:[#allocation2 + $0xc8] sm:$0x1f]  ;;  %v6240_v10 = vrot.slane %v6238_v11, 5 }
 0x390   : > { %v6148_v25 = vsel %vm1370_vm10, %v6139_v8, %v6147_v52  ;;  %v6180_v12 = vrot.slane %v6178_v13, 5  ;;  %v6156_v33 = vor.u32 %v6155_v53, %v6152_v47  ;;  %v6212_v37 = vshll.u32 %v5984_v35, 16  ;;  %v6533_v8 = vld [vmem:[#allocation2 + $0x10] sm:$0xf8]  ;;  %v13463_v13 = vld [vmem:[#allocation2 + $0x18] sm:$0xf] }
 0x391   : > { %v6097_v43 = vsel %vm1370_vm10, %v6088_v15, %v6096_v62  ;;  %v6173_v15 = vor.u32 %v6172_v18, %v6169_v0  ;;  %v6237_v52 = vrot.slane %v6235_v42, 4  ;;  %v6252_v53 = vshrl.u32 %v13310_v60, 16  ;;  %v6541_v42 = vld [vmem:[#allocation2 + $0x50] sm:$0xf8] }
 0x392   : > { %10963 = vmatmul.mubr.msk.bf16.gmra.mrb[28].mxu1 %vm224_vm0, %v5401_v3  ;;  %v6109_v3 = vrot.slane %v6107_v5, 4  ;;  %v5983_v5 = vld [vmem:[#allocation2 + $0xb8] sm:$0x1f]  ;;  %v6582_v0 = vshrl.u32 %v13463_v13, 16  ;;  %v6585_v18 = vshll.u32 %v13463_v13, 16 }
 0x393   : > { %10974 = vmatprep.mubr.msk.bf16.mxu1 %vm224_vm0, %v6012_v29  ;;  %v6104_v29 = vrot.slane %v6102_v4, 5  ;;  %v6192_v36 = vshrl.u32 %v5983_v5, 16 }
 0x394   : > { %v6113_v7 = vor.u32 %v6112_v23, %v6109_v3  ;;  %v6204_v3 = vshll.u32 %v13264_v48, 16  ;;  %v6209_v23 = vshrl.u32 %v5984_v35, 16 }
 0x396   : > { %v6206_v20 = vrot.slane %v6204_v3, 5  ;;  %v6584_v3 = vrot.slane %v6582_v0, 3 }
 0x39a   : > { %10975 = vmatmul.mubr.msk.bf16.vlgmr.msra.gmra.mrb[0].mxu1 %vm224_vm0, %v6029_v46  ;;  %v6129_v46 = vrot.slane %v6127_v31, 5  ;;  %v6194_v31 = vrot.slane %v6192_v36, 4 }
 0x39b   : > { %11007 = vmatpush3.bf16.msra.mxu1 %v13351_v26  ;;  %10978 = vmatprep.mubr.msk.bf16.mxu1 %vm224_vm0, %v6046_v2  ;;  %v6099_v26 = vshrl.u32 %v13191_v56, 16  ;;  %v6122_v2 = vor.u32 %v6121_v32, %v6118_v19  ;;  %v6226_v19 = vshrl.u32 %v5985_v27, 16  ;;  %v6229_v32 = vshll.u32 %v5985_v27, 16 }
 0x39c   : > { %11008 = vmatprep.subr.bf16.mxu1 %v11849_v30  ;;  %v6130_v41 = vor.u32 %v6129_v46, %v6126_v39  ;;  %v5986_v39 = vld [vmem:[#allocation2 + $0xe8] sm:$0x1f] }
 0x39d   : > { %v6101_v56 = vrot.slane %v6099_v26, 4  ;;  %v6246_v14 = vshll.u32 %v5986_v39, 16 }
 0x39e   : > { %v6131_v4 = vsel %vm1370_vm10, %v6122_v2, %v6130_v41  ;;  %v5987_v41 = vld [vmem:[#allocation2 + $0xf8] sm:$0x1f] }
 0x39f   : > { %11009 = vmatpush3.bf16.msra.mxu1 %v11849_v30  ;;  %v6105_v59 = vor.u32 %v6104_v29, %v6101_v56  ;;  %v5981_v30 = vld [vmem:[#allocation2 + $0x98] sm:$0x1f]  ;;  %v6195_v56 = vshll.u32 %v5983_v5, 16  ;;  %v6201_v29 = vshrl.u32 %v13264_v48, 16  ;;  %v6218_v48 = vshrl.u32 %v13294_v45, 16 }
 0x3a0   : > { %11010 = vmatprep.subr.bf16.mxu1 %v11850_v6  ;;  %v6158_v24 = vshrl.u32 %v5981_v30, 16  ;;  %v6161_v51 = vshll.u32 %v5981_v30, 16  ;;  %v6577_v5 = vshll.u32 %v6533_v8, 16 }
 0x3a1   : > { %v6114_v63 = vsel %vm1370_vm10, %v6105_v59, %v6113_v7  ;;  %v6197_v50 = vrot.slane %v6195_v56, 5  ;;  %v6203_v21 = vrot.slane %v6201_v29, 4  ;;  %v6214_v59 = vrot.slane %v6212_v37, 5  ;;  %v13471_v56 = vld [vmem:[#allocation2 + $0x28] sm:$0xf] }
 0x3a2   : > { %10979 = vmatmul.mubr.msk.bf16.gmra.mrb[4].mxu1 %vm224_vm0, %v6063_v22  ;;  %v6160_v1 = vrot.slane %v6158_v24, 4  ;;  %v6163_v26 = vrot.slane %v6161_v51, 5  ;;  %v6184_v22 = vshrl.u32 %v13271_v17, 16  ;;  %v6220_v40 = vrot.slane %v6218_v48, 4 }
 0x3a3   : > { %10982 = vmatprep.mubr.msk.bf16.mxu1 %vm224_vm0, %v6080_v55  ;;  %11011 = vmatpush3.bf16.msra.mxu1 %v11850_v6  ;;  %v6175_v6 = vshrl.u32 %v5982_v54, 16  ;;  %v6187_v55 = vshll.u32 %v13271_v17, 16  ;;  %v6211_v17 = vrot.slane %v6209_v23, 4  ;;  %v6198_v30 = vor.u32 %v6197_v50, %v6194_v31  ;;  %v13478_v31 = vld [vmem:[#allocation2 + $0x38] sm:$0xf] }
 0x3a4   : > { %11012 = vmatprep.subr.bf16.mxu1 %v11851_v58  ;;  %v6186_v61 = vrot.slane %v6184_v22, 4  ;;  %v6207_v28 = vor.u32 %v6206_v20, %v6203_v21  ;;  %v6228_v51 = vrot.slane %v6226_v19, 4  ;;  %v6231_v54 = vrot.slane %v6229_v32, 5 }
 0x3a5   : > { %v6177_v38 = vrot.slane %v6175_v6, 4  ;;  %v6189_v49 = vrot.slane %v6187_v55, 5  ;;  %v6215_v57 = vor.u32 %v6214_v59, %v6211_v17  ;;  %v6248_v6 = vrot.slane %v6246_v14, 5 }
 0x3a6   : > { %v6232_v47 = vor.u32 %v6231_v54, %v6228_v51  ;;  %v6579_v29 = vrot.slane %v6577_v5, 4  ;;  %v6587_v23 = vrot.slane %v6585_v18, 4  ;;  %v6619_v48 = vshll.u32 %v13478_v31, 16  ;;  %v11853_v18 = vld [vmem:[%s14251_s3 + $0x88] sm:$0xff]  }
 0x3a7   : > { %11013 = vmatpush3.bf16.msra.mxu1 %v11851_v58  ;;  %v6164_v58 = vor.u32 %v6163_v26, %v6160_v1  ;;  %v6181_v62 = vor.u32 %v6180_v12, %v6177_v38  ;;  %v6190_v46 = vor.u32 %v6189_v49, %v6186_v61  ;;  %v6255_v1 = vshll.u32 %v13310_v60, 16 }
 0x3a8   : > { %11046 = vmatprep.subr.bf16.mxu1 %v13431_v9  ;;  %v6260_v26 = vshrl.u32 %v5987_v41, 16  ;;  %v6241_v38 = vor.u32 %v6240_v10, %v6237_v52  ;;  %v6599_v61 = vshrl.u32 %v13471_v56, 16  ;;  %v6602_v49 = vshll.u32 %v13471_v56, 16 }
 0x3a9   : > { %v6165_v16 = vsel %vm1370_vm10, %v6156_v33, %v6164_v58  ;;  %v6182_v7 = vsel %vm1370_vm10, %v6173_v15, %v6181_v62  ;;  %v6199_v2 = vsel %vm1370_vm10, %v6190_v46, %v6198_v30  ;;  %v6535_v33 = vld [vmem:[#allocation2 + $0x20] sm:$0xf8]  ;;  %v6254_v58 = vrot.slane %v6252_v53, 4  ;;  %v6537_v15 = vld [vmem:[#allocation2 + $0x30] sm:$0xf8] }
 0x3aa   : > { %10983 = vmatmul.mubr.msk.bf16.gmra.mrb[8].mxu1 %vm224_vm0, %v6097_v43  ;;  %v6221_v43 = vshll.u32 %v13294_v45, 16  ;;  %v6216_v45 = vsel %vm1370_vm10, %v6207_v28, %v6215_v57  ;;  %v6257_v22 = vrot.slane %v6255_v1, 5  ;;  %v6262_v55 = vrot.slane %v6260_v26, 4  ;;  %v6539_v28 = vld [vmem:[#allocation2 + $0x40] sm:$0xf8] }
 0x3ab   : > { %10986 = vmatprep.mubr.msk.bf16.mxu1 %vm224_vm0, %v6114_v63  ;;  %v6243_v63 = vshrl.u32 %v5986_v39, 16  ;;  %v6591_v62 = vshrl.u32 %v6535_v33, 16  ;;  %v6588_v20 = vor.u32 %v6587_v23, %v6584_v3  ;;  %v6608_v17 = vshrl.u32 %v6537_v15, 16  ;;  %v13484_v57 = vld [vmem:[#allocation2 + $0x48] sm:$0xf]  ;;  %v11854_v23 = vld [vmem:[%s14251_s3 + $0x90] sm:$0xff]  }
 0x3ac   : > { %v6223_v24 = vrot.slane %v6221_v43, 5  ;;  %v6258_v50 = vor.u32 %v6257_v22, %v6254_v58  ;;  %v6611_v59 = vshll.u32 %v6537_v15, 16  ;;  %v6601_v32 = vrot.slane %v6599_v61, 3  ;;  %v6543_v1 = vld [vmem:[#allocation2 + $0x60] sm:$0xf8] }
 0x3ad   : > { %v6245_v34 = vrot.slane %v6243_v63, 4  ;;  %v6593_v43 = vrot.slane %v6591_v62, 3  ;;  %v6604_v39 = vrot.slane %v6602_v49, 4  ;;  %v6610_v11 = vrot.slane %v6608_v17, 3  ;;  %v13495_v26 = vld [vmem:[#allocation2 + $0x68] sm:$0xf] }
 0x3ae   : > { %v6224_v44 = vor.u32 %v6223_v24, %v6220_v40  ;;  %v6613_v63 = vrot.slane %v6611_v59, 4  ;;  %v6621_v40 = vrot.slane %v6619_v48, 4  ;;  %v13487_v24 = vld [vmem:[#allocation2 + $0x58] sm:$0xf]  ;;  %v6642_v52 = vshrl.u32 %v6541_v42, 16 }
 0x3af   : > { %v6249_v12 = vor.u32 %v6248_v6, %v6245_v34  ;;  %v6605_v54 = vor.u32 %v6604_v39, %v6601_v32  ;;  %v6645_v10 = vshll.u32 %v6541_v42, 16  ;;  %v6650_v34 = vshrl.u32 %v13487_v24, 16  ;;  %v6545_v22 = vld [vmem:[#allocation2 + $0x70] sm:$0xf8]  ;;  %v13506_v3 = vld [vmem:[#allocation2 + $0x78] sm:$0xf] }
 0x3b0   : > { %v6233_v35 = vsel %vm1370_vm10, %v6224_v44, %v6232_v47  ;;  %v6653_v6 = vshll.u32 %v13487_v24, 16  ;;  %v6614_v44 = vor.u32 %v6613_v63, %v6610_v11  ;;  %v6679_v61 = vshll.u32 %v6545_v22, 16  ;;  %v11855_v59 = vld [vmem:[%s14251_s3 + $0x98] sm:$0xff]   ;;  %v6549_v32 = vld [vmem:[#allocation2 + $0x90] sm:$0xf8] }
 0x3b1   : > { %v6250_v37 = vsel %vm1370_vm10, %v6241_v38, %v6249_v12  ;;  %v6644_v38 = vrot.slane %v6642_v52, 3  ;;  %v6647_v12 = vrot.slane %v6645_v10, 4  ;;  %v6684_v49 = vshrl.u32 %v13506_v3, 16  ;;  %v13521_v42 = vld [vmem:[#allocation2 + $0x98] sm:$0xf] }
 0x3b2   : > { %10987 = vmatmul.mubr.msk.bf16.gmra.mrb[12].mxu1 %vm224_vm0, %v6131_v4  ;;  %v6263_v4 = vshll.u32 %v5987_v41, 16  ;;  %v6633_v41 = vshrl.u32 %v13484_v57, 16  ;;  %v6721_v52 = vshll.u32 %v13521_v42, 16 }
 0x3b3   : > { %10990 = vmatprep.mubr.msk.bf16.mxu1 %vm224_vm0, %v6148_v25  ;;  %v6574_v25 = vshrl.u32 %v6533_v8, 16  ;;  %v6636_v8 = vshll.u32 %v13484_v57, 16  ;;  %v6648_v62 = vor.u32 %v6647_v12, %v6644_v38 }
 0x3b4   : > { %v6265_v36 = vrot.slane %v6263_v4, 5  ;;  %v6635_v5 = vrot.slane %v6633_v41, 3  ;;  %v6713_v41 = vshll.u32 %v6549_v32, 16  ;;  %v6723_v38 = vrot.slane %v6721_v52, 4 }
 0x3b5   : > { %v6576_v60 = vrot.slane %v6574_v25, 3  ;;  %v6638_v0 = vrot.slane %v6636_v8, 4  ;;  %v6718_v8 = vshrl.u32 %v13521_v42, 16 }
 0x3b6   : > { %v6266_v27 = vor.u32 %v6265_v36, %v6262_v55  ;;  %v6659_v55 = vshrl.u32 %v6543_v1, 16  ;;  %v6662_v36 = vshll.u32 %v6543_v1, 16 }
 0x3b7   : > { %v6580_v21 = vor.u32 %v6579_v29, %v6576_v60  ;;  %v6667_v60 = vshrl.u32 %v13495_v26, 16  ;;  %v6670_v29 = vshll.u32 %v13495_v26, 16  ;;  %v6639_v15 = vor.u32 %v6638_v0, %v6635_v5 }
 0x3b8   : > { %v6267_v46 = vsel %vm1370_vm10, %v6258_v50, %v6266_v27  ;;  %v6687_v50 = vshll.u32 %v13506_v3, 16  ;;  %v6661_v27 = vrot.slane %v6659_v55, 3  ;;  %v6715_v0 = vrot.slane %v6713_v41, 4 }
 0x3b9   : > { %v6589_v30 = vsel %vm283_vm7, %v6580_v21, %v6588_v20  ;;  %v6664_v21 = vrot.slane %v6662_v36, 4  ;;  %v6669_v20 = vrot.slane %v6667_v60, 3  ;;  %v6672_v17 = vrot.slane %v6670_v29, 4  ;;  %v13542_v36 = vld [vmem:[#allocation2 + $0xb8] sm:$0xf] }
 0x3ba   : > { %10991 = vmatmul.mubr.msk.bf16.gmra.mrb[16].mxu1 %vm224_vm0, %v6165_v16  ;;  %v6594_v16 = vshll.u32 %v6535_v33, 16  ;;  %v6655_v33 = vrot.slane %v6653_v6, 4 }
 0x3bb   : > { %10994 = vmatprep.mubr.msk.bf16.mxu1 %vm224_vm0, %v6182_v7  ;;  %v6616_v7 = vshrl.u32 %v13478_v31, 16  ;;  %v6665_v11 = vor.u32 %v6664_v21, %v6661_v27  ;;  %v6673_v63 = vor.u32 %v6672_v17, %v6669_v20  ;;  %v6555_v17 = vld [vmem:[#allocation2 + $0xc0] sm:$0xf8] }
 0x3bc   : > { %v6596_v19 = vrot.slane %v6594_v16, 4 }
 0x3bd   : > { %v6618_v14 = vrot.slane %v6616_v7, 3  ;;  %v6674_v6 = vsel %vm283_vm7, %v6665_v11, %v6673_v63  ;;  %v6761_v11 = vshrl.u32 %v6555_v17, 16  ;;  %v6764_v63 = vshll.u32 %v6555_v17, 16  ;;  %v6563_v17 = vld [vmem:[#allocation2 + $0x100] sm:$0xf8] }
 0x3be   : > { %v6597_v51 = vor.u32 %v6596_v19, %v6593_v43  ;;  %v6547_v43 = vld [vmem:[#allocation2 + $0x80] sm:$0xf8]  ;;  %v13518_v19 = vld [vmem:[#allocation2 + $0x88] sm:$0xf] }
 0x3bf   : > { %v6622_v47 = vor.u32 %v6621_v40, %v6618_v14  ;;  %v6693_v14 = vshrl.u32 %v6547_v43, 16  ;;  %v6696_v40 = vshll.u32 %v6547_v43, 16 }
 0x3c0   : > { %v6606_v53 = vsel %vm283_vm7, %v6597_v51, %v6605_v54  ;;  %v6701_v51 = vshrl.u32 %v13518_v19, 16  ;;  %v6704_v54 = vshll.u32 %v13518_v19, 16 }
 0x3c1   : > { %v6623_v58 = vsel %vm283_vm7, %v6614_v44, %v6622_v47  ;;  %v6551_v44 = vld [vmem:[#allocation2 + $0xa0] sm:$0xf8]  ;;  %v6695_v47 = vrot.slane %v6693_v14, 3 }
 0x3c2   : > { %10995 = vmatmul.mubr.msk.bf16.gmra.mrb[20].mxu1 %vm224_vm0, %v6199_v2  ;;  %v6625_v2 = vshrl.u32 %v6539_v28, 16  ;;  %v6703_v1 = vrot.slane %v6701_v51, 3 }
 0x3c3   : > { %10998 = vmatprep.mubr.msk.bf16.mxu1 %vm224_vm0, %v6216_v45  ;;  %v6628_v45 = vshll.u32 %v6539_v28, 16  ;;  %v6689_v28 = vrot.slane %v6687_v50, 4 }
 0x3c4   : > { %v6627_v4 = vrot.slane %v6625_v2, 3  ;;  %v13529_v2 = vld [vmem:[%s14251_s3 + $0xa0] sm:$0xff]  }
 0x3c5   : > { %v6630_v25 = vrot.slane %v6628_v45, 4  ;;  %v6710_v45 = vshrl.u32 %v6549_v32, 16 }
 0x3c7   : > { %v6712_v5 = vrot.slane %v6710_v45, 3 }
 0x3ca   : > { %10999 = vmatmul.mubr.msk.bf16.gmra.mrb[24].mxu1 %vm224_vm0, %v6233_v35  ;;  %v6652_v35 = vrot.slane %v6650_v34, 3 }
 0x3cb   : > { %11002 = vmatprep.mubr.msk.bf16.mxu1 %vm224_vm0, %v6250_v37  ;;  %v6631_v37 = vor.u32 %v6630_v25, %v6627_v4  ;;  %v6706_v4 = vrot.slane %v6704_v54, 4  ;;  %v13534_v25 = vld [vmem:[#allocation2 + $0xa8] sm:$0xf] }
 0x3cc   : > { %v6656_v16 = vor.u32 %v6655_v33, %v6652_v35  ;;  %v6553_v35 = vld [vmem:[#allocation2 + $0xb0] sm:$0xf8]  ;;  %v6727_v33 = vshrl.u32 %v6551_v44, 16  ;;  %v6738_v55 = vshll.u32 %v13534_v25, 16 }
 0x3cd   : > { %v6640_v7 = vsel %vm283_vm7, %v6631_v37, %v6639_v15  ;;  %v6707_v29 = vor.u32 %v6706_v4, %v6703_v1  ;;  %v6744_v15 = vshrl.u32 %v6553_v35, 16 }
 0x3ce   : > { %v6657_v48 = vsel %vm283_vm7, %v6648_v62, %v6656_v16  ;;  %v6747_v62 = vshll.u32 %v6553_v35, 16  ;;  %v6752_v16 = vshrl.u32 %v13542_v36, 16  ;;  %v6740_v27 = vrot.slane %v6738_v55, 4  ;;  %v13564_v35 = vld [vmem:[#allocation2 + $0xf8] sm:$0xf] }
 0x3d0   : > { %v6749_v43 = vrot.slane %v6747_v62, 4  ;;  %v6754_v32 = vrot.slane %v6752_v16, 3  ;;  %v6820_v16 = vshrl.u32 %v13564_v35, 16 }
 0x3d2   : > { %11003 = vmatmul.mubr.msk.bf16.gmra.mrb[28].mxu1 %vm224_vm0, %v6267_v46  ;;  %v6681_v46 = vrot.slane %v6679_v61, 4  ;;  %v6729_v61 = vrot.slane %v6727_v33, 3 }
 0x3d3   : > { %11014 = vmatprep.mubr.msk.bf16.mxu1 %vm224_vm0, %v6589_v30  ;;  %v6686_v30 = vrot.slane %v6684_v49, 3 }
 0x3d5   : > { %v6690_v34 = vor.u32 %v6689_v28, %v6686_v30 }
 0x3da   : > { %11015 = vmatmul.mubr.msk.bf16.vlgmr.msra.gmra.mrb[0].mxu1 %vm224_vm0, %v6606_v53  ;;  %v6698_v53 = vrot.slane %v6696_v40, 4 }
 0x3db   : > { %11047 = vmatpush3.bf16.msra.mxu1 %v13431_v9  ;;  %11018 = vmatprep.mubr.msk.bf16.mxu1 %vm224_vm0, %v6623_v58  ;;  %v6676_v9 = vshrl.u32 %v6545_v22, 16  ;;  %v6730_v58 = vshll.u32 %v6551_v44, 16  ;;  %v6735_v22 = vshrl.u32 %v13534_v25, 16 }
 0x3dc   : > { %11048 = vmatprep.subr.bf16.mxu1 %v11853_v18  ;;  %v6699_v60 = vor.u32 %v6698_v53, %v6695_v47  ;;  %v6559_v53 = vld [vmem:[#allocation2 + $0xe0] sm:$0xf8] }
 0x3dd   : > { %v6678_v39 = vrot.slane %v6676_v9, 3  ;;  %v6755_v9 = vshll.u32 %v13542_v36, 16  ;;  %v6732_v49 = vrot.slane %v6730_v58, 4  ;;  %v6737_v50 = vrot.slane %v6735_v22, 3 }
 0x3de   : > { %v6708_v21 = vsel %vm283_vm7, %v6699_v60, %v6707_v29  ;;  %v6795_v33 = vshrl.u32 %v6559_v53, 16  ;;  %v6798_v58 = vshll.u32 %v6559_v53, 16 }
 0x3df   : > { %11049 = vmatpush3.bf16.msra.mxu1 %v11853_v18  ;;  %v6682_v10 = vor.u32 %v6681_v46, %v6678_v39  ;;  %v6720_v18 = vrot.slane %v6718_v8, 3  ;;  %v6757_v39 = vrot.slane %v6755_v9, 4  ;;  %v13551_v46 = vld [vmem:[#allocation2 + $0xd8] sm:$0xf]  ;;  %v6733_v30 = vor.u32 %v6732_v49, %v6729_v61 }
 0x3e0   : > { %11050 = vmatprep.subr.bf16.mxu1 %v11854_v23  ;;  %v6741_v28 = vor.u32 %v6740_v27, %v6737_v50  ;;  %v6786_v45 = vshrl.u32 %v13551_v46, 16  ;;  %v6789_v41 = vshll.u32 %v13551_v46, 16  ;;  %v6823_v9 = vshll.u32 %v13564_v35, 16 }
 0x3e1   : > { %v6691_v12 = vsel %vm283_vm7, %v6682_v10, %v6690_v34  ;;  %v6724_v37 = vor.u32 %v6723_v38, %v6720_v18  ;;  %v6758_v52 = vor.u32 %v6757_v39, %v6754_v32  ;;  %v6763_v34 = vrot.slane %v6761_v11, 3  ;;  %v13559_v18 = vld [vmem:[#allocation2 + $0xe8] sm:$0xf] }
 0x3e2   : > { %11019 = vmatmul.mubr.msk.bf16.gmra.mrb[4].mxu1 %vm224_vm0, %v6640_v7  ;;  %v6557_v7 = vld [vmem:[#allocation2 + $0xd0] sm:$0xf8]  ;;  %v6742_v10 = vsel %vm283_vm7, %v6733_v30, %v6741_v28  ;;  %v6803_v22 = vshrl.u32 %v13559_v18, 16  ;;  %v6806_v55 = vshll.u32 %v13559_v18, 16  ;;  %v6797_v61 = vrot.slane %v6795_v33, 3 }
 0x3e3   : > { %11022 = vmatprep.mubr.msk.bf16.mxu1 %vm224_vm0, %v6657_v48  ;;  %11051 = vmatpush3.bf16.msra.mxu1 %v11854_v23  ;;  %v6716_v23 = vor.u32 %v6715_v0, %v6712_v5  ;;  %v6746_v48 = vrot.slane %v6744_v15, 3  ;;  %v6778_v51 = vshrl.u32 %v6557_v7, 16  ;;  %v6781_v54 = vshll.u32 %v6557_v7, 16  ;;  %v13573_v39 = vld [vmem:[#allocation2 + $0x108] sm:$0xf] }
 0x3e4   : > { %11052 = vmatprep.subr.bf16.mxu1 %v11855_v59  ;;  %v6788_v5 = vrot.slane %v6786_v45, 3  ;;  %v6791_v0 = vrot.slane %v6789_v41, 4  ;;  %v6800_v49 = vrot.slane %v6798_v58, 4  ;;  %v6805_v50 = vrot.slane %v6803_v22, 3  ;;  %v11857_v22 = vld [vmem:[%s14251_s3 + $0xa8] sm:$0xff]  }
 0x3e5   : > { %v6725_v20 = vsel %vm283_vm7, %v6716_v23, %v6724_v37  ;;  %v6750_v8 = vor.u32 %v6749_v43, %v6746_v48  ;;  %v6780_v1 = vrot.slane %v6778_v51, 3  ;;  %v6783_v4 = vrot.slane %v6781_v54, 4 }
 0x3e6   : > { %v6792_v37 = vor.u32 %v6791_v0, %v6788_v5  ;;  %v6808_v27 = vrot.slane %v6806_v55, 4  ;;  %v6822_v43 = vrot.slane %v6820_v16, 3  ;;  %v6825_v32 = vrot.slane %v6823_v9, 4  ;;  %v13589_v0 = vld [vmem:[#allocation2 + $0x20] sm:$0xf0] }
 0x3e7   : > { %11053 = vmatpush3.bf16.msra.mxu1 %v11855_v59  ;;  %v13548_v59 = vld [vmem:[#allocation2 + $0xc8] sm:$0xf]  ;;  %v6759_v38 = vsel %vm283_vm7, %v6750_v8, %v6758_v52  ;;  %v6784_v23 = vor.u32 %v6783_v4, %v6780_v1  ;;  %v6801_v30 = vor.u32 %v6800_v49, %v6797_v61  ;;  %v6829_v11 = vshrl.u32 %v6563_v17, 16  ;;  %v13623_v61 = vld [vmem:[#allocation2 + $0x60] sm:$0xf0] }
 0x3e8   : > { %11086 = vmatprep.subr.bf16.mxu1 %v13529_v2  ;;  %v6769_v14 = vshrl.u32 %v13548_v59, 16  ;;  %v6772_v40 = vshll.u32 %v13548_v59, 16  ;;  %v6809_v28 = vor.u32 %v6808_v27, %v6805_v50  ;;  %v6826_v54 = vor.u32 %v6825_v32, %v6822_v43 }
 0x3e9   : > { %v6831_v41 = vrot.slane %v6829_v11, 3  ;;  %v7167_v1 = vrot.slane %v13463_v13, 4  ;;  %v7170_v33 = vrot.slane %v13471_v56, 4  ;;  %v7173_v13 = vrot.slane %v13478_v31, 4  ;;  %v13608_v56 = vld [vmem:[#allocation2 + $0x50] sm:$0xf0] }
 0x3ea   : > { %11023 = vmatmul.mubr.msk.bf16.gmra.mrb[8].mxu1 %vm224_vm0, %v6674_v6  ;;  %v6766_v6 = vrot.slane %v6764_v63, 4  ;;  %v6771_v44 = vrot.slane %v6769_v14, 3  ;;  %v6774_v47 = vrot.slane %v6772_v40, 4  ;;  %v6832_v63 = vshll.u32 %v6563_v17, 16  ;;  %v11858_v31 = vld [vmem:[%s14251_s3 + $0xb0] sm:$0xff]  }
 0x3eb   : > { %11026 = vmatprep.mubr.msk.bf16.mxu1 %vm224_vm0, %v6691_v12  ;;  %v6561_v12 = vld [vmem:[#allocation2 + $0xf0] sm:$0xf8]  ;;  %v6837_v14 = vshrl.u32 %v13573_v39, 16  ;;  %v6840_v40 = vshll.u32 %v13573_v39, 16  ;;  %v6810_v45 = vsel %vm283_vm7, %v6801_v30, %v6809_v28  ;;  %v7181_v49 = vrot.slane %v13623_v61, 4 }
 0x3ec   : > { %v6767_v60 = vor.u32 %v6766_v6, %v6763_v34  ;;  %v6775_v29 = vor.u32 %v6774_v47, %v6771_v44  ;;  %v6812_v15 = vshrl.u32 %v6561_v12, 16  ;;  %v6815_v62 = vshll.u32 %v6561_v12, 16  ;;  %v13582_v6 = vld [vmem:[#allocation2 + $0x10] sm:$0xf0]  ;;  %v13653_v11 = vld [vmem:[#allocation2 + $0xa0] sm:$0xf0] }
 0x3ed   : > { %v6834_v8 = vrot.slane %v6832_v63, 4  ;;  %v6839_v52 = vrot.slane %v6837_v14, 3  ;;  %v7166_v53 = vrot.slane %v13582_v6, 4  ;;  %v7169_v12 = vrot.slane %v13589_v0, 4  ;;  %v13656_v63 = vld [vmem:[#allocation2 + $0xb0] sm:$0xf0] }
 0x3ee   : > { %v6814_v7 = vrot.slane %v6812_v15, 3  ;;  %v6817_v48 = vrot.slane %v6815_v62, 4  ;;  %v7178_v15 = vrot.slane %v13608_v56, 4  ;;  %v7179_v62 = vrot.slane %v13487_v24, 4  ;;  %v13631_v24 = vld [vmem:[%s14251_s3 + $0xc0] sm:$0xff]  }
 0x3ef   : > { %v6835_v44 = vor.u32 %v6834_v8, %v6831_v41  ;;  %v7168_v5 = vsel %vm831_vm1, %v7166_v53, %v7167_v1  ;;  %v7171_v55 = vsel %vm831_vm1, %v7169_v12, %v7170_v33  ;;  %v7182_v50 = vrot.slane %v13495_v26, 4  ;;  %v13668_v41 = vld [vmem:[#allocation2 + $0xd0] sm:$0xf0]  ;;  %v7479_v53 = vld [vmem:[#allocation2 + $0x18] sm:$0x1f] }
 0x3f0   : > { %v6818_v51 = vor.u32 %v6817_v48, %v6814_v7  ;;  %v7180_v9 = vsel %vm831_vm1, %v7178_v15, %v7179_v62  ;;  %v13641_v7 = vld [vmem:[#allocation2 + $0x80] sm:$0xf0]  ;;  %v13644_v48 = vld [vmem:[#allocation2 + $0x90] sm:$0xf0]  ;;  %v7188_v43 = vrot.slane %v13518_v19, 4  ;;  %v7191_v32 = vrot.slane %v13521_v42, 4 }
 0x3f1   : > { %v7187_v26 = vrot.slane %v13641_v7, 4  ;;  %v7193_v14 = vrot.slane %v13653_v11, 4  ;;  %v7194_v19 = vrot.slane %v13534_v25, 4  ;;  %v7197_v42 = vrot.slane %v13542_v36, 4 }
 0x3f2   : > { %11027 = vmatmul.mubr.msk.bf16.gmra.mrb[12].mxu1 %vm224_vm0, %v6708_v21  ;;  %v6776_v21 = vsel %vm283_vm7, %v6767_v60, %v6775_v29  ;;  %v6827_v34 = vsel %vm283_vm7, %v6818_v51, %v6826_v54  ;;  %v13604_v29 = vld [vmem:[#allocation2 + $0x40] sm:$0xf0]  ;;  %v7200_v25 = vrot.slane %v13548_v59, 4  ;;  %v7203_v36 = vrot.slane %v13551_v46, 4 }
 0x3f3   : > { %11030 = vmatprep.mubr.msk.bf16.mxu1 %vm224_vm0, %v6725_v20  ;;  %v6793_v20 = vsel %vm283_vm7, %v6784_v23, %v6792_v37  ;;  %v7175_v23 = vrot.slane %v13604_v29, 4  ;;  %v7176_v37 = vrot.slane %v13484_v57, 4  ;;  %v13626_v57 = vld [vmem:[#allocation2 + $0x70] sm:$0xf0]  ;;  %v7189_v30 = vsel %vm831_vm1, %v7187_v26, %v7188_v43 }
 0x3f4   : > { %v7184_v27 = vrot.slane %v13626_v57, 4  ;;  %v7195_v51 = vsel %vm831_vm1, %v7193_v14, %v7194_v19  ;;  %v7206_v59 = vrot.slane %v13559_v18, 4  ;;  %v7507_v46 = vshll.u32 %v13582_v6, 16  ;;  %v13691_v18 = vld [vmem:[#allocation2 + $0x100] sm:$0xf0] }
 0x3f5   : > { %v7177_v16 = vsel %vm831_vm1, %v7175_v23, %v7176_v37  ;;  %v7209_v12 = vrot.slane %v13564_v35, 4  ;;  %v7512_v33 = vshrl.u32 %v7479_v53, 16  ;;  %v7521_v35 = vshrl.u32 %v13589_v0, 16 }
 0x3f6   : > { %v7524_v15 = vshll.u32 %v13589_v0, 16 }
 0x3f7   : > { %v7514_v23 = vrot.slane %v7512_v33, 4  ;;  %v7523_v26 = vrot.slane %v7521_v35, 4  ;;  %v7484_v33 = vld [vmem:[#allocation2 + $0x68] sm:$0x1f]  ;;  %v7485_v35 = vld [vmem:[#allocation2 + $0x78] sm:$0x1f] }
 0x3f8   : > { %v7526_v43 = vrot.slane %v7524_v15, 5  ;;  %v11862_v15 = vld [vmem:[%s14251_s3 + $0xd0] sm:$0xff]  }
 0x3fa   : > { %11031 = vmatmul.mubr.msk.bf16.gmra.mrb[16].mxu1 %vm224_vm0, %v6742_v10  ;;  %v6842_v10 = vrot.slane %v6840_v40, 4  ;;  %v7196_v40 = vrot.slane %v13656_v63, 4 }
 0x3fb   : > { %11034 = vmatprep.mubr.msk.bf16.mxu1 %vm224_vm0, %v6759_v38  ;;  %v13592_v38 = vld [vmem:[#allocation2 + $0x30] sm:$0xf0] }
 0x3fc   : > { %v6843_v47 = vor.u32 %v6842_v10, %v6839_v52  ;;  %v7172_v58 = vrot.slane %v13592_v38, 4  ;;  %v7198_v54 = vsel %vm831_vm1, %v7196_v40, %v7197_v42  ;;  %v7202_v52 = vrot.slane %v13668_v41, 4  ;;  %v7482_v40 = vld [vmem:[#allocation2 + $0x48] sm:$0x1f] }
 0x3fd   : > { %v7527_v42 = vor.u32 %v7526_v43, %v7523_v26  ;;  %v11863_v26 = vld [vmem:[%s14251_s3 + $0xd8] sm:$0xff]  }
 0x3fe   : > { %v6844_v4 = vsel %vm283_vm7, %v6835_v44, %v6843_v47  ;;  %v7174_v60 = vsel %vm831_vm1, %v7172_v58, %v7173_v13  ;;  %v13677_v44 = vld [vmem:[#allocation2 + $0xe0] sm:$0xf0]  ;;  %v13680_v47 = vld [vmem:[#allocation2 + $0xf0] sm:$0xf0]  ;;  %v7515_v58 = vshll.u32 %v7479_v53, 16 }
 0x3ff   : > { %v7205_v1 = vrot.slane %v13677_v44, 4 }
 0x400   : > { %v7517_v37 = vrot.slane %v7515_v58, 5 }
 0x401   : > { %v7207_v13 = vsel %vm831_vm1, %v7205_v1, %v7206_v59 }
 0x402   : > { %11035 = vmatmul.mubr.msk.bf16.gmra.mrb[20].mxu1 %vm224_vm0, %v6776_v21  ;;  %v7185_v21 = vrot.slane %v13506_v3, 4  ;;  %v7190_v3 = vrot.slane %v13644_v48, 4 }
 0x403   : > { %11038 = vmatprep.mubr.msk.bf16.mxu1 %vm224_vm0, %v6793_v20  ;;  %v7183_v20 = vsel %vm831_vm1, %v7181_v49, %v7182_v50  ;;  %v7538_v50 = vshrl.u32 %v13592_v38, 16 }
 0x404   : > { %v7186_v17 = vsel %vm831_vm1, %v7184_v27, %v7185_v21  ;;  %v7192_v28 = vsel %vm831_vm1, %v7190_v3, %v7191_v32  ;;  %v7518_v27 = vor.u32 %v7517_v37, %v7514_v23  ;;  %v7541_v21 = vshll.u32 %v13592_v38, 16  ;;  %v7483_v38 = vld [vmem:[#allocation2 + $0x58] sm:$0x1f] }
 0x405   : > { %v7580_v1 = vshrl.u32 %v7483_v38, 16  ;;  %v7583_v59 = vshll.u32 %v7483_v38, 16  ;;  %v7592_v23 = vshll.u32 %v13623_v61, 16  ;;  %v7597_v37 = vshrl.u32 %v7484_v33, 16 }
 0x406   : > { %v7626_v38 = vshll.u32 %v13641_v7, 16 }
 0x40a   : > { %11039 = vmatmul.mubr.msk.bf16.gmra.mrb[24].mxu1 %vm224_vm0, %v6810_v45  ;;  %v13665_v45 = vld [vmem:[#allocation2 + $0xc0] sm:$0xf0] }
 0x40b   : > { %11042 = vmatprep.mubr.msk.bf16.mxu1 %vm224_vm0, %v6827_v34  ;;  %v7199_v8 = vrot.slane %v13665_v45, 4  ;;  %v7204_v34 = vsel %vm831_vm1, %v7202_v52, %v7203_v36  ;;  %v7566_v52 = vshll.u32 %v7482_v40, 16  ;;  %v7572_v36 = vshrl.u32 %v13608_v56, 16 }
 0x40d   : > { %v7201_v10 = vsel %vm831_vm1, %v7199_v8, %v7200_v25  ;;  %v7558_v8 = vshll.u32 %v13604_v29, 16  ;;  %v7563_v25 = vshrl.u32 %v7482_v40, 16  ;;  %v7568_v58 = vrot.slane %v7566_v52, 5 }
 0x40e   : > { %v7623_v40 = vshrl.u32 %v13641_v7, 16 }
 0x410   : > { %v7625_v7 = vrot.slane %v7623_v40, 4 }
 0x412   : > { %11043 = vmatmul.mubr.msk.bf16.gmra.mrb[28].mxu1 %vm224_vm0, %v6844_v4  ;;  %v7504_v4 = vshrl.u32 %v13582_v6, 16  ;;  %v7481_v6 = vld [vmem:[#allocation2 + $0x38] sm:$0x1f] }
 0x413   : > { %11054 = vmatprep.mubr.msk.bf16.mxu1 %vm224_vm0, %v7168_v5  ;;  %v7208_v5 = vrot.slane %v13680_v47, 4 }
 0x41a   : > { %11055 = vmatmul.mubr.msk.bf16.vlgmr.msra.gmra.mrb[0].mxu1 %vm224_vm0, %v7171_v55  ;;  %v7509_v55 = vrot.slane %v7507_v46, 5 }
 0x41b   : > { %11087 = vmatpush3.bf16.msra.mxu1 %v13529_v2  ;;  %11058 = vmatprep.mubr.msk.bf16.mxu1 %vm224_vm0, %v7174_v60  ;;  %v11859_v2 = vld [vmem:[%s14251_s3 + $0xb8] sm:$0xff]   ;;  %v7480_v60 = vld [vmem:[#allocation2 + $0x28] sm:$0x1f] }
 0x41c   : > { %11088 = vmatprep.subr.bf16.mxu1 %v11857_v22  ;;  %v7529_v62 = vshrl.u32 %v7480_v60, 16 }
 0x41e   : > { %v7531_v3 = vrot.slane %v7529_v62, 4 }
 0x41f   : > { %11089 = vmatpush3.bf16.msra.mxu1 %v11857_v22  ;;  %v7506_v22 = vrot.slane %v7504_v4, 4 }
 0x420   : > { %11090 = vmatprep.subr.bf16.mxu1 %v11858_v31 }
 0x421   : > { %v7510_v49 = vor.u32 %v7509_v55, %v7506_v22  ;;  %v7582_v55 = vrot.slane %v7580_v1, 4  ;;  %v7628_v1 = vrot.slane %v7626_v38, 5 }
 0x422   : > { %11059 = vmatmul.mubr.msk.bf16.gmra.mrb[4].mxu1 %vm224_vm0, %v7177_v16  ;;  %v7211_v16 = vrot.slane %v13691_v18, 4 }
 0x423   : > { %11062 = vmatprep.mubr.msk.bf16.mxu1 %vm224_vm0, %v7180_v9  ;;  %11091 = vmatpush3.bf16.msra.mxu1 %v11858_v31  ;;  %v7210_v31 = vsel %vm831_vm1, %v7208_v5, %v7209_v12  ;;  %v7212_v9 = vrot.slane %v13573_v39, 4  ;;  %v7543_v39 = vrot.slane %v7541_v21, 5  ;;  %v7560_v5 = vrot.slane %v7558_v8, 5  ;;  %v11861_v12 = vld [vmem:[%s14251_s3 + $0xc8] sm:$0xff]  }
 0x424   : > { %11092 = vmatprep.subr.bf16.mxu1 %v11859_v2  ;;  %v7640_v8 = vshrl.u32 %v13644_v48, 16 }
 0x425   : > { %v7213_v0 = vsel %vm831_vm1, %v7211_v16, %v7212_v9  ;;  %v7606_v9 = vshrl.u32 %v13626_v57, 16 }
 0x427   : > { %11093 = vmatpush3.bf16.msra.mxu1 %v11859_v2  ;;  %v7532_v2 = vshll.u32 %v7480_v60, 16  ;;  %v7585_v60 = vrot.slane %v7583_v59, 5 }
 0x428   : > { %11126 = vmatprep.subr.bf16.mxu1 %v13631_v24 }
 0x429   : > { %v7534_v32 = vrot.slane %v7532_v2, 5 }
 0x42a   : > { %11063 = vmatmul.mubr.msk.bf16.gmra.mrb[8].mxu1 %vm224_vm0, %v7183_v20  ;;  %v7546_v20 = vshrl.u32 %v7481_v6, 16 }
 0x42b   : > { %11066 = vmatprep.mubr.msk.bf16.mxu1 %vm224_vm0, %v7186_v17  ;;  %v7549_v17 = vshll.u32 %v7481_v6, 16  ;;  %v7600_v6 = vshll.u32 %v7484_v33, 16 }
 0x42c   : > { %v7548_v14 = vrot.slane %v7546_v20, 4  ;;  %v7599_v20 = vrot.slane %v7597_v37, 4 }
 0x42d   : > { %v7551_v19 = vrot.slane %v7549_v17, 5  ;;  %v7602_v17 = vrot.slane %v7600_v6, 5  ;;  %v7674_v6 = vshrl.u32 %v13656_v63, 16 }
 0x42f   : > { %v7552_v53 = vor.u32 %v7551_v19, %v7548_v14  ;;  %v7603_v19 = vor.u32 %v7602_v17, %v7599_v20  ;;  %v7491_v17 = vld [vmem:[#allocation2 + $0xd8] sm:$0x1f] }
 0x432   : > { %11067 = vmatmul.mubr.msk.bf16.gmra.mrb[12].mxu1 %vm224_vm0, %v7189_v30  ;;  %v7540_v30 = vrot.slane %v7538_v50, 4  ;;  %v7614_v50 = vshrl.u32 %v7485_v35, 16 }
 0x433   : > { %11070 = vmatprep.mubr.msk.bf16.mxu1 %vm224_vm0, %v7192_v28  ;;  %v7519_v28 = vsel %vm1370_vm10, %v7510_v49, %v7518_v27  ;;  %v7609_v49 = vshll.u32 %v13626_v57, 16  ;;  %v7617_v27 = vshll.u32 %v7485_v35, 16  ;;  %v7677_v35 = vshll.u32 %v13656_v63, 16 }
 0x43a   : > { %11071 = vmatmul.mubr.msk.bf16.gmra.mrb[16].mxu1 %vm224_vm0, %v7195_v51  ;;  %v7535_v51 = vor.u32 %v7534_v32, %v7531_v3  ;;  %v7608_v3 = vrot.slane %v7606_v9, 4  ;;  %v7486_v32 = vld [vmem:[#allocation2 + $0x88] sm:$0x1f] }
 0x43b   : > { %11074 = vmatprep.mubr.msk.bf16.mxu1 %vm224_vm0, %v7198_v54  ;;  %v7555_v54 = vshrl.u32 %v13604_v29, 16  ;;  %v7565_v29 = vrot.slane %v7563_v25, 4  ;;  %v7643_v25 = vshll.u32 %v13644_v48, 16 }
 0x43c   : > { %v7536_v4 = vsel %vm1370_vm10, %v7527_v42, %v7535_v51  ;;  %v7631_v42 = vshrl.u32 %v7486_v32, 16  ;;  %v7634_v51 = vshll.u32 %v7486_v32, 16 }
 0x43d   : > { %v7557_v46 = vrot.slane %v7555_v54, 4  ;;  %v7569_v2 = vor.u32 %v7568_v58, %v7565_v29  ;;  %v13735_v54 = vld [vmem:[%s14251_s3 + $0xe0] sm:$0xff]   ;;  %v7657_v58 = vshrl.u32 %v13653_v11, 16 }
 0x43e   : > { %v7633_v59 = vrot.slane %v7631_v42, 4 }
 0x43f   : > { %v7561_v62 = vor.u32 %v7560_v5, %v7557_v46  ;;  %v7488_v46 = vld [vmem:[#allocation2 + $0xa8] sm:$0x1f]  ;;  %v7642_v5 = vrot.slane %v7640_v8, 4 }
 0x441   : > { %v7570_v43 = vsel %vm1370_vm10, %v7561_v62, %v7569_v2  ;;  %v7659_v2 = vrot.slane %v7657_v58, 4 }
 0x442   : > { %11075 = vmatmul.mubr.msk.bf16.gmra.mrb[20].mxu1 %vm224_vm0, %v7201_v10  ;;  %v7575_v10 = vshll.u32 %v13608_v56, 16 }
 0x443   : > { %11078 = vmatprep.mubr.msk.bf16.mxu1 %vm224_vm0, %v7204_v34  ;;  %v7544_v34 = vor.u32 %v7543_v39, %v7540_v30  ;;  %v7616_v30 = vrot.slane %v7614_v50, 4  ;;  %v7487_v39 = vld [vmem:[#allocation2 + $0x98] sm:$0x1f]  ;;  %v7490_v50 = vld [vmem:[#allocation2 + $0xc8] sm:$0x1f] }
 0x444   : > { %v7577_v22 = vrot.slane %v7575_v10, 5  ;;  %v7648_v52 = vshrl.u32 %v7487_v39, 16  ;;  %v7699_v32 = vshrl.u32 %v7490_v50, 16 }
 0x445   : > { %v7553_v56 = vsel %vm1370_vm10, %v7544_v34, %v7552_v53 }
 0x446   : > { %v7650_v33 = vrot.slane %v7648_v52, 4 }
 0x44a   : > { %11079 = vmatmul.mubr.msk.bf16.gmra.mrb[24].mxu1 %vm224_vm0, %v7207_v13  ;;  %v7574_v13 = vrot.slane %v7572_v36, 4  ;;  %v7651_v36 = vshll.u32 %v7487_v39, 16  ;;  %v7719_v39 = vshll.u32 %v7491_v17, 16 }
 0x44b   : > { %11082 = vmatprep.mubr.msk.bf16.mxu1 %vm224_vm0, %v7210_v31  ;;  %v7589_v31 = vshrl.u32 %v13623_v61, 16  ;;  %v7594_v61 = vrot.slane %v7592_v23, 5 }
 0x44c   : > { %v7578_v16 = vor.u32 %v7577_v22, %v7574_v13  ;;  %v7653_v29 = vrot.slane %v7651_v36, 5  ;;  %v7660_v13 = vshll.u32 %v13653_v11, 16  ;;  %v7665_v22 = vshrl.u32 %v7488_v46, 16 }
 0x44d   : > { %v7591_v21 = vrot.slane %v7589_v31, 4 }
 0x44e   : > { %v7654_v37 = vor.u32 %v7653_v29, %v7650_v33  ;;  %v7667_v9 = vrot.slane %v7665_v22, 4  ;;  %v7742_v33 = vshrl.u32 %v13680_v47, 16  ;;  %v7745_v29 = vshll.u32 %v13680_v47, 16 }
 0x44f   : > { %v7595_v14 = vor.u32 %v7594_v61, %v7591_v21  ;;  %v7679_v21 = vrot.slane %v7677_v35, 5 }
 0x451   : > { %v7604_v53 = vsel %vm1370_vm10, %v7595_v14, %v7603_v19 }
 0x452   : > { %11083 = vmatmul.mubr.msk.bf16.gmra.mrb[28].mxu1 %vm224_vm0, %v7213_v0  ;;  %v7611_v0 = vrot.slane %v7609_v49, 5 }
 0x453   : > { %11094 = vmatprep.mubr.msk.bf16.mxu1 %vm224_vm0, %v7519_v28  ;;  %v7619_v28 = vrot.slane %v7617_v27, 5  ;;  %v7676_v27 = vrot.slane %v7674_v6, 4  ;;  %v7747_v6 = vrot.slane %v7745_v29, 5 }
 0x454   : > { %v7612_v10 = vor.u32 %v7611_v0, %v7608_v3  ;;  %v7694_v3 = vshll.u32 %v13665_v45, 16  ;;  %v7708_v0 = vshrl.u32 %v13668_v41, 16 }
 0x455   : > { %v7620_v34 = vor.u32 %v7619_v28, %v7616_v30  ;;  %v7711_v30 = vshll.u32 %v13668_v41, 16  ;;  %v7716_v28 = vshrl.u32 %v7491_v17, 16  ;;  %v7680_v14 = vor.u32 %v7679_v21, %v7676_v27 }
 0x456   : > { %v7696_v42 = vrot.slane %v7694_v3, 5  ;;  %v7710_v52 = vrot.slane %v7708_v0, 4  ;;  %v7725_v41 = vshrl.u32 %v13677_v44, 16 }
 0x457   : > { %v7621_v48 = vsel %vm1370_vm10, %v7612_v10, %v7620_v34  ;;  %v7713_v36 = vrot.slane %v7711_v30, 5  ;;  %v7721_v10 = vrot.slane %v7719_v39, 5 }
 0x45a   : > { %11095 = vmatmul.mubr.msk.bf16.vlgmr.msra.gmra.mrb[0].mxu1 %vm224_vm0, %v7536_v4  ;;  %v7636_v4 = vrot.slane %v7634_v51, 5  ;;  %v7701_v51 = vrot.slane %v7699_v32, 4 }
 0x45b   : > { %11127 = vmatpush3.bf16.msra.mxu1 %v13631_v24  ;;  %11098 = vmatprep.mubr.msk.bf16.mxu1 %vm224_vm0, %v7553_v56  ;;  %v7586_v24 = vor.u32 %v7585_v60, %v7582_v55  ;;  %v7668_v56 = vshll.u32 %v7488_v46, 16  ;;  %v7489_v55 = vld [vmem:[#allocation2 + $0xb8] sm:$0x1f]  ;;  %v7629_v60 = vor.u32 %v7628_v1, %v7625_v7 }
 0x45c   : > { %11128 = vmatprep.subr.bf16.mxu1 %v11861_v12  ;;  %v7637_v31 = vor.u32 %v7636_v4, %v7633_v59  ;;  %v7685_v62 = vshll.u32 %v7489_v55, 16  ;;  %v7493_v59 = vld [vmem:[#allocation2 + $0xf8] sm:$0x1f] }
 0x45d   : > { %v7587_v57 = vsel %vm1370_vm10, %v7578_v16, %v7586_v24  ;;  %v7662_v16 = vrot.slane %v7660_v13, 5  ;;  %v7670_v24 = vrot.slane %v7668_v56, 5  ;;  %v7753_v58 = vshll.u32 %v7493_v59, 16 }
 0x45e   : > { %v7638_v49 = vsel %vm1370_vm10, %v7629_v60, %v7637_v31  ;;  %v7687_v20 = vrot.slane %v7685_v62, 5  ;;  %v7727_v13 = vrot.slane %v7725_v41, 4  ;;  %v7494_v31 = vld [vmem:[#allocation2 + $0x108] sm:$0x1f] }
 0x45f   : > { %11129 = vmatpush3.bf16.msra.mxu1 %v11861_v12  ;;  %v7645_v12 = vrot.slane %v7643_v25, 5  ;;  %v7663_v63 = vor.u32 %v7662_v16, %v7659_v2  ;;  %v7492_v25 = vld [vmem:[#allocation2 + $0xe8] sm:$0x1f]  ;;  %v7759_v16 = vshrl.u32 %v13691_v18, 16 }
 0x460   : > { %11130 = vmatprep.subr.bf16.mxu1 %v11862_v15  ;;  %v7733_v7 = vshrl.u32 %v7492_v25, 16  ;;  %v7736_v1 = vshll.u32 %v7492_v25, 16  ;;  %v13767_v62 = vld [vmem:[#allocation2 + $0x28] sm:$0xf] }
 0x461   : > { %v7646_v23 = vor.u32 %v7645_v12, %v7642_v5  ;;  %v7714_v5 = vor.u32 %v7713_v36, %v7710_v52  ;;  %v8089_v27 = vshrl.u32 %v13767_v62, 16  ;;  %v8092_v21 = vshll.u32 %v13767_v62, 16 }
 0x462   : > { %11099 = vmatmul.mubr.msk.bf16.gmra.mrb[4].mxu1 %vm224_vm0, %v7570_v43  ;;  %v7691_v43 = vshrl.u32 %v13665_v45, 16  ;;  %v7718_v45 = vrot.slane %v7716_v28, 4  ;;  %v7735_v56 = vrot.slane %v7733_v7, 4 }
 0x463   : > { %11102 = vmatprep.mubr.msk.bf16.mxu1 %vm224_vm0, %v7587_v57  ;;  %11131 = vmatpush3.bf16.msra.mxu1 %v11862_v15  ;;  %v7682_v15 = vshrl.u32 %v7489_v55, 16  ;;  %v7655_v11 = vsel %vm1370_vm10, %v7646_v23, %v7654_v37  ;;  %v7702_v57 = vshll.u32 %v7490_v50, 16  ;;  %v7738_v55 = vrot.slane %v7736_v1, 5  ;;  %v8040_v23 = vld [vmem:[#allocation2 + $0x20] sm:$0xf8] }
 0x464   : > { %11132 = vmatprep.subr.bf16.mxu1 %v11863_v26  ;;  %v7693_v38 = vrot.slane %v7691_v43, 4  ;;  %v7722_v12 = vor.u32 %v7721_v10, %v7718_v45  ;;  %v7744_v37 = vrot.slane %v7742_v33, 4  ;;  %v8084_v50 = vshll.u32 %v8040_v23, 16  ;;  %v8048_v33 = vld [vmem:[#allocation2 + $0x60] sm:$0xf8] }
 0x465   : > { %v7684_v61 = vrot.slane %v7682_v15, 4  ;;  %v7704_v8 = vrot.slane %v7702_v57, 5  ;;  %v7755_v15 = vrot.slane %v7753_v58, 5  ;;  %v7739_v2 = vor.u32 %v7738_v55, %v7735_v56  ;;  %v13775_v57 = vld [vmem:[#allocation2 + $0x38] sm:$0xf] }
 0x466   : > { %v7697_v4 = vor.u32 %v7696_v42, %v7693_v38  ;;  %v8086_v0 = vrot.slane %v8084_v50, 4  ;;  %v8091_v30 = vrot.slane %v8089_v27, 3  ;;  %v8094_v28 = vrot.slane %v8092_v21, 4  ;;  %v11865_v21 = vld [vmem:[%s14251_s3 + $0xe8] sm:$0xff]  }
 0x467   : > { %11133 = vmatpush3.bf16.msra.mxu1 %v11863_v26  ;;  %v7671_v26 = vor.u32 %v7670_v24, %v7667_v9  ;;  %v7688_v19 = vor.u32 %v7687_v20, %v7684_v61  ;;  %v7705_v46 = vor.u32 %v7704_v8, %v7701_v51  ;;  %v7762_v9 = vshll.u32 %v13691_v18, 16  ;;  %v13782_v51 = vld [vmem:[#allocation2 + $0x48] sm:$0xf] }
 0x468   : > { %11166 = vmatprep.subr.bf16.mxu1 %v13735_v54  ;;  %v7767_v24 = vshrl.u32 %v7494_v31, 16  ;;  %v7748_v61 = vor.u32 %v7747_v6, %v7744_v37  ;;  %v8106_v38 = vshrl.u32 %v13775_v57, 16  ;;  %v8109_v42 = vshll.u32 %v13775_v57, 16 }
 0x469   : > { %v7672_v40 = vsel %vm1370_vm10, %v7663_v63, %v7671_v26  ;;  %v7689_v34 = vsel %vm1370_vm10, %v7680_v14, %v7688_v19  ;;  %v7706_v60 = vsel %vm1370_vm10, %v7697_v4, %v7705_v46  ;;  %v8042_v63 = vld [vmem:[#allocation2 + $0x30] sm:$0xf8]  ;;  %v7761_v26 = vrot.slane %v7759_v16, 4  ;;  %v8044_v14 = vld [vmem:[#allocation2 + $0x40] sm:$0xf8] }
 0x46a   : > { %11103 = vmatmul.mubr.msk.bf16.gmra.mrb[8].mxu1 %vm224_vm0, %v7604_v53  ;;  %v7728_v53 = vshll.u32 %v13677_v44, 16  ;;  %v7723_v44 = vsel %vm1370_vm10, %v7714_v5, %v7722_v12  ;;  %v7764_v43 = vrot.slane %v7762_v9, 5  ;;  %v7769_v3 = vrot.slane %v7767_v24, 4  ;;  %v8046_v5 = vld [vmem:[#allocation2 + $0x50] sm:$0xf8] }
 0x46b   : > { %11106 = vmatprep.mubr.msk.bf16.mxu1 %vm224_vm0, %v7621_v48  ;;  %v7750_v48 = vshrl.u32 %v7493_v59, 16  ;;  %v8098_v19 = vshrl.u32 %v8042_v63, 16  ;;  %v8095_v36 = vor.u32 %v8094_v28, %v8091_v30  ;;  %v8115_v45 = vshrl.u32 %v8044_v14, 16  ;;  %v13788_v12 = vld [vmem:[#allocation2 + $0x58] sm:$0xf]  ;;  %v11866_v28 = vld [vmem:[%s14251_s3 + $0xf0] sm:$0xff]  }
 0x46c   : > { %v7730_v22 = vrot.slane %v7728_v53, 5  ;;  %v7765_v8 = vor.u32 %v7764_v43, %v7761_v26  ;;  %v8118_v10 = vshll.u32 %v8044_v14, 16  ;;  %v8126_v41 = vshll.u32 %v13782_v51, 16  ;;  %v8050_v9 = vld [vmem:[#allocation2 + $0x70] sm:$0xf8] }
 0x46d   : > { %v7752_v35 = vrot.slane %v7750_v48, 4  ;;  %v8100_v53 = vrot.slane %v8098_v19, 3  ;;  %v8108_v1 = vrot.slane %v8106_v38, 3  ;;  %v8111_v59 = vrot.slane %v8109_v42, 4  ;;  %v13799_v24 = vld [vmem:[#allocation2 + $0x78] sm:$0xf] }
 0x46e   : > { %v7731_v47 = vor.u32 %v7730_v22, %v7727_v13  ;;  %v8117_v29 = vrot.slane %v8115_v45, 3  ;;  %v8120_v48 = vrot.slane %v8118_v10, 4  ;;  %v8128_v13 = vrot.slane %v8126_v41, 4  ;;  %v13791_v22 = vld [vmem:[#allocation2 + $0x68] sm:$0xf]  ;;  %v11867_v10 = vld [vmem:[%s14251_s3 + $0xf8] sm:$0xff]  }
 0x46f   : > { %v7756_v20 = vor.u32 %v7755_v15, %v7752_v35  ;;  %v8112_v55 = vor.u32 %v8111_v59, %v8108_v1  ;;  %v8149_v37 = vshrl.u32 %v8048_v33, 16  ;;  %v8152_v6 = vshll.u32 %v8048_v33, 16  ;;  %v8052_v43 = vld [vmem:[#allocation2 + $0x80] sm:$0xf8]  ;;  %v13810_v30 = vld [vmem:[#allocation2 + $0x88] sm:$0xf] }
 0x470   : > { %v7740_v17 = vsel %vm1370_vm10, %v7731_v47, %v7739_v2  ;;  %v8157_v35 = vshrl.u32 %v13791_v22, 16  ;;  %v8160_v15 = vshll.u32 %v13791_v22, 16  ;;  %v8121_v47 = vor.u32 %v8120_v48, %v8117_v29  ;;  %v8056_v1 = vld [vmem:[#allocation2 + $0xa0] sm:$0xf8]  ;;  %v13825_v33 = vld [vmem:[#allocation2 + $0xa8] sm:$0xf] }
 0x471   : > { %v7757_v39 = vsel %vm1370_vm10, %v7748_v61, %v7756_v20  ;;  %v8151_v61 = vrot.slane %v8149_v37, 3  ;;  %v8154_v20 = vrot.slane %v8152_v6, 4  ;;  %v8186_v38 = vshll.u32 %v8052_v43, 16 }
 0x472   : > { %11107 = vmatmul.mubr.msk.bf16.gmra.mrb[12].mxu1 %vm224_vm0, %v7638_v49  ;;  %v7770_v49 = vshll.u32 %v7494_v31, 16  ;;  %v8140_v31 = vshrl.u32 %v13788_v12, 16  ;;  %v8191_v42 = vshrl.u32 %v13810_v30, 16  ;;  %v8228_v37 = vshll.u32 %v13825_v33, 16 }
 0x473   : > { %11110 = vmatprep.mubr.msk.bf16.mxu1 %vm224_vm0, %v7655_v11  ;;  %v8081_v11 = vshrl.u32 %v8040_v23, 16  ;;  %v8143_v23 = vshll.u32 %v13788_v12, 16  ;;  %v8155_v19 = vor.u32 %v8154_v20, %v8151_v61 }
 0x474   : > { %v7772_v32 = vrot.slane %v7770_v49, 5  ;;  %v8142_v50 = vrot.slane %v8140_v31, 3  ;;  %v8220_v31 = vshll.u32 %v8056_v1, 16  ;;  %v8230_v61 = vrot.slane %v8228_v37, 4 }
 0x475   : > { %v8083_v18 = vrot.slane %v8081_v11, 3  ;;  %v8145_v27 = vrot.slane %v8143_v23, 4  ;;  %v8225_v23 = vshrl.u32 %v13825_v33, 16 }
 0x476   : > { %v7773_v25 = vor.u32 %v7772_v32, %v7769_v3  ;;  %v8166_v3 = vshrl.u32 %v8050_v9, 16  ;;  %v8169_v32 = vshll.u32 %v8050_v9, 16 }
 0x477   : > { %v8087_v52 = vor.u32 %v8086_v0, %v8083_v18  ;;  %v8174_v18 = vshrl.u32 %v13799_v24, 16  ;;  %v8177_v0 = vshll.u32 %v13799_v24, 16  ;;  %v8146_v14 = vor.u32 %v8145_v27, %v8142_v50 }
 0x478   : > { %v7774_v4 = vsel %vm1370_vm10, %v7765_v8, %v7773_v25  ;;  %v8194_v8 = vshll.u32 %v13810_v30, 16  ;;  %v8168_v25 = vrot.slane %v8166_v3, 3  ;;  %v8222_v27 = vrot.slane %v8220_v31, 4 }
 0x479   : > { %v8096_v46 = vsel %vm283_vm7, %v8087_v52, %v8095_v36  ;;  %v8171_v52 = vrot.slane %v8169_v32, 4  ;;  %v8176_v36 = vrot.slane %v8174_v18, 3  ;;  %v8179_v45 = vrot.slane %v8177_v0, 4  ;;  %v13846_v32 = vld [vmem:[#allocation2 + $0xc8] sm:$0xf] }
 0x47a   : > { %11111 = vmatmul.mubr.msk.bf16.gmra.mrb[16].mxu1 %vm224_vm0, %v7672_v40  ;;  %v8101_v40 = vshll.u32 %v8042_v63, 16  ;;  %v8162_v63 = vrot.slane %v8160_v15, 4 }
 0x47b   : > { %11114 = vmatprep.mubr.msk.bf16.mxu1 %vm224_vm0, %v7689_v34  ;;  %v8123_v34 = vshrl.u32 %v13782_v51, 16  ;;  %v8172_v29 = vor.u32 %v8171_v52, %v8168_v25  ;;  %v8180_v48 = vor.u32 %v8179_v45, %v8176_v36  ;;  %v8062_v45 = vld [vmem:[#allocation2 + $0xd0] sm:$0xf8] }
 0x47c   : > { %v8103_v7 = vrot.slane %v8101_v40, 4 }
 0x47d   : > { %v8125_v58 = vrot.slane %v8123_v34, 3  ;;  %v8181_v15 = vsel %vm283_vm7, %v8172_v29, %v8180_v48  ;;  %v8268_v29 = vshrl.u32 %v8062_v45, 16  ;;  %v8271_v48 = vshll.u32 %v8062_v45, 16 }
 0x47e   : > { %v8104_v56 = vor.u32 %v8103_v7, %v8100_v53  ;;  %v8054_v53 = vld [vmem:[#allocation2 + $0x90] sm:$0xf8]  ;;  %v13822_v7 = vld [vmem:[#allocation2 + $0x98] sm:$0xf] }
 0x47f   : > { %v8129_v2 = vor.u32 %v8128_v13, %v8125_v58  ;;  %v8200_v58 = vshrl.u32 %v8054_v53, 16  ;;  %v8203_v13 = vshll.u32 %v8054_v53, 16 }
 0x480   : > { %v8113_v16 = vsel %vm283_vm7, %v8104_v56, %v8112_v55  ;;  %v8208_v56 = vshrl.u32 %v13822_v7, 16  ;;  %v8211_v55 = vshll.u32 %v13822_v7, 16 }
 0x481   : > { %v8130_v26 = vsel %vm283_vm7, %v8121_v47, %v8129_v2  ;;  %v8058_v47 = vld [vmem:[#allocation2 + $0xb0] sm:$0xf8]  ;;  %v8202_v2 = vrot.slane %v8200_v58, 3 }
 0x482   : > { %11115 = vmatmul.mubr.msk.bf16.gmra.mrb[20].mxu1 %vm224_vm0, %v7706_v60  ;;  %v8132_v60 = vshrl.u32 %v8046_v5, 16  ;;  %v8210_v9 = vrot.slane %v8208_v56, 3 }
 0x483   : > { %11118 = vmatprep.mubr.msk.bf16.mxu1 %vm224_vm0, %v7723_v44  ;;  %v8135_v44 = vshll.u32 %v8046_v5, 16  ;;  %v8196_v5 = vrot.slane %v8194_v8, 4 }
 0x484   : > { %v8134_v49 = vrot.slane %v8132_v60, 3  ;;  %v13833_v60 = vld [vmem:[%s14251_s3 + $0x100] sm:$0xff]  }
 0x485   : > { %v8137_v11 = vrot.slane %v8135_v44, 4  ;;  %v8217_v44 = vshrl.u32 %v8056_v1, 16 }
 0x487   : > { %v8219_v50 = vrot.slane %v8217_v44, 3 }
 0x48a   : > { %11119 = vmatmul.mubr.msk.bf16.gmra.mrb[24].mxu1 %vm224_vm0, %v7740_v17  ;;  %v8159_v17 = vrot.slane %v8157_v35, 3 }
 0x48b   : > { %11122 = vmatprep.mubr.msk.bf16.mxu1 %vm224_vm0, %v7757_v39  ;;  %v8138_v39 = vor.u32 %v8137_v11, %v8134_v49  ;;  %v8213_v49 = vrot.slane %v8211_v55, 4  ;;  %v13838_v11 = vld [vmem:[#allocation2 + $0xb8] sm:$0xf] }
 0x48c   : > { %v8163_v40 = vor.u32 %v8162_v63, %v8159_v17  ;;  %v8060_v17 = vld [vmem:[#allocation2 + $0xc0] sm:$0xf8]  ;;  %v8234_v63 = vshrl.u32 %v8058_v47, 16  ;;  %v8245_v3 = vshll.u32 %v13838_v11, 16 }
 0x48d   : > { %v8147_v34 = vsel %vm283_vm7, %v8138_v39, %v8146_v14  ;;  %v8214_v0 = vor.u32 %v8213_v49, %v8210_v9  ;;  %v8251_v14 = vshrl.u32 %v8060_v17, 16 }
 0x48e   : > { %v8164_v41 = vsel %vm283_vm7, %v8155_v19, %v8163_v40  ;;  %v8254_v19 = vshll.u32 %v8060_v17, 16  ;;  %v8259_v40 = vshrl.u32 %v13846_v32, 16  ;;  %v8247_v25 = vrot.slane %v8245_v3, 4  ;;  %v13868_v17 = vld [vmem:[#allocation2 + $0x108] sm:$0xf] }
 0x490   : > { %v8256_v53 = vrot.slane %v8254_v19, 4  ;;  %v8261_v1 = vrot.slane %v8259_v40, 3  ;;  %v8327_v40 = vshrl.u32 %v13868_v17, 16 }
 0x492   : > { %11123 = vmatmul.mubr.msk.bf16.gmra.mrb[28].mxu1 %vm224_vm0, %v7774_v4  ;;  %v8188_v4 = vrot.slane %v8186_v38, 4  ;;  %v8236_v38 = vrot.slane %v8234_v63, 3 }
 0x493   : > { %11134 = vmatprep.mubr.msk.bf16.mxu1 %vm224_vm0, %v8096_v46  ;;  %v8193_v46 = vrot.slane %v8191_v42, 3 }
 0x495   : > { %v8197_v35 = vor.u32 %v8196_v5, %v8193_v46 }
 0x49a   : > { %11135 = vmatmul.mubr.msk.bf16.vlgmr.msra.gmra.mrb[0].mxu1 %vm224_vm0, %v8113_v16  ;;  %v8205_v16 = vrot.slane %v8203_v13, 4 }
 0x49b   : > { %11167 = vmatpush3.bf16.msra.mxu1 %v13735_v54  ;;  %11138 = vmatprep.mubr.msk.bf16.mxu1 %vm224_vm0, %v8130_v26  ;;  %v8183_v54 = vshrl.u32 %v8052_v43, 16  ;;  %v8237_v26 = vshll.u32 %v8058_v47, 16  ;;  %v8242_v43 = vshrl.u32 %v13838_v11, 16 }
 0x49c   : > { %11168 = vmatprep.subr.bf16.mxu1 %v11865_v21  ;;  %v8206_v18 = vor.u32 %v8205_v16, %v8202_v2 }
 0x49d   : > { %v8185_v59 = vrot.slane %v8183_v54, 3  ;;  %v8262_v54 = vshll.u32 %v13846_v32, 16  ;;  %v8239_v42 = vrot.slane %v8237_v26, 4  ;;  %v8244_v8 = vrot.slane %v8242_v43, 3 }
 0x49e   : > { %v8215_v52 = vsel %vm283_vm7, %v8206_v18, %v8214_v0 }
 0x49f   : > { %11169 = vmatpush3.bf16.msra.mxu1 %v11865_v21  ;;  %v8189_v6 = vor.u32 %v8188_v4, %v8185_v59  ;;  %v8227_v21 = vrot.slane %v8225_v23, 3  ;;  %v8264_v59 = vrot.slane %v8262_v54, 4  ;;  %v13855_v4 = vld [vmem:[#allocation2 + $0xe8] sm:$0xf]  ;;  %v8240_v46 = vor.u32 %v8239_v42, %v8236_v38 }
 0x4a0   : > { %11170 = vmatprep.subr.bf16.mxu1 %v11866_v28  ;;  %v8248_v5 = vor.u32 %v8247_v25, %v8244_v8  ;;  %v8293_v44 = vshrl.u32 %v13855_v4, 16  ;;  %v8296_v31 = vshll.u32 %v13855_v4, 16  ;;  %v8330_v54 = vshll.u32 %v13868_v17, 16  ;;  %v8070_v8 = vld [vmem:[#allocation2 + $0x110] sm:$0xf8] }
 0x4a1   : > { %v8198_v20 = vsel %vm283_vm7, %v8189_v6, %v8197_v35  ;;  %v8231_v39 = vor.u32 %v8230_v61, %v8227_v21  ;;  %v8265_v37 = vor.u32 %v8264_v59, %v8261_v1  ;;  %v8270_v35 = vrot.slane %v8268_v29, 3  ;;  %v13865_v61 = vld [vmem:[#allocation2 + $0xf8] sm:$0xf] }
 0x4a2   : > { %11139 = vmatmul.mubr.msk.bf16.gmra.mrb[4].mxu1 %vm224_vm0, %v8147_v34  ;;  %v8064_v34 = vld [vmem:[#allocation2 + $0xe0] sm:$0xf8]  ;;  %v8249_v6 = vsel %vm283_vm7, %v8240_v46, %v8248_v5  ;;  %v8295_v49 = vrot.slane %v8293_v44, 3  ;;  %v13875_v25 = vld [vmem:[#allocation2 + $0x118] sm:$0xf]  ;;  %v8329_v1 = vrot.slane %v8327_v40, 3 }
 0x4a3   : > { %11142 = vmatprep.mubr.msk.bf16.mxu1 %vm224_vm0, %v8164_v41  ;;  %11171 = vmatpush3.bf16.msra.mxu1 %v11866_v28  ;;  %v8223_v28 = vor.u32 %v8222_v27, %v8219_v50  ;;  %v8253_v41 = vrot.slane %v8251_v14, 3  ;;  %v8285_v56 = vshrl.u32 %v8064_v34, 16  ;;  %v8288_v55 = vshll.u32 %v8064_v34, 16  ;;  %v8066_v27 = vld [vmem:[#allocation2 + $0xf0] sm:$0xf8] }
 0x4a4   : > { %11172 = vmatprep.subr.bf16.mxu1 %v11867_v10  ;;  %v8298_v50 = vrot.slane %v8296_v31, 4  ;;  %v8302_v43 = vshrl.u32 %v8066_v27, 16  ;;  %v8305_v3 = vshll.u32 %v8066_v27, 16  ;;  %v8332_v59 = vrot.slane %v8330_v54, 4  ;;  %v13893_v27 = vld [vmem:[#allocation2 + $0x30] sm:$0xf0] }
 0x4a5   : > { %v8232_v36 = vsel %vm283_vm7, %v8223_v28, %v8231_v39  ;;  %v8257_v23 = vor.u32 %v8256_v53, %v8253_v41  ;;  %v8287_v16 = vrot.slane %v8285_v56, 3  ;;  %v8290_v9 = vrot.slane %v8288_v55, 4 }
 0x4a6   : > { %v8299_v0 = vor.u32 %v8298_v50, %v8295_v49  ;;  %v8310_v28 = vshrl.u32 %v13865_v61, 16  ;;  %v8313_v39 = vshll.u32 %v13865_v61, 16  ;;  %v8304_v42 = vrot.slane %v8302_v43, 3  ;;  %v11869_v43 = vld [vmem:[%s14251_s3 + $0x108] sm:$0xff]  }
 0x4a7   : > { %11173 = vmatpush3.bf16.msra.mxu1 %v11867_v10  ;;  %v13852_v10 = vld [vmem:[#allocation2 + $0xd8] sm:$0xf]  ;;  %v8266_v21 = vsel %vm283_vm7, %v8257_v23, %v8265_v37  ;;  %v8291_v18 = vor.u32 %v8290_v9, %v8287_v16  ;;  %v8336_v46 = vshrl.u32 %v8070_v8, 16  ;;  %v8339_v5 = vshll.u32 %v8070_v8, 16 }
 0x4a8   : > { %11206 = vmatprep.subr.bf16.mxu1 %v13833_v60  ;;  %v8276_v58 = vshrl.u32 %v13852_v10, 16  ;;  %v8279_v13 = vshll.u32 %v13852_v10, 16  ;;  %v8312_v45 = vrot.slane %v8310_v28, 3  ;;  %v8315_v34 = vrot.slane %v8313_v39, 4 }
 0x4a9   : > { %v8344_v29 = vshrl.u32 %v13875_v25, 16  ;;  %v8333_v55 = vor.u32 %v8332_v59, %v8329_v1  ;;  %v8338_v44 = vrot.slane %v8336_v46, 3  ;;  %v8341_v31 = vrot.slane %v8339_v5, 4  ;;  %v13951_v5 = vld [vmem:[#allocation2 + $0xb0] sm:$0xf0] }
 0x4aa   : > { %11143 = vmatmul.mubr.msk.bf16.gmra.mrb[8].mxu1 %vm224_vm0, %v8181_v15  ;;  %v8273_v15 = vrot.slane %v8271_v48, 4  ;;  %v8278_v47 = vrot.slane %v8276_v58, 3  ;;  %v8281_v2 = vrot.slane %v8279_v13, 4  ;;  %v8347_v48 = vshll.u32 %v13875_v25, 16 }
 0x4ab   : > { %11146 = vmatprep.mubr.msk.bf16.mxu1 %vm224_vm0, %v8198_v20  ;;  %v8068_v20 = vld [vmem:[#allocation2 + $0x100] sm:$0xf8]  ;;  %v8316_v13 = vor.u32 %v8315_v34, %v8312_v45  ;;  %v8346_v23 = vrot.slane %v8344_v29, 3  ;;  %v8674_v9 = vrot.slane %v13767_v62, 4  ;;  %v8680_v62 = vrot.slane %v13782_v51, 4  ;;  %v11870_v51 = vld [vmem:[%s14251_s3 + $0x110] sm:$0xff]  }
 0x4ac   : > { %v8274_v63 = vor.u32 %v8273_v15, %v8270_v35  ;;  %v8282_v26 = vor.u32 %v8281_v2, %v8278_v47  ;;  %v8319_v14 = vshrl.u32 %v8068_v20, 16  ;;  %v8322_v19 = vshll.u32 %v8068_v20, 16  ;;  %v13886_v2 = vld [vmem:[#allocation2 + $0x20] sm:$0xf0]  ;;  %v13939_v34 = vld [vmem:[#allocation2 + $0x90] sm:$0xf0] }
 0x4ad   : > { %v8349_v37 = vrot.slane %v8347_v48, 4  ;;  %v8342_v15 = vor.u32 %v8341_v31, %v8338_v44  ;;  %v8673_v16 = vrot.slane %v13886_v2, 4  ;;  %v8676_v20 = vrot.slane %v13893_v27, 4  ;;  %v13954_v29 = vld [vmem:[#allocation2 + $0xc0] sm:$0xf0] }
 0x4ae   : > { %v8283_v38 = vsel %vm283_vm7, %v8274_v63, %v8282_v26  ;;  %v8321_v41 = vrot.slane %v8319_v14, 3  ;;  %v8324_v53 = vrot.slane %v8322_v19, 4  ;;  %v8677_v63 = vrot.slane %v13775_v57, 4  ;;  %v13912_v57 = vld [vmem:[#allocation2 + $0x60] sm:$0xf0] }
 0x4af   : > { %v8350_v47 = vor.u32 %v8349_v37, %v8346_v23  ;;  %v8675_v50 = vsel %vm831_vm1, %v8673_v16, %v8674_v9  ;;  %v8683_v39 = vrot.slane %v13788_v12, 4  ;;  %v8685_v14 = vrot.slane %v13912_v57, 4  ;;  %v13930_v12 = vld [vmem:[#allocation2 + $0x80] sm:$0xf0] }
 0x4b0   : > { %v8325_v56 = vor.u32 %v8324_v53, %v8321_v41  ;;  %v8686_v19 = vrot.slane %v13791_v22, 4  ;;  %v8691_v8 = vrot.slane %v13930_v12, 4  ;;  %v13942_v41 = vld [vmem:[#allocation2 + $0xa0] sm:$0xf0]  ;;  %v8694_v53 = vrot.slane %v13939_v34, 4 }
 0x4b1   : > { %v8351_v49 = vsel %vm283_vm7, %v8342_v15, %v8350_v47  ;;  %v8697_v1 = vrot.slane %v13942_v41, 4  ;;  %v8700_v48 = vrot.slane %v13951_v5, 4  ;;  %v13966_v44 = vld [vmem:[#allocation2 + $0xe0] sm:$0xf0]  ;;  %v8986_v47 = vld [vmem:[#allocation2 + $0x28] sm:$0x1f] }
 0x4b2   : > { %11147 = vmatmul.mubr.msk.bf16.gmra.mrb[12].mxu1 %vm224_vm0, %v8215_v52  ;;  %v8300_v52 = vsel %vm283_vm7, %v8291_v18, %v8299_v0  ;;  %v8334_v35 = vsel %vm283_vm7, %v8325_v56, %v8333_v55  ;;  %v13908_v0 = vld [vmem:[#allocation2 + $0x50] sm:$0xf0]  ;;  %v8687_v54 = vsel %vm831_vm1, %v8685_v14, %v8686_v19  ;;  %v8709_v23 = vrot.slane %v13966_v44, 4  ;;  %v13978_v15 = vld [vmem:[#allocation2 + $0x100] sm:$0xf0] }
 0x4b3   : > { %11150 = vmatprep.mubr.msk.bf16.mxu1 %vm224_vm0, %v8232_v36  ;;  %v8307_v36 = vrot.slane %v8305_v3, 4  ;;  %v8678_v3 = vsel %vm831_vm1, %v8676_v20, %v8677_v63  ;;  %v8682_v28 = vrot.slane %v13908_v0, 4  ;;  %v13963_v55 = vld [vmem:[#allocation2 + $0xd0] sm:$0xf0]  ;;  %v9011_v9 = vshrl.u32 %v13886_v2, 16 }
 0x4b4   : > { %v8706_v31 = vrot.slane %v13963_v55, 4  ;;  %v9019_v20 = vshrl.u32 %v8986_v47, 16  ;;  %v9022_v63 = vshll.u32 %v8986_v47, 16  ;;  %v9028_v14 = vshrl.u32 %v13893_v27, 16 }
 0x4b5   : > { %v8308_v58 = vor.u32 %v8307_v36, %v8304_v42  ;;  %v8684_v40 = vsel %vm831_vm1, %v8682_v28, %v8683_v39  ;;  %v8689_v42 = vrot.slane %v13799_v24, 4  ;;  %v8695_v24 = vrot.slane %v13822_v7, 4  ;;  %v8988_v39 = vld [vmem:[#allocation2 + $0x48] sm:$0x1f] }
 0x4b6   : > { %v8701_v7 = vrot.slane %v13838_v11, 4  ;;  %v8707_v11 = vrot.slane %v13852_v10, 4  ;;  %v8713_v10 = vrot.slane %v13865_v61, 4  ;;  %v9024_v28 = vrot.slane %v9022_v63, 5 }
 0x4b7   : > { %v8696_v59 = vsel %vm831_vm1, %v8694_v53, %v8695_v24  ;;  %v9031_v19 = vshll.u32 %v13893_v27, 16  ;;  %v9030_v53 = vrot.slane %v9028_v14, 4  ;;  %v9113_v14 = vshrl.u32 %v13930_v12, 16 }
 0x4b8   : > { %v8708_v37 = vsel %vm831_vm1, %v8706_v31, %v8707_v11 }
 0x4b9   : > { %v9033_v24 = vrot.slane %v9031_v19, 5 }
 0x4ba   : > { %11151 = vmatmul.mubr.msk.bf16.gmra.mrb[16].mxu1 %vm224_vm0, %v8249_v6  ;;  %v8317_v6 = vsel %vm283_vm7, %v8308_v58, %v8316_v13  ;;  %v8703_v58 = vrot.slane %v13954_v29, 4  ;;  %v8702_v13 = vsel %vm831_vm1, %v8700_v48, %v8701_v7  ;;  %v8989_v7 = vld [vmem:[#allocation2 + $0x58] sm:$0x1f] }
 0x4bb   : > { %11154 = vmatprep.mubr.msk.bf16.mxu1 %vm224_vm0, %v8266_v21  ;;  %v13896_v21 = vld [vmem:[#allocation2 + $0x40] sm:$0xf0]  ;;  %v9070_v31 = vshrl.u32 %v8989_v7, 16  ;;  %v9073_v11 = vshll.u32 %v8989_v7, 16 }
 0x4bc   : > { %v8679_v26 = vrot.slane %v13896_v21, 4 }
 0x4be   : > { %v8681_v18 = vsel %vm831_vm1, %v8679_v26, %v8680_v62  ;;  %v13986_v26 = vld [vmem:[#allocation2 + $0x110] sm:$0xf0] }
 0x4c2   : > { %11155 = vmatmul.mubr.msk.bf16.gmra.mrb[20].mxu1 %vm224_vm0, %v8283_v38  ;;  %v13927_v38 = vld [vmem:[#allocation2 + $0x70] sm:$0xf0] }
 0x4c3   : > { %11158 = vmatprep.mubr.msk.bf16.mxu1 %vm224_vm0, %v8300_v52  ;;  %v8688_v22 = vrot.slane %v13927_v38, 4  ;;  %v8692_v52 = vrot.slane %v13810_v30, 4  ;;  %v8698_v30 = vrot.slane %v13825_v33, 4  ;;  %v8704_v33 = vrot.slane %v13846_v32, 4 }
 0x4c4   : > { %v8710_v32 = vrot.slane %v13855_v4, 4  ;;  %v9014_v4 = vshll.u32 %v13886_v2, 16  ;;  %v8718_v2 = vrot.slane %v13986_v26, 4 }
 0x4c5   : > { %v8690_v36 = vsel %vm831_vm1, %v8688_v22, %v8689_v42  ;;  %v8693_v45 = vsel %vm831_vm1, %v8691_v8, %v8692_v52  ;;  %v8699_v46 = vsel %vm831_vm1, %v8697_v1, %v8698_v30  ;;  %v8705_v56 = vsel %vm831_vm1, %v8703_v58, %v8704_v33 }
 0x4c6   : > { %v9045_v22 = vshrl.u32 %v13896_v21, 16  ;;  %v9048_v8 = vshll.u32 %v13896_v21, 16  ;;  %v9053_v52 = vshrl.u32 %v8988_v39, 16  ;;  %v8990_v21 = vld [vmem:[#allocation2 + $0x68] sm:$0x1f]  ;;  %v9034_v58 = vor.u32 %v9033_v24, %v9030_v53 }
 0x4c7   : > { %v9087_v47 = vshrl.u32 %v8990_v21, 16 }
 0x4c8   : > { %v9047_v30 = vrot.slane %v9045_v22, 4 }
 0x4ca   : > { %11159 = vmatmul.mubr.msk.bf16.gmra.mrb[24].mxu1 %vm224_vm0, %v8317_v6  ;;  %v8711_v6 = vsel %vm831_vm1, %v8709_v23, %v8710_v32  ;;  %v9079_v23 = vshrl.u32 %v13912_v57, 16  ;;  %v9082_v32 = vshll.u32 %v13912_v57, 16  ;;  %v9096_v57 = vshrl.u32 %v13927_v38, 16 }
 0x4cb   : > { %11162 = vmatprep.mubr.msk.bf16.mxu1 %vm224_vm0, %v8334_v35  ;;  %v13975_v35 = vld [vmem:[#allocation2 + $0xf0] sm:$0xf0] }
 0x4cc   : > { %v8712_v16 = vrot.slane %v13975_v35, 4  ;;  %v9084_v63 = vrot.slane %v9082_v32, 5  ;;  %v9098_v22 = vrot.slane %v9096_v57, 4  ;;  %v9181_v57 = vshrl.u32 %v13954_v29, 16 }
 0x4ce   : > { %v8714_v62 = vsel %vm831_vm1, %v8712_v16, %v8713_v10  ;;  %v9090_v16 = vshll.u32 %v8990_v21, 16  ;;  %v9147_v21 = vshrl.u32 %v13942_v41, 16 }
 0x4d2   : > { %11163 = vmatmul.mubr.msk.bf16.gmra.mrb[28].mxu1 %vm224_vm0, %v8351_v49  ;;  %v8715_v49 = vrot.slane %v13978_v15, 4 }
 0x4d3   : > { %11174 = vmatprep.mubr.msk.bf16.mxu1 %vm224_vm0, %v8675_v50  ;;  %v8716_v50 = vrot.slane %v13868_v17, 4  ;;  %v8719_v17 = vrot.slane %v13875_v25, 4 }
 0x4d5   : > { %v8717_v61 = vsel %vm831_vm1, %v8715_v49, %v8716_v50  ;;  %v9072_v49 = vrot.slane %v9070_v31, 4  ;;  %v9075_v50 = vrot.slane %v9073_v11, 5 }
 0x4da   : > { %11175 = vmatmul.mubr.msk.bf16.vlgmr.msra.gmra.mrb[0].mxu1 %vm224_vm0, %v8678_v3  ;;  %v9016_v3 = vrot.slane %v9014_v4, 5 }
 0x4db   : > { %11207 = vmatpush3.bf16.msra.mxu1 %v13833_v60  ;;  %11178 = vmatprep.mubr.msk.bf16.mxu1 %vm224_vm0, %v8681_v18  ;;  %v11871_v60 = vld [vmem:[%s14251_s3 + $0x118] sm:$0xff]  }
 0x4dc   : > { %11208 = vmatprep.subr.bf16.mxu1 %v11869_v43  ;;  %v8987_v18 = vld [vmem:[#allocation2 + $0x38] sm:$0x1f] }
 0x4df   : > { %11209 = vmatpush3.bf16.msra.mxu1 %v11869_v43  ;;  %v9013_v43 = vrot.slane %v9011_v9, 4 }
 0x4e0   : > { %11210 = vmatprep.subr.bf16.mxu1 %v11870_v51 }
 0x4e2   : > { %11179 = vmatmul.mubr.msk.bf16.gmra.mrb[4].mxu1 %vm224_vm0, %v8684_v40  ;;  %v9039_v40 = vshll.u32 %v8987_v18, 16 }
 0x4e3   : > { %11182 = vmatprep.mubr.msk.bf16.mxu1 %vm224_vm0, %v8687_v54  ;;  %11211 = vmatpush3.bf16.msra.mxu1 %v11870_v51  ;;  %v9021_v51 = vrot.slane %v9019_v20, 4  ;;  %v9017_v54 = vor.u32 %v9016_v3, %v9013_v43  ;;  %v9081_v20 = vrot.slane %v9079_v23, 4  ;;  %v9089_v43 = vrot.slane %v9087_v47, 4 }
 0x4e4   : > { %11212 = vmatprep.subr.bf16.mxu1 %v11871_v60  ;;  %v9041_v1 = vrot.slane %v9039_v40, 5  ;;  %v9092_v3 = vrot.slane %v9090_v16, 5  ;;  %v9149_v47 = vrot.slane %v9147_v21, 4 }
 0x4e5   : > { %v9025_v42 = vor.u32 %v9024_v28, %v9021_v51 }
 0x4e6   : > { %v9093_v19 = vor.u32 %v9092_v3, %v9089_v43 }
 0x4e7   : > { %11213 = vmatpush3.bf16.msra.mxu1 %v11871_v60  ;;  %v9036_v60 = vshrl.u32 %v8987_v18, 16  ;;  %v9026_v27 = vsel %vm1370_vm10, %v9017_v54, %v9025_v42  ;;  %v9099_v18 = vshll.u32 %v13927_v38, 16  ;;  %v9115_v38 = vrot.slane %v9113_v14, 4 }
 0x4e9   : > { %v9038_v25 = vrot.slane %v9036_v60, 4  ;;  %v9116_v60 = vshll.u32 %v13930_v12, 16  ;;  %v9101_v42 = vrot.slane %v9099_v18, 5  ;;  %v9184_v18 = vshll.u32 %v13954_v29, 16 }
 0x4ea   : > { %11183 = vmatmul.mubr.msk.bf16.gmra.mrb[8].mxu1 %vm224_vm0, %v8690_v36  ;;  %v9056_v36 = vshll.u32 %v8988_v39, 16  ;;  %v9085_v39 = vor.u32 %v9084_v63, %v9081_v20 }
 0x4eb   : > { %11186 = vmatprep.mubr.msk.bf16.mxu1 %vm224_vm0, %v8693_v45  ;;  %v8720_v45 = vsel %vm831_vm1, %v8718_v2, %v8719_v17  ;;  %v9042_v33 = vor.u32 %v9041_v1, %v9038_v25  ;;  %v9076_v17 = vor.u32 %v9075_v50, %v9072_v49  ;;  %v9118_v24 = vrot.slane %v9116_v60, 5  ;;  %v8996_v50 = vld [vmem:[#allocation2 + $0xc8] sm:$0x1f] }
 0x4ec   : > { %v9058_v48 = vrot.slane %v9056_v36, 5  ;;  %v9094_v53 = vsel %vm1370_vm10, %v9085_v39, %v9093_v19  ;;  %v9102_v12 = vor.u32 %v9101_v42, %v9098_v22  ;;  %v9167_v49 = vshll.u32 %v13951_v5, 16  ;;  %v8997_v19 = vld [vmem:[#allocation2 + $0xd8] sm:$0x1f]  ;;  %v8998_v42 = vld [vmem:[#allocation2 + $0xe8] sm:$0x1f] }
 0x4ed   : > { %v9043_v10 = vsel %vm1370_vm10, %v9034_v58, %v9042_v33  ;;  %v9150_v58 = vshll.u32 %v13942_v41, 16  ;;  %v9164_v41 = vshrl.u32 %v13951_v5, 16  ;;  %v9183_v60 = vrot.slane %v9181_v57, 4 }
 0x4ef   : > { %v9152_v16 = vrot.slane %v9150_v58, 5 }
 0x4f1   : > { %v9153_v43 = vor.u32 %v9152_v16, %v9149_v47 }
 0x4f2   : > { %11187 = vmatmul.mubr.msk.bf16.gmra.mrb[12].mxu1 %vm224_vm0, %v8696_v59  ;;  %v9050_v59 = vrot.slane %v9048_v8, 5 }
 0x4f3   : > { %11190 = vmatprep.mubr.msk.bf16.mxu1 %vm224_vm0, %v8699_v46  ;;  %v9055_v46 = vrot.slane %v9053_v52, 4 }
 0x4fa   : > { %11191 = vmatmul.mubr.msk.bf16.gmra.mrb[16].mxu1 %vm224_vm0, %v8702_v13  ;;  %v9062_v13 = vshrl.u32 %v13908_v0, 16 }
 0x4fb   : > { %11194 = vmatprep.mubr.msk.bf16.mxu1 %vm224_vm0, %v8705_v56  ;;  %v9065_v56 = vshll.u32 %v13908_v0, 16 }
 0x4fc   : > { %v9064_v9 = vrot.slane %v9062_v13, 4 }
 0x4fd   : > { %v9067_v4 = vrot.slane %v9065_v56, 5  ;;  %v9119_v56 = vor.u32 %v9118_v24, %v9115_v38  ;;  %v9206_v38 = vshrl.u32 %v8997_v19, 16  ;;  %v9218_v24 = vshll.u32 %v13966_v44, 16 }
 0x4ff   : > { %v9068_v2 = vor.u32 %v9067_v4, %v9064_v9  ;;  %v8995_v9 = vld [vmem:[#allocation2 + $0xb8] sm:$0x1f]  ;;  %v9220_v58 = vrot.slane %v9218_v24, 5 }
 0x500   : > { %v9172_v20 = vshrl.u32 %v8995_v9, 16  ;;  %v9175_v63 = vshll.u32 %v8995_v9, 16 }
 0x501   : > { %v9077_v36 = vsel %vm1370_vm10, %v9068_v2, %v9076_v17  ;;  %v9169_v2 = vrot.slane %v9167_v49, 5 }
 0x502   : > { %11195 = vmatmul.mubr.msk.bf16.gmra.mrb[20].mxu1 %vm224_vm0, %v8708_v37  ;;  %v9051_v37 = vor.u32 %v9050_v59, %v9047_v30  ;;  %v8994_v30 = vld [vmem:[#allocation2 + $0xa8] sm:$0x1f]  ;;  %v9174_v17 = vrot.slane %v9172_v20, 4  ;;  %v9177_v39 = vrot.slane %v9175_v63, 5 }
 0x503   : > { %11198 = vmatprep.mubr.msk.bf16.mxu1 %vm224_vm0, %v8711_v6  ;;  %v9059_v6 = vor.u32 %v9058_v48, %v9055_v46  ;;  %v9133_v46 = vshll.u32 %v13939_v34, 16  ;;  %v9155_v33 = vshrl.u32 %v8994_v30, 16  ;;  %v9158_v13 = vshll.u32 %v8994_v30, 16 }
 0x505   : > { %v9060_v0 = vsel %vm1370_vm10, %v9051_v37, %v9059_v6  ;;  %v9135_v32 = vrot.slane %v9133_v46, 5 }
 0x50a   : > { %11199 = vmatmul.mubr.msk.bf16.gmra.mrb[24].mxu1 %vm224_vm0, %v8714_v62  ;;  %v8991_v62 = vld [vmem:[#allocation2 + $0x78] sm:$0x1f] }
 0x50b   : > { %11202 = vmatprep.mubr.msk.bf16.mxu1 %vm224_vm0, %v8717_v61  ;;  %v8992_v61 = vld [vmem:[#allocation2 + $0x88] sm:$0x1f]  ;;  %v9104_v51 = vshrl.u32 %v8991_v62, 16  ;;  %v9107_v28 = vshll.u32 %v8991_v62, 16 }
 0x50c   : > { %v9121_v40 = vshrl.u32 %v8992_v61, 16  ;;  %v9124_v54 = vshll.u32 %v8992_v61, 16  ;;  %v9189_v61 = vshrl.u32 %v8996_v50, 16 }
 0x50d   : > { %v9106_v8 = vrot.slane %v9104_v51, 4  ;;  %v9109_v52 = vrot.slane %v9107_v28, 5  ;;  %v9192_v51 = vshll.u32 %v8996_v50, 16  ;;  %v9166_v28 = vrot.slane %v9164_v41, 4  ;;  %v9001_v50 = vld [vmem:[#allocation2 + $0x118] sm:$0x1f] }
 0x50e   : > { %v9123_v25 = vrot.slane %v9121_v40, 4  ;;  %v9126_v1 = vrot.slane %v9124_v54, 5  ;;  %v9186_v40 = vrot.slane %v9184_v18, 5  ;;  %v9191_v54 = vrot.slane %v9189_v61, 4 }
 0x50f   : > { %v9110_v59 = vor.u32 %v9109_v52, %v9106_v8  ;;  %v9194_v22 = vrot.slane %v9192_v51, 5  ;;  %v9170_v29 = vor.u32 %v9169_v2, %v9166_v28  ;;  %v9198_v8 = vshrl.u32 %v13963_v55, 16 }
 0x510   : > { %v9127_v31 = vor.u32 %v9126_v1, %v9123_v25  ;;  %v9178_v52 = vor.u32 %v9177_v39, %v9174_v17  ;;  %v9223_v25 = vshrl.u32 %v8998_v42, 16  ;;  %v9226_v1 = vshll.u32 %v8998_v42, 16 }
 0x511   : > { %v9111_v23 = vsel %vm1370_vm10, %v9102_v12, %v9110_v59  ;;  %v9187_v30 = vor.u32 %v9186_v40, %v9183_v60  ;;  %v9195_v12 = vor.u32 %v9194_v22, %v9191_v54  ;;  %v9269_v18 = vshll.u32 %v13986_v26, 16 }
 0x512   : > { %11203 = vmatmul.mubr.msk.bf16.gmra.mrb[28].mxu1 %vm224_vm0, %v8720_v45  ;;  %v8993_v45 = vld [vmem:[#allocation2 + $0x98] sm:$0x1f]  ;;  %v9128_v4 = vsel %vm1370_vm10, %v9119_v56, %v9127_v31  ;;  %v9179_v59 = vsel %vm1370_vm10, %v9170_v29, %v9178_v52  ;;  %v9274_v61 = vshrl.u32 %v9001_v50, 16  ;;  %v9277_v51 = vshll.u32 %v9001_v50, 16  ;;  %v14062_v29 = vld [vmem:[%s14252_s4] ss:$0 sm:$0xff] }
 0x513   : > { %11214 = vmatprep.mubr.msk.bf16.mxu1 %vm224_vm0, %v9026_v27  ;;  %v9130_v27 = vshrl.u32 %v13939_v34, 16  ;;  %v9138_v48 = vshrl.u32 %v8993_v45, 16  ;;  %v9141_v7 = vshll.u32 %v8993_v45, 16  ;;  %v9160_v34 = vrot.slane %v9158_v13, 5  ;;  %v8999_v56 = vld [vmem:[#allocation2 + $0xf8] sm:$0x1f] }
 0x514   : > { %v9209_v45 = vshll.u32 %v8997_v19, 16  ;;  %v9196_v13 = vsel %vm1370_vm10, %v9187_v30, %v9195_v12  ;;  %v9240_v47 = vshrl.u32 %v8999_v56, 16  ;;  %v9243_v16 = vshll.u32 %v8999_v56, 16  ;;  %v9588_v52 = vld [vmem:[%s12044_s17 + $0x10] sm:$0xff] }
 0x515   : > { %v9132_v11 = vrot.slane %v9130_v27, 4  ;;  %v9140_v37 = vrot.slane %v9138_v48, 4  ;;  %v9143_v6 = vrot.slane %v9141_v7, 5  ;;  %v9200_v27 = vrot.slane %v9198_v8, 4  ;;  %v9592_v56 = vld [vmem:[%s12044_s17 + $0x30] sm:$0xff] }
 0x516   : > { %v9208_v48 = vrot.slane %v9206_v38, 4  ;;  %v9211_v7 = vrot.slane %v9209_v45, 5  ;;  %v9276_v19 = vrot.slane %v9274_v61, 4  ;;  %v9279_v60 = vrot.slane %v9277_v51, 5  ;;  %v9586_v45 = vld [vmem:[%s12044_s17] sm:$0xff] }
 0x517   : > { %v9136_v62 = vor.u32 %v9135_v32, %v9132_v11  ;;  %v9235_v32 = vshll.u32 %v13975_v35, 16 }
 0x518   : > { %v9212_v11 = vor.u32 %v9211_v7, %v9208_v48  ;;  %v9280_v22 = vor.u32 %v9279_v60, %v9276_v19 }
 0x519   : > { %v9237_v63 = vrot.slane %v9235_v32, 5 }
 0x51a   : > { %11215 = vmatmul.mubr.msk.bf16.vlgmr.msra.gmra.mrb[0].mxu1 %vm224_vm0, %v9043_v10  ;;  %v9157_v10 = vrot.slane %v9155_v33, 4  ;;  %v9225_v33 = vrot.slane %v9223_v25, 4  ;;  %v9589_v25 = vld [vmem:[%s12044_s17 + $0x18] sm:$0xff] }
 0x51b   : > { %11218 = vmatprep.mubr.msk.bf16.mxu1 %vm224_vm0, %v9060_v0  ;;  %v9144_v0 = vor.u32 %v9143_v6, %v9140_v37 }
 0x51c   : > { %v9161_v3 = vor.u32 %v9160_v34, %v9157_v10  ;;  %v9249_v10 = vshrl.u32 %v13978_v15, 16  ;;  %v9252_v34 = vshll.u32 %v13978_v15, 16  ;;  %v9266_v15 = vshrl.u32 %v13986_v26, 16 }
 0x51d   : > { %v9145_v14 = vsel %vm1370_vm10, %v9136_v62, %v9144_v0  ;;  %v9242_v62 = vrot.slane %v9240_v47, 4  ;;  %v9245_v0 = vrot.slane %v9243_v16, 5 }
 0x51e   : > { %v9162_v5 = vsel %vm1370_vm10, %v9153_v43, %v9161_v3  ;;  %v9254_v43 = vrot.slane %v9252_v34, 5 }
 0x51f   : > { %v9246_v2 = vor.u32 %v9245_v0, %v9242_v62  ;;  %v9596_v0 = vld [vmem:[%s12044_s17 + $0x50] sm:$0xff] }
 0x522   : > { %11219 = vmatmul.mubr.msk.bf16.gmra.mrb[4].mxu1 %vm224_vm0, %v9077_v36  ;;  %v9201_v36 = vshll.u32 %v13963_v55, 16  ;;  %v9228_v55 = vrot.slane %v9226_v1, 5 }
 0x523   : > { %11222 = vmatprep.mubr.msk.bf16.mxu1 %vm224_vm0, %v9094_v53  ;;  %v9215_v53 = vshrl.u32 %v13966_v44, 16  ;;  %v9000_v44 = vld [vmem:[#allocation2 + $0x108] sm:$0x1f] }
 0x524   : > { %v9203_v46 = vrot.slane %v9201_v36, 5  ;;  %v9229_v6 = vor.u32 %v9228_v55, %v9225_v33  ;;  %v9257_v9 = vshrl.u32 %v9000_v44, 16 }
 0x525   : > { %v9217_v21 = vrot.slane %v9215_v53, 4 }
 0x526   : > { %v9204_v31 = vor.u32 %v9203_v46, %v9200_v27  ;;  %v9259_v3 = vrot.slane %v9257_v9, 4  ;;  %v9587_v27 = vld [vmem:[%s12044_s17 + $0x8] sm:$0xff] }
 0x527   : > { %v9221_v37 = vor.u32 %v9220_v58, %v9217_v21 }
 0x528   : > { %v9213_v41 = vsel %vm1370_vm10, %v9204_v31, %v9212_v11  ;;  %v9590_v11 = vld [vmem:[%s12044_s17 + $0x20] sm:$0xff] }
 0x529   : > { %v9230_v20 = vsel %vm1370_vm10, %v9221_v37, %v9229_v6  ;;  %v9593_v37 = vld [vmem:[%s12044_s17 + $0x38] sm:$0xff] }
 0x52a   : > { %11223 = vmatmul.mubr.msk.bf16.gmra.mrb[8].mxu1 %vm224_vm0, %v9111_v23  ;;  %v9232_v23 = vshrl.u32 %v13975_v35, 16  ;;  %v9251_v35 = vrot.slane %v9249_v10, 4  ;;  %v9591_v10 = vld [vmem:[%s12044_s17 + $0x28] sm:$0xff] }
 0x52b   : > { %11226 = vmatprep.mubr.msk.bf16.mxu1 %vm224_vm0, %v9128_v4  ;;  %v9260_v4 = vshll.u32 %v9000_v44, 16 }
 0x52c   : > { %v9234_v49 = vrot.slane %v9232_v23, 4  ;;  %v9255_v17 = vor.u32 %v9254_v43, %v9251_v35 }
 0x52d   : > { %v9262_v57 = vrot.slane %v9260_v4, 5 }
 0x52e   : > { %v9238_v28 = vor.u32 %v9237_v63, %v9234_v49 }
 0x52f   : > { %v9263_v39 = vor.u32 %v9262_v57, %v9259_v3  ;;  %v9594_v3 = vld [vmem:[%s12044_s17 + $0x40] sm:$0xff] }
 0x530   : > { %v9247_v40 = vsel %vm1370_vm10, %v9238_v28, %v9246_v2  ;;  %v9595_v2 = vld [vmem:[%s12044_s17 + $0x48] sm:$0xff] }
 0x531   : > { %v9264_v26 = vsel %vm1370_vm10, %v9255_v17, %v9263_v39 }
 0x532   : > { %11227 = vmatmul.mubr.msk.bf16.gmra.mrb[12].mxu1 %vm224_vm0, %v9145_v14  ;;  %v9268_v14 = vrot.slane %v9266_v15, 4 }
 0x533   : > { %11230 = vmatprep.mubr.msk.bf16.mxu1 %vm224_vm0, %v9162_v5  ;;  %v9271_v5 = vrot.slane %v9269_v18, 5  ;;  %v9597_v18 = vld [vmem:[%s12044_s17 + $0x58] sm:$0xff] }
 0x535   : > { %v9272_v54 = vor.u32 %v9271_v5, %v9268_v14 }
 0x537   : > { %v9281_v42 = vsel %vm1370_vm10, %v9272_v54, %v9280_v22  ;;  %v9600_v22 = vld [vmem:[%s12044_s17 + $0x70] sm:$0xff] }
 0x53a   : > { %11231 = vmatmul.mubr.msk.bf16.gmra.mrb[16].mxu1 %vm224_vm0, %v9179_v59 }
 0x53b   : > { %11234 = vmatprep.mubr.msk.bf16.mxu1 %vm224_vm0, %v9196_v13 }
 0x542   : > { %11235 = vmatmul.mubr.msk.bf16.gmra.mrb[20].mxu1 %vm224_vm0, %v9213_v41 }
 0x543   : > { %11238 = vmatprep.mubr.msk.bf16.mxu1 %vm224_vm0, %v9230_v20 }
 0x54a   : > { %11239 = vmatmul.mubr.msk.bf16.gmra.mrb[24].mxu1 %vm224_vm0, %v9247_v40 }
 0x54b   : > { %11242 = vmatprep.mubr.msk.bf16.mxu1 %vm224_vm0, %v9264_v26 }
 0x552   : > { %11243 = vmatmul.mubr.msk.bf16.gmra.mrb[28].mxu1 %vm224_vm0, %v9281_v42 }
 0x5ed   : > { %v11216_v8 = vpop.f32.mrb[0].mxu1 }
 0x5ee   : > { %v9556_v36 = vadd.f32 %v11216_v8, %v14062_v29  ;;  %v9388_v38 = vpop.f32.mrb[1].mxu1 }
 0x5ef   : > { %v9554_v53 = vadd.f32 %v14062_v29, %v9388_v38  ;;  %v11217_v24 = vpop.f32.mrb[2].mxu1 }
 0x5f0   : > { %v9620_v1 = vadd.f32 %v9588_v52, %v9556_v36  ;;  %v9557_v30 = vadd.f32 %v11217_v24, %v14062_v29  ;;  %v9391_v12 = vpop.f32.mrb[3].mxu1  ;;  %v9598_v52 = vld [vmem:[%s12044_s17 + $0x60] sm:$0xff] }
 0x5f1   : > { %v9618_v59 = vadd.f32 %v9586_v45, %v9554_v53  ;;  %v9555_v46 = vadd.f32 %v14062_v29, %v9391_v12  ;;  %v9601_v45 = vld [vmem:[%s12044_s17 + $0x78] sm:$0xff] }
 0x5f2   : > { %v9652_v48 = vmax.f32 %v9620_v1, 0.0  ;;  %v9621_v7 = vadd.f32 %v9589_v25, %v9557_v30  ;;  %v9599_v1 = vld [vmem:[%s12044_s17 + $0x68] sm:$0xff] }
 0x5f3   : > { %v9650_v21 = vmax.f32 %v9618_v59, 0.0  ;;  %v9619_v58 = vadd.f32 %v9587_v27, %v9555_v46 }
 0x5f4   : > { %9684 = vst.msk [vmem:[%s14074_s9 + $0x10] sm:$0xff] %vm224_vm0, %v9652_v48  ;;  %v9653_v33 = vmax.f32 %v9621_v7, 0.0 }
 0x5f5   : > { %9682 = vst.msk [vmem:[%s14074_s9] sm:$0xff] %vm224_vm0, %v9650_v21  ;;  %v9651_v55 = vmax.f32 %v9619_v58, 0.0  ;;  %v11220_v13 = vpop.f32.mrb[4].mxu1 }
 0x5f6   : > { %9685 = vst.msk [vmem:[%s14074_s9 + $0x18] sm:$0xff] %vm224_vm0, %v9653_v33  ;;  %v9560_v44 = vadd.f32 %v11220_v13, %v14062_v29  ;;  %v9404_v31 = vpop.f32.mrb[5].mxu1  ;;  %v9604_v33 = vld [vmem:[%s12044_s17 + $0x90] sm:$0xff] }
 0x5f7   : > { %9683 = vst.msk [vmem:[%s14074_s9 + $0x8] sm:$0xff] %vm224_vm0, %v9651_v55  ;;  %v9558_v23 = vadd.f32 %v14062_v29, %v9404_v31  ;;  %v11221_v32 = vpop.f32.mrb[6].mxu1 }
 0x5f8   : > { %v9624_v6 = vadd.f32 %v9592_v56, %v9560_v44  ;;  %v9561_v47 = vadd.f32 %v11221_v32, %v14062_v29  ;;  %v9407_v16 = vpop.f32.mrb[7].mxu1  ;;  %v9602_v56 = vld [vmem:[%s12044_s17 + $0x80] sm:$0xff] }
 0x5f9   : > { %v9622_v34 = vadd.f32 %v9590_v11, %v9558_v23  ;;  %v9559_v9 = vadd.f32 %v14062_v29, %v9407_v16  ;;  %v9605_v11 = vld [vmem:[%s12044_s17 + $0x98] sm:$0xff] }
 0x5fa   : > { %v9656_v4 = vmax.f32 %v9624_v6, 0.0  ;;  %v9625_v41 = vadd.f32 %v9593_v37, %v9561_v47  ;;  %v9603_v6 = vld [vmem:[%s12044_s17 + $0x88] sm:$0xff] }
 0x5fb   : > { %v9654_v49 = vmax.f32 %v9622_v34, 0.0  ;;  %v9623_v50 = vadd.f32 %v9591_v10, %v9559_v9 }
 0x5fc   : > { %9688 = vst.msk [vmem:[%s14074_s9 + $0x30] sm:$0xff] %vm224_vm0, %v9656_v4  ;;  %v9657_v20 = vmax.f32 %v9625_v41, 0.0 }
 0x5fd   : > { %9686 = vst.msk [vmem:[%s14074_s9 + $0x20] sm:$0xff] %vm224_vm0, %v9654_v49  ;;  %v9655_v63 = vmax.f32 %v9623_v50, 0.0  ;;  %v11224_v62 = vpop.f32.mrb[8].mxu1 }
 0x5fe   : > { %9689 = vst.msk [vmem:[%s14074_s9 + $0x38] sm:$0xff] %vm224_vm0, %v9657_v20  ;;  %v9564_v35 = vadd.f32 %v11224_v62, %v14062_v29  ;;  %v9420_v43 = vpop.f32.mrb[9].mxu1  ;;  %v9608_v20 = vld [vmem:[%s12044_s17 + $0xb0] sm:$0xff] }
 0x5ff   : > { %9687 = vst.msk [vmem:[%s14074_s9 + $0x28] sm:$0xff] %vm224_vm0, %v9655_v63  ;;  %v9562_v57 = vadd.f32 %v14062_v29, %v9420_v43  ;;  %v11225_v15 = vpop.f32.mrb[10].mxu1 }
 0x600   : > { %v9628_v61 = vadd.f32 %v9596_v0, %v9564_v35  ;;  %v9565_v51 = vadd.f32 %v11225_v15, %v14062_v29  ;;  %v9423_v28 = vpop.f32.mrb[11].mxu1  ;;  %v9606_v0 = vld [vmem:[%s12044_s17 + $0xa0] sm:$0xff] }
 0x601   : > { %v9626_v17 = vadd.f32 %v9594_v3, %v9562_v57  ;;  %v9563_v39 = vadd.f32 %v14062_v29, %v9423_v28  ;;  %v9609_v3 = vld [vmem:[%s12044_s17 + $0xb8] sm:$0xff] }
 0x602   : > { %v9660_v14 = vmax.f32 %v9628_v61, 0.0  ;;  %v9629_v5 = vadd.f32 %v9597_v18, %v9565_v51  ;;  %v9607_v61 = vld [vmem:[%s12044_s17 + $0xa8] sm:$0xff] }
 0x603   : > { %v9658_v19 = vmax.f32 %v9626_v17, 0.0  ;;  %v9627_v60 = vadd.f32 %v9595_v2, %v9563_v39 }
 0x604   : > { %9692 = vst.msk [vmem:[%s14074_s9 + $0x50] sm:$0xff] %vm224_vm0, %v9660_v14  ;;  %v9661_v40 = vmax.f32 %v9629_v5, 0.0 }
 0x605   : > { %9690 = vst.msk [vmem:[%s14074_s9 + $0x40] sm:$0xff] %vm224_vm0, %v9658_v19  ;;  %v9659_v26 = vmax.f32 %v9627_v60, 0.0  ;;  %v11228_v54 = vpop.f32.mrb[12].mxu1 }
 0x606   : > { %9693 = vst.msk [vmem:[%s14074_s9 + $0x58] sm:$0xff] %vm224_vm0, %v9661_v40  ;;  %v9568_v42 = vadd.f32 %v11228_v54, %v14062_v29  ;;  %v9436_v8 = vpop.f32.mrb[13].mxu1  ;;  %v9612_v40 = vld [vmem:[%s12044_s17 + $0xd0] sm:$0xff] }
 0x607   : > { %9691 = vst.msk [vmem:[%s14074_s9 + $0x48] sm:$0xff] %vm224_vm0, %v9659_v26  ;;  %v9566_v36 = vadd.f32 %v14062_v29, %v9436_v8  ;;  %v11229_v38 = vpop.f32.mrb[14].mxu1 }
 0x608   : > { %v9632_v53 = vadd.f32 %v9600_v22, %v9568_v42  ;;  %v9569_v24 = vadd.f32 %v11229_v38, %v14062_v29  ;;  %v9439_v25 = vpop.f32.mrb[15].mxu1  ;;  %v9610_v22 = vld [vmem:[%s12044_s17 + $0xc0] sm:$0xff] }
 0x609   : > { %v9630_v30 = vadd.f32 %v9598_v52, %v9566_v36  ;;  %v9567_v12 = vadd.f32 %v14062_v29, %v9439_v25  ;;  %v9613_v52 = vld [vmem:[%s12044_s17 + $0xd8] sm:$0xff] }
 0x60a   : > { %v9664_v27 = vmax.f32 %v9632_v53, 0.0  ;;  %v9633_v59 = vadd.f32 %v9601_v45, %v9569_v24  ;;  %v9611_v53 = vld [vmem:[%s12044_s17 + $0xc8] sm:$0xff] }
 0x60b   : > { %v9662_v46 = vmax.f32 %v9630_v30, 0.0  ;;  %v9631_v48 = vadd.f32 %v9599_v1, %v9567_v12 }
 0x60c   : > { %9696 = vst.msk [vmem:[%s14074_s9 + $0x70] sm:$0xff] %vm224_vm0, %v9664_v27  ;;  %v9665_v7 = vmax.f32 %v9633_v59, 0.0 }
 0x60d   : > { %9694 = vst.msk [vmem:[%s14074_s9 + $0x60] sm:$0xff] %vm224_vm0, %v9662_v46  ;;  %v9663_v21 = vmax.f32 %v9631_v48, 0.0  ;;  %v11232_v58 = vpop.f32.mrb[16].mxu1 }
 0x60e   : > { %9697 = vst.msk [vmem:[%s14074_s9 + $0x78] sm:$0xff] %vm224_vm0, %v9665_v7  ;;  %v9572_v55 = vadd.f32 %v11232_v58, %v14062_v29  ;;  %v9452_v13 = vpop.f32.mrb[17].mxu1  ;;  %v9616_v7 = vld [vmem:[%s12044_s17 + $0xf0] sm:$0xff] }
 0x60f   : > { %9695 = vst.msk [vmem:[%s14074_s9 + $0x68] sm:$0xff] %vm224_vm0, %v9663_v21  ;;  %v9570_v44 = vadd.f32 %v14062_v29, %v9452_v13  ;;  %v11233_v31 = vpop.f32.mrb[18].mxu1 }
 0x610   : > { %v9636_v23 = vadd.f32 %v9604_v33, %v9572_v55  ;;  %v9573_v32 = vadd.f32 %v11233_v31, %v14062_v29  ;;  %v9455_v37 = vpop.f32.mrb[19].mxu1  ;;  %v9614_v33 = vld [vmem:[%s12044_s17 + $0xe0] sm:$0xff] }
 0x611   : > { %v9634_v47 = vadd.f32 %v9602_v56, %v9570_v44  ;;  %v9571_v16 = vadd.f32 %v14062_v29, %v9455_v37  ;;  %v9617_v56 = vld [vmem:[%s12044_s17 + $0xf8] sm:$0xff] }
 0x612   : > { %v9668_v10 = vmax.f32 %v9636_v23, 0.0  ;;  %v9637_v34 = vadd.f32 %v9605_v11, %v9573_v32  ;;  %v9615_v23 = vld [vmem:[%s12044_s17 + $0xe8] sm:$0xff]  ;;  %s11877_s17 = scalar_lea.vmem %s14197_s11, 4096 }
 0x613   : > { %v9666_v9 = vmax.f32 %v9634_v47, 0.0  ;;  %v9635_v4 = vadd.f32 %v9603_v6, %v9571_v16  ;;  %p11878_p11 = scmp.ne.s32.totalorder %s14197_s11, %s11877_s17  ;;  %p11885_p1 = scmp.lt.s32.totalorder %s11883_s23, %s11877_s17 }
 0x614   : > { %9700 = vst.msk [vmem:[%s14074_s9 + $0x90] sm:$0xff] %vm224_vm0, %v9668_v10  ;;  %v9669_v41 = vmax.f32 %v9637_v34, 0.0 }
 0x615   : > { %9698 = vst.msk [vmem:[%s14074_s9 + $0x80] sm:$0xff] %vm224_vm0, %v9666_v9  ;;  %v9667_v49 = vmax.f32 %v9635_v4, 0.0  ;;  %v11236_v50 = vpop.f32.mrb[20].mxu1  ;;  %p11879_p12 = pnand %p11878_p11, %p12013_p5  ;;  %p11886_p2 = por %p11885_p1, %p11884_p0 }
 0x616   : > { %9701 = vst.msk [vmem:[%s14074_s9 + $0x98] sm:$0xff] %vm224_vm0, %v9669_v41  ;;  %v9576_v63 = vadd.f32 %v11236_v50, %v14062_v29  ;;  %v9468_v62 = vpop.f32.mrb[21].mxu1 }
 0x617   : > { %9699 = vst.msk [vmem:[%s14074_s9 + $0x88] sm:$0xff] %vm224_vm0, %v9667_v49  ;;  %v9574_v35 = vadd.f32 %v14062_v29, %v9468_v62  ;;  %v11237_v43 = vpop.f32.mrb[22].mxu1  ;;  %p11880_p13 = pneg %p11879_p12 }
 0x618   : > { %v9640_v57 = vadd.f32 %v9608_v20, %v9576_v63  ;;  %v9577_v15 = vadd.f32 %v11237_v43, %v14062_v29  ;;  %v9471_v18 = vpop.f32.mrb[23].mxu1 }
 0x619   : > { %v9638_v51 = vadd.f32 %v9606_v0, %v9574_v35  ;;  %v9575_v28 = vadd.f32 %v14062_v29, %v9471_v18  ;;  %p11887_p3 = pnand %p11886_p2, %p11880_p13 }
 0x61a   : > { %v9672_v2 = vmax.f32 %v9640_v57, 0.0  ;;  %v9641_v17 = vadd.f32 %v9609_v3, %v9577_v15 }
 0x61b   : > { %v9670_v39 = vmax.f32 %v9638_v51, 0.0  ;;  %v9639_v14 = vadd.f32 %v9607_v61, %v9575_v28 }
 0x61c   : > { %9704 = vst.msk [vmem:[%s14074_s9 + $0xb0] sm:$0xff] %vm224_vm0, %v9672_v2  ;;  %v9673_v5 = vmax.f32 %v9641_v17, 0.0 }
 0x61d   : > { %9702 = vst.msk [vmem:[%s14074_s9 + $0xa0] sm:$0xff] %vm224_vm0, %v9670_v39  ;;  %v9671_v19 = vmax.f32 %v9639_v14, 0.0  ;;  %v11240_v60 = vpop.f32.mrb[24].mxu1 }
 0x61e   : > { %9705 = vst.msk [vmem:[%s14074_s9 + $0xb8] sm:$0xff] %vm224_vm0, %v9673_v5  ;;  %v9580_v26 = vadd.f32 %v11240_v60, %v14062_v29  ;;  %v9484_v54 = vpop.f32.mrb[25].mxu1 }
 0x61f   : > { %9703 = vst.msk [vmem:[%s14074_s9 + $0xa8] sm:$0xff] %vm224_vm0, %v9671_v19  ;;  %v9578_v42 = vadd.f32 %v14062_v29, %v9484_v54  ;;  %v11241_v8 = vpop.f32.mrb[26].mxu1 }
 0x620   : > { %v9644_v36 = vadd.f32 %v9612_v40, %v9580_v26  ;;  %v9581_v38 = vadd.f32 %v11241_v8, %v14062_v29  ;;  %v9487_v45 = vpop.f32.mrb[27].mxu1 }
 0x621   : > { %v9642_v24 = vadd.f32 %v9610_v22, %v9578_v42  ;;  %v9579_v25 = vadd.f32 %v14062_v29, %v9487_v45 }
 0x622   : > { %v9676_v1 = vmax.f32 %v9644_v36, 0.0  ;;  %v9645_v30 = vadd.f32 %v9613_v52, %v9581_v38 }
 0x623   : > { %v9674_v12 = vmax.f32 %v9642_v24, 0.0  ;;  %v9643_v27 = vadd.f32 %v9611_v53, %v9579_v25 }
 0x624   : > { %9708 = vst.msk [vmem:[%s14074_s9 + $0xd0] sm:$0xff] %vm224_vm0, %v9676_v1  ;;  %v9677_v59 = vmax.f32 %v9645_v30, 0.0 }
 0x625   : > { %9706 = vst.msk [vmem:[%s14074_s9 + $0xc0] sm:$0xff] %vm224_vm0, %v9674_v12  ;;  %v9675_v46 = vmax.f32 %v9643_v27, 0.0  ;;  %v11244_v48 = vpop.f32.mrb[28].mxu1 }
 0x626   : > { %9709 = vst.msk [vmem:[%s14074_s9 + $0xd8] sm:$0xff] %vm224_vm0, %v9677_v59  ;;  %v9584_v21 = vadd.f32 %v11244_v48, %v14062_v29  ;;  %v9500_v58 = vpop.f32.mrb[29].mxu1 }
 0x627   : > { %9707 = vst.msk [vmem:[%s14074_s9 + $0xc8] sm:$0xff] %vm224_vm0, %v9675_v46  ;;  %v9582_v55 = vadd.f32 %v14062_v29, %v9500_v58  ;;  %v11245_v13 = vpop.f32.mrb[30].mxu1 }
 0x628   : > { %v9648_v44 = vadd.f32 %v9616_v7, %v9584_v21  ;;  %v9585_v31 = vadd.f32 %v11245_v13, %v14062_v29  ;;  %v9503_v11 = vpop.f32.mrb[31].mxu1 }
 0x629   : > { %v9646_v32 = vadd.f32 %v9614_v33, %v9582_v55  ;;  %v9583_v37 = vadd.f32 %v14062_v29, %v9503_v11 }
 0x62a   : > { %v9680_v6 = vmax.f32 %v9648_v44, 0.0  ;;  %v9649_v47 = vadd.f32 %v9617_v56, %v9585_v31 }
 0x62b   : > { %v9678_v16 = vmax.f32 %v9646_v32, 0.0  ;;  %v9647_v10 = vadd.f32 %v9615_v23, %v9583_v37 }
 0x62c   : > { %9712 = vst.msk [vmem:[%s14074_s9 + $0xf0] sm:$0xff] %vm224_vm0, %v9680_v6  ;;  %v9681_v34 = vmax.f32 %v9649_v47, 0.0 }
 0x62d   : > { %9710 = vst.msk [vmem:[%s14074_s9 + $0xe0] sm:$0xff] %vm224_vm0, %v9678_v16  ;;  %v9679_v29 = vmax.f32 %v9647_v10, 0.0 }
 0x62e   : > { %9713 = vst.msk [vmem:[%s14074_s9 + $0xf8] sm:$0xff] %vm224_vm0, %v9681_v34 }
 0x62f   : > { %9711 = vst.msk [vmem:[%s14074_s9 + $0xe8] sm:$0xff] %vm224_vm0, %v9679_v29 }
 0x630   : > { %11890 = shalt.err (!%p11887_p3)
}
 0x631   : > { %s11891_s25 = scalar_lea.hbm %s14195_s14, 4096  ;;  %s11895_s6 = scalar_lea.hbm %s14253_s5, 8192 }
 0x632   : > { %p11892_p4 = scmp.ne.s32.totalorder %s14195_s14, %s11891_s25  ;;  %p11896_p9 = scmp.lt.u32.totalorder %s14195_s14, %s14253_s5 }
 0x633   : > { %p11897_p10 = scmp.lt.u32.totalorder %s11895_s6, %s11891_s25  ;;  %p11899_p12 = scmp.lt.u32.totalorder %s11891_s25, %s14195_s14 }
 0x634   : > { %p11893_p7 = pnand %p11892_p4, %p12013_p5 }
 0x635   : > { %p11898_p11 = por %p11897_p10, %p11896_p9 }
 0x636   : > { %p11894_p8 = pneg %p11893_p7 }
 0x637   : > { %p11900_p13 = por %p11899_p12, %p11898_p11 }
 0x639   : > { %p11901_p0 = pnand %p11900_p13, %p11894_p8 }
 0x63b   : > { %11904 = shalt.err (!%p11901_p0)
}
 0x63c   : > { %s11943_s9 = smov 128   ;;  %s11944_s10 = smov 8  }
 0x63d   : > { %11758 = dma.vmem_to_hbm [thread:$0]  (%p12013_p5), %s14197_s11, 4096, %s14195_s14, %s14207_s22, %s11943_s9, %s11943_s9, %s11944_s10  }
 0x63e PF: > { %p11764_p1 = scmp.ge.s32.totalorder %s11939_s21, 2  ;;  %s9743_s12 = sand.u32 1, %s11927_s18  }
 0x63f   : > { %s9744_s13 = scalar_lea.sflag [#allocation4], %s9743_s12 }
 0x640   : > { %p11761_p2 = pnand %p11764_p1, %p12017_p6 }
 0x642   : > { %11922 = dma.done.wait (!%p11761_p2), %s9744_s13, 4096  }
 0x643   : > { %11924 = vsyncadd (!%p11761_p2), %s9744_s13, 4294963200  ;;  %p15_p3 = scmp.ge.s32.totalorder %s12000_s24, 4   ;;  %s14260_s18 = smov %s11931_s19 }
 0x644   : > { %s14261_s19 = smov %s11935_s20  ;;  %s14262_s20 = smov %s12011_s27 }
 0x645   : > { %s14263_s21 = smov %s12000_s24  ;;  %17 = sbr.rel (!%p15_p3) target bundleno = 3 (0x3), region = 78 }
 0x64c   :  { %9749 = vsyncpa [#allocation4], 1 }
 0x64d   :  { %9751 = vsyncpa [#allocation4 + $0x1], 1 }

</bundles_post_ra>
